<compile_context>
chip_gen: v7x
topology: tpu7x:2x2x1
jax: 0.10.0
libtpu: 0.0.40
codegen_flags: <defaults>
</compile_context>

<pallas_src>
import functools

import jax
import jax.numpy as jnp
from jax.experimental import pallas as pl
from jax.experimental.pallas import tpu as pltpu

# Column indices inside the packed width-c parameter table vc: (c, 11).
(_I_INTRO_B, _I_N1W, _I_N1B, _I_SCAB, _I_C3B, _I_BETA,
 _I_N2W, _I_N2B, _I_C5B, _I_GAMMA, _I_END_B) = range(11)
# Column indices inside the packed width-dw parameter table vd: (dw, 3).
_I_C1B, _I_DWB, _I_C4B = range(3)

_LN_EPS = 1e-6


# ----------------------------------------------------------------------------
# Fused Pallas kernel: intro conv3x3 -> NAFBlock -> ending conv3x3 -> residual
# ----------------------------------------------------------------------------
def _nafnet_fused_kernel(x_ref, wi_ref, we_ref, wdw_ref, wcc_ref, wcd_ref,
                         vc_ref, vd_ref, o_ref, *, H, W):
    """One image per grid step, channels-on-sublanes / pixels-on-lanes layout.

      x_ref  : (1, cin, HW)  f32   input image (cin == 3), lane-dense
      wi_ref : (9, c, cin)   bf16  intro 3x3 per-tap weights, transposed
      we_ref : (9, cout, c)  bf16  ending 3x3 per-tap weights, transposed
      wdw_ref: (dw, 9)       f32   depthwise 3x3 weights (channel, tap)
      wcc_ref: (3, c, c)     bf16  stacked [sca^T, conv3^T, conv5^T] 1x1 wts
      wcd_ref: (2, dw, c)    bf16  stacked [conv1^T, conv4^T] 1x1 weights
      vc_ref : (c, 11)       f32   packed width-c bias/scale columns
      vd_ref : (dw, 3)       f32   packed width-dw bias columns
      o_ref  : (1, cout, HW) f32   output image, lane-dense
    """
    HW = H * W
    dw = wcd_ref.shape[1]
    dwh = dw // 2
    cout = we_ref.shape[1]
    bf16 = jnp.bfloat16

    x2d = x_ref[0]                                   # (cin, HW) f32

    # ---- hoisted 3x3 halo masks (pixel index lives on the lane axis) -------
    pix = jax.lax.broadcasted_iota(jnp.int32, (1, HW), 1)
    col = pix % W                                    # w = p % W
    masks = {}
    for dy in (-1, 0, 1):
        for dx in (-1, 0, 1):
            if dy == 0 and dx == 0:
                continue
            conds = []
            if dy == -1:
                conds.append(pix >= W)               # h >= 1
            elif dy == 1:
                conds.append(pix < HW - W)           # h <= H-2
            if dx == -1:
                conds.append(col >= 1)               # w >= 1
            elif dx == 1:
                conds.append(col <= W - 2)           # w <= W-2
            m = conds[0]
            for cnd in conds[1:]:
                m = m & cnd
            masks[(dy, dx)] = m                      # (1, HW) bool

    def tap(t, dy, dx):
        """tap[:, p] == t[:, p + dy*W + dx], zero outside the image.
        Lane roll (XLU) + precomputed mask select (VPU)."""
        off = dy * W + dx
        if off == 0:
            return t
        rolled = pltpu.roll(t, shift=(-off) % HW, axis=1)
        return jnp.where(masks[(dy, dx)], rolled, 0.0)

    def conv3x3(t, w_taps_ref, bias_col):
        """Dense 3x3 conv as 9 per-tap MXU dots accumulated in f32, so at most
        one rolled tap is live at a time (no (9*C, HW) im2col slab)."""
        acc = None
        k = 0
        for dy in (-1, 0, 1):
            for dx in (-1, 0, 1):
                d = jnp.dot(w_taps_ref[k], tap(t, dy, dx).astype(bf16),
                            preferred_element_type=jnp.float32)
                acc = d if acc is None else acc + d
                k += 1
        return acc + bias_col

    def dwconv3x3(t, bias_col):
        """Depthwise 3x3: per-tap roll -> mask -> FMA; taps die immediately."""
        acc = t * wdw_ref[:, 4:5]                    # centre tap (no roll)
        k = 0
        for dy in (-1, 0, 1):
            for dx in (-1, 0, 1):
                if not (dy == 0 and dx == 0):
                    acc = acc + tap(t, dy, dx) * wdw_ref[:, k:k + 1]
                k += 1
        return acc + bias_col

    def layer_norm(t, wcol, bcol):                   # LayerNorm2d over channels
        mu = jnp.mean(t, axis=0, keepdims=True)      # (1, HW) sublane reduce
        var = jnp.mean(jnp.square(t - mu), axis=0, keepdims=True)
        return (t - mu) * jax.lax.rsqrt(var + _LN_EPS) * wcol + bcol

    # ---- intro 3x3 conv -----------------------------------------------------
    inp = conv3x3(x2d, wi_ref,
                  vc_ref[:, _I_INTRO_B:_I_INTRO_B + 1])        # (c, HW)

    # ---- NAFBlock: spatial branch -------------------------------------------
    xn = layer_norm(inp, vc_ref[:, _I_N1W:_I_N1W + 1],
                    vc_ref[:, _I_N1B:_I_N1B + 1])
    z = jnp.dot(wcd_ref[0], xn.astype(bf16),
                preferred_element_type=jnp.float32) + vd_ref[:, _I_C1B:_I_C1B + 1]
    z = dwconv3x3(z, vd_ref[:, _I_DWB:_I_DWB + 1])             # (dw, HW)
    g = z[:dwh] * z[dwh:]                            # SimpleGate: sublane split
    # SCA: mean_p(W^T g) == W^T mean_p(g)  (linearity) -> no 1-column matmul
    sca = jnp.mean(jnp.dot(wcc_ref[0], g.astype(bf16),
                           preferred_element_type=jnp.float32),
                   axis=1, keepdims=True) + vc_ref[:dwh, _I_SCAB:_I_SCAB + 1]
    xs = jnp.dot(wcc_ref[1], (g * sca).astype(bf16),
                 preferred_element_type=jnp.float32) + vc_ref[:, _I_C3B:_I_C3B + 1]
    y = inp + xs * vc_ref[:, _I_BETA:_I_BETA + 1]    # dropout(p=0) == identity

    # ---- NAFBlock: FFN branch -----------------------------------------------
    yn = layer_norm(y, vc_ref[:, _I_N2W:_I_N2W + 1],
                    vc_ref[:, _I_N2B:_I_N2B + 1])
    f = jnp.dot(wcd_ref[1], yn.astype(bf16),
                preferred_element_type=jnp.float32) + vd_ref[:, _I_C4B:_I_C4B + 1]
    ffnh = f.shape[0] // 2
    fg = f[:ffnh] * f[ffnh:]                         # SimpleGate
    xo = jnp.dot(wcc_ref[2], fg.astype(bf16),
                 preferred_element_type=jnp.float32) + vc_ref[:, _I_C5B:_I_C5B + 1]
    yb = y + xo * vc_ref[:, _I_GAMMA:_I_GAMMA + 1]

    # ---- ending 3x3 conv + global residual (lane-dense store) ---------------
    out = conv3x3(yb, we_ref,
                  vc_ref[:cout, _I_END_B:_I_END_B + 1])        # (cout, HW)
    o_ref[0] = out + x2d[:cout]


# ----------------------------------------------------------------------------
# Parameter packing + pallas_call wrapper
# ----------------------------------------------------------------------------
def _pack_fused_params(params):
    """Consolidate the per-op parameters into 7 arrays, pre-transposed for the
    (C, HW) layout.  Assumes DW_Expand == FFN_Expand == 2 (reference default),
    i.e. dw_channel//2 == ffn_channel//2 == width, and cout <= width."""
    blk = params['blk']
    intro_w = params['intro_w']                      # (9, cin, c)
    end_w = params['end_w']                          # (9, c, cout)
    c = intro_w.shape[2]
    cout = end_w.shape[2]
    dw = blk['c1w'].shape[1]
    ffn = blk['c4w'].shape[1]
    assert dw // 2 == c and ffn // 2 == c and cout <= c

    bf16, f32 = jnp.bfloat16, jnp.float32
    wi = jnp.transpose(intro_w, (0, 2, 1)).astype(bf16)          # (9, c, cin)
    we = jnp.transpose(end_w, (0, 2, 1)).astype(bf16)            # (9, cout, c)
    wdw = jnp.transpose(blk['dww']).astype(f32)                  # (dw, 9)
    wcc = jnp.stack([blk['scaw'].T, blk['c3w'].T,
                     blk['c5w'].T]).astype(bf16)                 # (3, c, c)
    wcd = jnp.stack([blk['c1w'].T, blk['c4w'].T]).astype(bf16)   # (2, dw, c)
    end_b = jnp.pad(params['end_b'], ((0, 0), (0, c - cout)))
    vc = jnp.concatenate([params['intro_b'], blk['n1w'], blk['n1b'],
                          blk['scab'], blk['c3b'], blk['beta'],
                          blk['n2w'], blk['n2b'], blk['c5b'], blk['gamma'],
                          end_b], axis=0).T.astype(f32)          # (c, 11)
    vd = jnp.concatenate([blk['c1b'], blk['dwb'], blk['c4b']],
                         axis=0).T.astype(f32)                   # (dw, 3)
    return wi, we, wdw, wcc, wcd, vc, vd


def _full_spec(a):
    nd = a.ndim
    return pl.BlockSpec(a.shape, lambda b, _nd=nd: (0,) * _nd)


def nafnet_core(x_nchw, params):
    """intro -> NAFBlock -> ending -> global residual as ONE fused kernel.
    x_nchw: (B, 3, H, W) -> (B, 3, H, W).  Stays NCHW end-to-end (the kernel
    consumes / produces lane-dense (B, C, HW) slabs; no transposes)."""
    B, cin, H, W = x_nchw.shape
    HW = H * W
    consts = _pack_fused_params(params)
    cout = consts[1].shape[1]                        # we: (9, cout, c)
    kernel = functools.partial(_nafnet_fused_kernel, H=H, W=W)
    # Peak per-image working set is ~0.6 KB/pixel f32 (per-tap accumulation,
    # no im2col slabs); 2x headroom, clamped to the smallest physical VMEM
    # (v7x = 64 MiB).  TODO(synk): spatial row-block tiling (3-row input halo
    # + two-pass cross-tile SCA pool) for resolutions where this clamps.
    vmem_bytes = int(min(64 * 1024 * 1024, max(16 * 1024 * 1024, 1536 * HW)))
    out = pl.pallas_call(
        kernel,
        out_shape=jax.ShapeDtypeStruct((B, cout, HW), jnp.float32),
        grid=(B,),
        in_specs=[pl.BlockSpec((1, cin, HW), lambda b: (b, 0, 0))]
                 + [_full_spec(a) for a in consts],
        out_specs=pl.BlockSpec((1, cout, HW), lambda b: (b, 0, 0)),
        compiler_params=pltpu.CompilerParams(
            dimension_semantics=("parallel",),
            vmem_limit_bytes=vmem_bytes),
    )(x_nchw.reshape(B, cin, HW), *consts)
    return out.reshape(B, cout, H, W)


# ----------------------------------------------------------------------------
# hq-feature branch (plain-JAX glue; dead with the default config -> gated)
# ----------------------------------------------------------------------------
def _conv_transpose2x2(x, w, b):
    """ConvTranspose2d(k=2, s=2) in NHWC.  w: (cin, cout, 2, 2) torch layout."""
    t = jnp.einsum('bhwc,cofg->bhfwgo', x, w)
    B, h, _, w_, _, co = t.shape
    return t.reshape(B, 2 * h, 2 * w_, co) + b


def _layer_norm2d(x, w, b, eps=1e-6):
    mu = jnp.mean(x, axis=-1, keepdims=True)
    var = jnp.mean(jnp.square(x - mu), axis=-1, keepdims=True)
    return (x - mu) * jax.lax.rsqrt(var + eps) * w + b


def _hq_features(inter_feats, deep_feats_nhwc, params):
    """embedding_encoder(deep_feats) + compress_vit_feat(vit_features).
    Only consumed by the encoder fuse blocks (none in the default config)."""
    vit_nhwc = inter_feats[0]   # permute(0,3,1,2) in NCHW == identity in NHWC
    emb = _conv_transpose2x2(deep_feats_nhwc, params['ee0_w'], params['ee0_b'])
    emb = jax.nn.gelu(_layer_norm2d(emb, params['ee_ln_w'], params['ee_ln_b']),
                      approximate=False)
    emb = _conv_transpose2x2(emb, params['ee1_w'], params['ee1_b'])
    cvf = _conv_transpose2x2(vit_nhwc, params['cv0_w'], params['cv0_b'])
    cvf = jax.nn.gelu(_layer_norm2d(cvf, params['cv_ln_w'], params['cv_ln_b']),
                      approximate=False)
    cvf = _conv_transpose2x2(cvf, params['cv1_w'], params['cv1_b'])
    return emb + cvf


# ----------------------------------------------------------------------------
# NAFNet forward (default config)
# ----------------------------------------------------------------------------
def nafnet_forward(inp, inter_feats, deep_feats, params,
                   enc_blk_nums=(), dec_blk_nums=()):
    """inp: (B, 3, H, W) NCHW -> (B, 3, H, W)."""
    B, C, H, W = inp.shape
    assert C == 3, "global residual x + inp[:, :3] assumes img_channel == 3"
    if enc_blk_nums or dec_blk_nums:
        # hq-feature branch is only consumed by the encoder fuse blocks.
        _ = _hq_features(inter_feats,
                         jnp.transpose(deep_feats, (0, 2, 3, 1)), params)
        # TODO(synk): encoder/decoder path (FeatFuseBlockSimple, downs, ups,
        # PixelShuffle) not implemented; the default config has none.
        raise NotImplementedError(
            "only the default NAFNet config (enc_blk_nums=[], dec_blk_nums=[])"
            " is implemented")
    # padder_size == 2**0 == 1 -> check_image_size() and the trailing
    # [:, :, :H, :W] crop are both identities for the default config.
    return nafnet_core(inp, params)


# ----------------------------------------------------------------------------
# Parameter construction (deterministic, synthetic)
# ----------------------------------------------------------------------------
def init_params(key, width=16, img_channel=3, dw_expand=2, ffn_expand=2,
                vit_dim=1280, transformer_dim=256):
    keys = iter(jax.random.split(key, 64))

    def nrm(shape, scale=0.1):
        return scale * jax.random.normal(next(keys), shape, jnp.float32)

    c, dw, ffn = width, width * dw_expand, width * ffn_expand
    td = transformer_dim
    return {
        'intro_w': nrm((9, img_channel, c)), 'intro_b': nrm((1, c)),
        'end_w': nrm((9, c, 3)), 'end_b': nrm((1, 3)),
        'blk': {
            'n1w': 1.0 + nrm((1, c)), 'n1b': nrm((1, c)),
            'c1w': nrm((c, dw)), 'c1b': nrm((1, dw)),
            'dww': nrm((9, dw)), 'dwb': nrm((1, dw)),
            'scaw': nrm((dw // 2, dw // 2)), 'scab': nrm((1, dw // 2)),
            'c3w': nrm((dw // 2, c)), 'c3b': nrm((1, c)),
            'n2w': 1.0 + nrm((1, c)), 'n2b': nrm((1, c)),
            'c4w': nrm((c, ffn)), 'c4b': nrm((1, ffn)),
            'c5w': nrm((ffn // 2, c)), 'c5b': nrm((1, c)),
            'beta': nrm((1, c)), 'gamma': nrm((1, c)),
        },
        # embedding_encoder / compress_vit_feat (dead with default config)
        'ee0_w': nrm((td, td // 4, 2, 2), 0.02), 'ee0_b': nrm((td // 4,), 0.02),
        'ee_ln_w': 1.0 + nrm((td // 4,), 0.02), 'ee_ln_b': nrm((td // 4,), 0.02),
        'ee1_w': nrm((td // 4, td // 8, 2, 2), 0.02), 'ee1_b': nrm((td // 8,), 0.02),
        'cv0_w': nrm((vit_dim, td, 2, 2), 0.02), 'cv0_b': nrm((td,), 0.02),
        'cv_ln_w': 1.0 + nrm((td,), 0.02), 'cv_ln_b': nrm((td,), 0.02),
        'cv1_w': nrm((td, td // 8, 2, 2), 0.02), 'cv1_b': nrm((td // 8,), 0.02),
    }


# ----------------------------------------------------------------------------
# Pure-JAX f32 reference (only for the numerical self-check in __main__)
# ----------------------------------------------------------------------------
def _ref_forward_nhwc(x_nhwc, params):
    hi = jax.lax.Precision.HIGHEST
    blk = params['blk']

    def conv3x3(t, w9, b):
        cin, cout = w9.shape[1], w9.shape[2]
        y = jax.lax.conv_general_dilated(
            t, w9.reshape(3, 3, cin, cout), (1, 1), 'SAME',
            dimension_numbers=('NHWC', 'HWIO', 'NHWC'), precision=hi)
        return y + b[0]

    def ln(t, w, b):
        mu = jnp.mean(t, -1, keepdims=True)
        var = jnp.mean(jnp.square(t - mu), -1, keepdims=True)
        return (t - mu) * jax.lax.rsqrt(var + 1e-6) * w[0] + b[0]

    x = conv3x3(x_nhwc, params['intro_w'], params['intro_b'])
    inp = x
    z = jnp.einsum('bhwc,cd->bhwd', ln(inp, blk['n1w'], blk['n1b']),
                   blk['c1w'], precision=hi) + blk['c1b'][0]
    dw = z.shape[-1]
    z = jax.lax.conv_general_dilated(
        z, blk['dww'].reshape(3, 3, 1, dw), (1, 1), 'SAME',
        dimension_numbers=('NHWC', 'HWIO', 'NHWC'), feature_group_count=dw,
        precision=hi) + blk['dwb'][0]
    g = z[..., :dw // 2] * z[..., dw // 2:]
    pooled = jnp.mean(g, axis=(1, 2), keepdims=True)
    sca = jnp.einsum('bhwc,cd->bhwd', pooled, blk['scaw'],
                     precision=hi) + blk['scab'][0]
    xs = jnp.einsum('bhwc,cd->bhwd', g * sca, blk['c3w'],
                    precision=hi) + blk['c3b'][0]
    y = inp + xs * blk['beta'][0]
    f = jnp.einsum('bhwc,cd->bhwd', ln(y, blk['n2w'], blk['n2b']),
                   blk['c4w'], precision=hi) + blk['c4b'][0]
    fh = f.shape[-1] // 2
    xo = jnp.einsum('bhwc,cd->bhwd', f[..., :fh] * f[..., fh:],
                    blk['c5w'], precision=hi) + blk['c5b'][0]
    yb = y + xo * blk['gamma'][0]
    return conv3x3(yb, params['end_w'], params['end_b']) + x_nhwc[..., :3]


# ----------------------------------------------------------------------------
if __name__ == "__main__":
    key = jax.random.PRNGKey(0)
    kp, k1, k2, k3 = jax.random.split(key, 4)
    params = init_params(kp)

    B, H, W = 2, 16, 16
    inp = jax.random.normal(k1, (B, 3, H, W), jnp.float32)
    inter_feats = [jax.random.normal(k2, (B, 2, 2, 1280), jnp.float32)]
    deep_feats = jax.random.normal(k3, (B, 256, 2, 2), jnp.float32)

    out = jax.jit(nafnet_forward)(inp, inter_feats, deep_feats, params)
    out = jax.block_until_ready(out)
    assert out.shape == (B, 3, H, W) and out.dtype == jnp.float32
    assert bool(jnp.all(jnp.isfinite(out)))

    # numerical self-check against a pure-JAX f32 reference of the same forward
    # (kernel uses bf16 MXU operands with f32 accumulation)
    x_nhwc = jnp.transpose(inp, (0, 2, 3, 1))
    ref = jnp.transpose(jax.jit(_ref_forward_nhwc)(x_nhwc, params),
                        (0, 3, 1, 2))
    err = float(jnp.max(jnp.abs(out - ref)))
    assert err < 3e-2, err

    print("KERNEL_OK")
</pallas_src>

<mosaic_0001>
module attributes {stable_mosaic.version = 11 : i64} {
  func.func @_nafnet_fused_kernel(%arg0: i32, %arg1: memref<1x3x256xf32, #tpu.memory_space<vmem>>, %arg2: memref<9x16x3xbf16, #tpu.memory_space<vmem>>, %arg3: memref<9x3x16xbf16, #tpu.memory_space<vmem>>, %arg4: memref<32x9xf32, #tpu.memory_space<vmem>>, %arg5: memref<3x16x16xbf16, #tpu.memory_space<vmem>>, %arg6: memref<2x32x16xbf16, #tpu.memory_space<vmem>>, %arg7: memref<16x11xf32, #tpu.memory_space<vmem>>, %arg8: memref<32x3xf32, #tpu.memory_space<vmem>>, %arg9: memref<1x3x256xf32, #tpu.memory_space<vmem>>) attributes {dimension_semantics = [#tpu.dimension_semantics<parallel>], iteration_bounds = array<i64: 2>, scalar_prefetch = 0 : i64, scratch_operands = 0 : i64, tpu.core_type = #tpu.core_type<tc>, window_params = [{transform_indices = @transform_0, window_bounds = array<i64: 1, 3, 256>}, {pipeline_mode = #tpu.pipeline_mode<synchronous>, transform_indices = @transform_1, window_bounds = array<i64: 9, 16, 3>}, {pipeline_mode = #tpu.pipeline_mode<synchronous>, transform_indices = @transform_2, window_bounds = array<i64: 9, 3, 16>}, {pipeline_mode = #tpu.pipeline_mode<synchronous>, transform_indices = @transform_3, window_bounds = array<i64: 32, 9>}, {pipeline_mode = #tpu.pipeline_mode<synchronous>, transform_indices = @transform_4, window_bounds = array<i64: 3, 16, 16>}, {pipeline_mode = #tpu.pipeline_mode<synchronous>, transform_indices = @transform_5, window_bounds = array<i64: 2, 32, 16>}, {pipeline_mode = #tpu.pipeline_mode<synchronous>, transform_indices = @transform_6, window_bounds = array<i64: 16, 11>}, {pipeline_mode = #tpu.pipeline_mode<synchronous>, transform_indices = @transform_7, window_bounds = array<i64: 32, 3>}, {transform_indices = @transform_8, window_bounds = array<i64: 1, 3, 256>}]} {
    %c0 = arith.constant 0 : index
    %c0_0 = arith.constant 0 : index
    %c0_1 = arith.constant 0 : index
    %0 = vector.load %arg1[%c0, %c0_0, %c0_1] : memref<1x3x256xf32, #tpu.memory_space<vmem>>, vector<1x3x256xf32>
    %1 = vector.shape_cast %0 : vector<1x3x256xf32> to vector<3x256xf32>
    %2 = tpu.iota {dimensions = array<i32: 1>} : vector<1x256xi32>
    %c16_i32 = arith.constant 16 : i32
    %c0_i32 = arith.constant 0 : i32
    %3 = arith.cmpi eq, %c16_i32, %c0_i32 : i32
    %c1_i32 = arith.constant 1 : i32
    %4 = arith.select %3, %c1_i32, %c16_i32 : i32
    %5 = vector.broadcast %4 : i32 to vector<1x256xi32>
    %6 = arith.remsi %2, %5 : vector<1x256xi32>
    %c0_i32_2 = arith.constant 0 : i32
    %7 = vector.broadcast %c0_i32_2 : i32 to vector<1x256xi32>
    %8 = arith.cmpi ne, %6, %7 : vector<1x256xi32>
    %c0_i32_3 = arith.constant 0 : i32
    %9 = vector.broadcast %c0_i32_3 : i32 to vector<1x256xi32>
    %10 = arith.cmpi slt, %6, %9 : vector<1x256xi32>
    %c0_i32_4 = arith.constant 0 : i32
    %11 = arith.cmpi slt, %4, %c0_i32_4 : i32
    %12 = vector.broadcast %11 : i1 to vector<1x256xi1>
    %13 = vector.broadcast %12 : vector<1x256xi1> to vector<1x256xi1>
    %14 = arith.xori %10, %13 : vector<1x256xi1>
    %15 = arith.andi %14, %8 : vector<1x256xi1>
    %16 = vector.broadcast %4 : i32 to vector<1x256xi32>
    %17 = arith.addi %6, %16 : vector<1x256xi32>
    %18 = arith.select %15, %17, %6 : vector<1x256xi1>, vector<1x256xi32>
    %c16_i32_5 = arith.constant 16 : i32
    %19 = vector.broadcast %c16_i32_5 : i32 to vector<1x256xi32>
    %20 = arith.cmpi sge, %2, %19 : vector<1x256xi32>
    %c1_i32_6 = arith.constant 1 : i32
    %21 = vector.broadcast %c1_i32_6 : i32 to vector<1x256xi32>
    %22 = arith.cmpi sge, %18, %21 : vector<1x256xi32>
    %23 = arith.andi %20, %22 : vector<1x256xi1>
    %c16_i32_7 = arith.constant 16 : i32
    %24 = vector.broadcast %c16_i32_7 : i32 to vector<1x256xi32>
    %25 = arith.cmpi sge, %2, %24 : vector<1x256xi32>
    %c16_i32_8 = arith.constant 16 : i32
    %26 = vector.broadcast %c16_i32_8 : i32 to vector<1x256xi32>
    %27 = arith.cmpi sge, %2, %26 : vector<1x256xi32>
    %c14_i32 = arith.constant 14 : i32
    %28 = vector.broadcast %c14_i32 : i32 to vector<1x256xi32>
    %29 = arith.cmpi sle, %18, %28 : vector<1x256xi32>
    %30 = arith.andi %27, %29 : vector<1x256xi1>
    %c1_i32_9 = arith.constant 1 : i32
    %31 = vector.broadcast %c1_i32_9 : i32 to vector<1x256xi32>
    %32 = arith.cmpi sge, %18, %31 : vector<1x256xi32>
    %c14_i32_10 = arith.constant 14 : i32
    %33 = vector.broadcast %c14_i32_10 : i32 to vector<1x256xi32>
    %34 = arith.cmpi sle, %18, %33 : vector<1x256xi32>
    %c240_i32 = arith.constant 240 : i32
    %35 = vector.broadcast %c240_i32 : i32 to vector<1x256xi32>
    %36 = arith.cmpi slt, %2, %35 : vector<1x256xi32>
    %c1_i32_11 = arith.constant 1 : i32
    %37 = vector.broadcast %c1_i32_11 : i32 to vector<1x256xi32>
    %38 = arith.cmpi sge, %18, %37 : vector<1x256xi32>
    %39 = arith.andi %36, %38 : vector<1x256xi1>
    %c240_i32_12 = arith.constant 240 : i32
    %40 = vector.broadcast %c240_i32_12 : i32 to vector<1x256xi32>
    %41 = arith.cmpi slt, %2, %40 : vector<1x256xi32>
    %c240_i32_13 = arith.constant 240 : i32
    %42 = vector.broadcast %c240_i32_13 : i32 to vector<1x256xi32>
    %43 = arith.cmpi slt, %2, %42 : vector<1x256xi32>
    %c14_i32_14 = arith.constant 14 : i32
    %44 = vector.broadcast %c14_i32_14 : i32 to vector<1x256xi32>
    %45 = arith.cmpi sle, %18, %44 : vector<1x256xi32>
    %46 = arith.andi %43, %45 : vector<1x256xi1>
    %c0_15 = arith.constant 0 : index
    %c0_16 = arith.constant 0 : index
    %47 = vector.load %arg7[%c0_15, %c0_16] : memref<16x11xf32, #tpu.memory_space<vmem>>, vector<16x1xf32>
    %c0_17 = arith.constant 0 : index
    %c0_18 = arith.constant 0 : index
    %c0_19 = arith.constant 0 : index
    %48 = vector.load %arg2[%c0_17, %c0_18, %c0_19] : memref<9x16x3xbf16, #tpu.memory_space<vmem>>, vector<1x16x3xbf16>
    %49 = vector.shape_cast %48 : vector<1x16x3xbf16> to vector<16x3xbf16>
    %c17_i32 = arith.constant 17 : i32
    %50 = tpu.dynamic_rotate %1 by %c17_i32 dim 1 : vector<3x256xf32>, i32 -> vector<3x256xf32>
    %cst = arith.constant 0.000000e+00 : f32
    %51 = vector.shape_cast %23 : vector<1x256xi1> to vector<1x256xi1>
    %52 = vector.broadcast %51 : vector<1x256xi1> to vector<3x256xi1>
    %53 = vector.broadcast %cst : f32 to vector<3x256xf32>
    %54 = arith.select %52, %50, %53 : vector<3x256xi1>, vector<3x256xf32>
    %55 = arith.truncf %54 : vector<3x256xf32> to vector<3x256xbf16>
    %cst_20 = arith.constant dense<0.000000e+00> : vector<16x256xf32>
    %56 = tpu.matmul %49, %55, %cst_20 {dimension_numbers = #tpu.dot_dimension_numbers<[1], [0], [0], [1], [0, 0, 1, 1], [], []>} : vector<16x3xbf16>, vector<3x256xbf16>, vector<16x256xf32> -> vector<16x256xf32>
    %c1 = arith.constant 1 : index
    %c0_21 = arith.constant 0 : index
    %c0_22 = arith.constant 0 : index
    %57 = vector.load %arg2[%c1, %c0_21, %c0_22] : memref<9x16x3xbf16, #tpu.memory_space<vmem>>, vector<1x16x3xbf16>
    %58 = vector.shape_cast %57 : vector<1x16x3xbf16> to vector<16x3xbf16>
    %c16_i32_23 = arith.constant 16 : i32
    %59 = tpu.dynamic_rotate %1 by %c16_i32_23 dim 1 : vector<3x256xf32>, i32 -> vector<3x256xf32>
    %cst_24 = arith.constant 0.000000e+00 : f32
    %60 = vector.shape_cast %25 : vector<1x256xi1> to vector<1x256xi1>
    %61 = vector.broadcast %60 : vector<1x256xi1> to vector<3x256xi1>
    %62 = vector.broadcast %cst_24 : f32 to vector<3x256xf32>
    %63 = arith.select %61, %59, %62 : vector<3x256xi1>, vector<3x256xf32>
    %64 = arith.truncf %63 : vector<3x256xf32> to vector<3x256xbf16>
    %cst_25 = arith.constant dense<0.000000e+00> : vector<16x256xf32>
    %65 = tpu.matmul %58, %64, %cst_25 {dimension_numbers = #tpu.dot_dimension_numbers<[1], [0], [0], [1], [0, 0, 1, 1], [], []>} : vector<16x3xbf16>, vector<3x256xbf16>, vector<16x256xf32> -> vector<16x256xf32>
    %66 = arith.addf %56, %65 : vector<16x256xf32>
    %c2 = arith.constant 2 : index
    %c0_26 = arith.constant 0 : index
    %c0_27 = arith.constant 0 : index
    %67 = vector.load %arg2[%c2, %c0_26, %c0_27] : memref<9x16x3xbf16, #tpu.memory_space<vmem>>, vector<1x16x3xbf16>
    %68 = vector.shape_cast %67 : vector<1x16x3xbf16> to vector<16x3xbf16>
    %c15_i32 = arith.constant 15 : i32
    %69 = tpu.dynamic_rotate %1 by %c15_i32 dim 1 : vector<3x256xf32>, i32 -> vector<3x256xf32>
    %cst_28 = arith.constant 0.000000e+00 : f32
    %70 = vector.shape_cast %30 : vector<1x256xi1> to vector<1x256xi1>
    %71 = vector.broadcast %70 : vector<1x256xi1> to vector<3x256xi1>
    %72 = vector.broadcast %cst_28 : f32 to vector<3x256xf32>
    %73 = arith.select %71, %69, %72 : vector<3x256xi1>, vector<3x256xf32>
    %74 = arith.truncf %73 : vector<3x256xf32> to vector<3x256xbf16>
    %cst_29 = arith.constant dense<0.000000e+00> : vector<16x256xf32>
    %75 = tpu.matmul %68, %74, %cst_29 {dimension_numbers = #tpu.dot_dimension_numbers<[1], [0], [0], [1], [0, 0, 1, 1], [], []>} : vector<16x3xbf16>, vector<3x256xbf16>, vector<16x256xf32> -> vector<16x256xf32>
    %76 = arith.addf %66, %75 : vector<16x256xf32>
    %c3 = arith.constant 3 : index
    %c0_30 = arith.constant 0 : index
    %c0_31 = arith.constant 0 : index
    %77 = vector.load %arg2[%c3, %c0_30, %c0_31] : memref<9x16x3xbf16, #tpu.memory_space<vmem>>, vector<1x16x3xbf16>
    %78 = vector.shape_cast %77 : vector<1x16x3xbf16> to vector<16x3xbf16>
    %c1_i32_32 = arith.constant 1 : i32
    %79 = tpu.dynamic_rotate %1 by %c1_i32_32 dim 1 : vector<3x256xf32>, i32 -> vector<3x256xf32>
    %cst_33 = arith.constant 0.000000e+00 : f32
    %80 = vector.shape_cast %32 : vector<1x256xi1> to vector<1x256xi1>
    %81 = vector.broadcast %80 : vector<1x256xi1> to vector<3x256xi1>
    %82 = vector.broadcast %cst_33 : f32 to vector<3x256xf32>
    %83 = arith.select %81, %79, %82 : vector<3x256xi1>, vector<3x256xf32>
    %84 = arith.truncf %83 : vector<3x256xf32> to vector<3x256xbf16>
    %cst_34 = arith.constant dense<0.000000e+00> : vector<16x256xf32>
    %85 = tpu.matmul %78, %84, %cst_34 {dimension_numbers = #tpu.dot_dimension_numbers<[1], [0], [0], [1], [0, 0, 1, 1], [], []>} : vector<16x3xbf16>, vector<3x256xbf16>, vector<16x256xf32> -> vector<16x256xf32>
    %86 = arith.addf %76, %85 : vector<16x256xf32>
    %c4 = arith.constant 4 : index
    %c0_35 = arith.constant 0 : index
    %c0_36 = arith.constant 0 : index
    %87 = vector.load %arg2[%c4, %c0_35, %c0_36] : memref<9x16x3xbf16, #tpu.memory_space<vmem>>, vector<1x16x3xbf16>
    %88 = vector.shape_cast %87 : vector<1x16x3xbf16> to vector<16x3xbf16>
    %89 = arith.truncf %1 : vector<3x256xf32> to vector<3x256xbf16>
    %cst_37 = arith.constant dense<0.000000e+00> : vector<16x256xf32>
    %90 = tpu.matmul %88, %89, %cst_37 {dimension_numbers = #tpu.dot_dimension_numbers<[1], [0], [0], [1], [0, 0, 1, 1], [], []>} : vector<16x3xbf16>, vector<3x256xbf16>, vector<16x256xf32> -> vector<16x256xf32>
    %91 = arith.addf %86, %90 : vector<16x256xf32>
    %c5 = arith.constant 5 : index
    %c0_38 = arith.constant 0 : index
    %c0_39 = arith.constant 0 : index
    %92 = vector.load %arg2[%c5, %c0_38, %c0_39] : memref<9x16x3xbf16, #tpu.memory_space<vmem>>, vector<1x16x3xbf16>
    %93 = vector.shape_cast %92 : vector<1x16x3xbf16> to vector<16x3xbf16>
    %c255_i32 = arith.constant 255 : i32
    %94 = tpu.dynamic_rotate %1 by %c255_i32 dim 1 : vector<3x256xf32>, i32 -> vector<3x256xf32>
    %cst_40 = arith.constant 0.000000e+00 : f32
    %95 = vector.shape_cast %34 : vector<1x256xi1> to vector<1x256xi1>
    %96 = vector.broadcast %95 : vector<1x256xi1> to vector<3x256xi1>
    %97 = vector.broadcast %cst_40 : f32 to vector<3x256xf32>
    %98 = arith.select %96, %94, %97 : vector<3x256xi1>, vector<3x256xf32>
    %99 = arith.truncf %98 : vector<3x256xf32> to vector<3x256xbf16>
    %cst_41 = arith.constant dense<0.000000e+00> : vector<16x256xf32>
    %100 = tpu.matmul %93, %99, %cst_41 {dimension_numbers = #tpu.dot_dimension_numbers<[1], [0], [0], [1], [0, 0, 1, 1], [], []>} : vector<16x3xbf16>, vector<3x256xbf16>, vector<16x256xf32> -> vector<16x256xf32>
    %101 = arith.addf %91, %100 : vector<16x256xf32>
    %c6 = arith.constant 6 : index
    %c0_42 = arith.constant 0 : index
    %c0_43 = arith.constant 0 : index
    %102 = vector.load %arg2[%c6, %c0_42, %c0_43] : memref<9x16x3xbf16, #tpu.memory_space<vmem>>, vector<1x16x3xbf16>
    %103 = vector.shape_cast %102 : vector<1x16x3xbf16> to vector<16x3xbf16>
    %c241_i32 = arith.constant 241 : i32
    %104 = tpu.dynamic_rotate %1 by %c241_i32 dim 1 : vector<3x256xf32>, i32 -> vector<3x256xf32>
    %cst_44 = arith.constant 0.000000e+00 : f32
    %105 = vector.shape_cast %39 : vector<1x256xi1> to vector<1x256xi1>
    %106 = vector.broadcast %105 : vector<1x256xi1> to vector<3x256xi1>
    %107 = vector.broadcast %cst_44 : f32 to vector<3x256xf32>
    %108 = arith.select %106, %104, %107 : vector<3x256xi1>, vector<3x256xf32>
    %109 = arith.truncf %108 : vector<3x256xf32> to vector<3x256xbf16>
    %cst_45 = arith.constant dense<0.000000e+00> : vector<16x256xf32>
    %110 = tpu.matmul %103, %109, %cst_45 {dimension_numbers = #tpu.dot_dimension_numbers<[1], [0], [0], [1], [0, 0, 1, 1], [], []>} : vector<16x3xbf16>, vector<3x256xbf16>, vector<16x256xf32> -> vector<16x256xf32>
    %111 = arith.addf %101, %110 : vector<16x256xf32>
    %c7 = arith.constant 7 : index
    %c0_46 = arith.constant 0 : index
    %c0_47 = arith.constant 0 : index
    %112 = vector.load %arg2[%c7, %c0_46, %c0_47] : memref<9x16x3xbf16, #tpu.memory_space<vmem>>, vector<1x16x3xbf16>
    %113 = vector.shape_cast %112 : vector<1x16x3xbf16> to vector<16x3xbf16>
    %c240_i32_48 = arith.constant 240 : i32
    %114 = tpu.dynamic_rotate %1 by %c240_i32_48 dim 1 : vector<3x256xf32>, i32 -> vector<3x256xf32>
    %cst_49 = arith.constant 0.000000e+00 : f32
    %115 = vector.shape_cast %41 : vector<1x256xi1> to vector<1x256xi1>
    %116 = vector.broadcast %115 : vector<1x256xi1> to vector<3x256xi1>
    %117 = vector.broadcast %cst_49 : f32 to vector<3x256xf32>
    %118 = arith.select %116, %114, %117 : vector<3x256xi1>, vector<3x256xf32>
    %119 = arith.truncf %118 : vector<3x256xf32> to vector<3x256xbf16>
    %cst_50 = arith.constant dense<0.000000e+00> : vector<16x256xf32>
    %120 = tpu.matmul %113, %119, %cst_50 {dimension_numbers = #tpu.dot_dimension_numbers<[1], [0], [0], [1], [0, 0, 1, 1], [], []>} : vector<16x3xbf16>, vector<3x256xbf16>, vector<16x256xf32> -> vector<16x256xf32>
    %121 = arith.addf %111, %120 : vector<16x256xf32>
    %c8 = arith.constant 8 : index
    %c0_51 = arith.constant 0 : index
    %c0_52 = arith.constant 0 : index
    %122 = vector.load %arg2[%c8, %c0_51, %c0_52] : memref<9x16x3xbf16, #tpu.memory_space<vmem>>, vector<1x16x3xbf16>
    %123 = vector.shape_cast %122 : vector<1x16x3xbf16> to vector<16x3xbf16>
    %c239_i32 = arith.constant 239 : i32
    %124 = tpu.dynamic_rotate %1 by %c239_i32 dim 1 : vector<3x256xf32>, i32 -> vector<3x256xf32>
    %cst_53 = arith.constant 0.000000e+00 : f32
    %125 = vector.shape_cast %46 : vector<1x256xi1> to vector<1x256xi1>
    %126 = vector.broadcast %125 : vector<1x256xi1> to vector<3x256xi1>
    %127 = vector.broadcast %cst_53 : f32 to vector<3x256xf32>
    %128 = arith.select %126, %124, %127 : vector<3x256xi1>, vector<3x256xf32>
    %129 = arith.truncf %128 : vector<3x256xf32> to vector<3x256xbf16>
    %cst_54 = arith.constant dense<0.000000e+00> : vector<16x256xf32>
    %130 = tpu.matmul %123, %129, %cst_54 {dimension_numbers = #tpu.dot_dimension_numbers<[1], [0], [0], [1], [0, 0, 1, 1], [], []>} : vector<16x3xbf16>, vector<3x256xbf16>, vector<16x256xf32> -> vector<16x256xf32>
    %131 = arith.addf %121, %130 : vector<16x256xf32>
    %132 = vector.broadcast %47 : vector<16x1xf32> to vector<16x256xf32>
    %133 = arith.addf %131, %132 : vector<16x256xf32>
    %c0_55 = arith.constant 0 : index
    %c1_56 = arith.constant 1 : index
    %134 = vector.load %arg7[%c0_55, %c1_56] : memref<16x11xf32, #tpu.memory_space<vmem>>, vector<16x1xf32>
    %c0_57 = arith.constant 0 : index
    %c2_58 = arith.constant 2 : index
    %135 = vector.load %arg7[%c0_57, %c2_58] : memref<16x11xf32, #tpu.memory_space<vmem>>, vector<16x1xf32>
    %cst_59 = arith.constant dense<0.000000e+00> : vector<256xf32>
    %136 = vector.multi_reduction <add>, %133, %cst_59 [0] : vector<16x256xf32> to vector<256xf32>
    %137 = vector.shape_cast %136 : vector<256xf32> to vector<1x256xf32>
    %cst_60 = arith.constant 1.600000e+01 : f32
    %138 = vector.broadcast %cst_60 : f32 to vector<1x256xf32>
    %139 = arith.divf %137, %138 : vector<1x256xf32>
    %140 = vector.broadcast %139 : vector<1x256xf32> to vector<16x256xf32>
    %141 = arith.subf %133, %140 : vector<16x256xf32>
    %142 = arith.mulf %141, %141 : vector<16x256xf32>
    %cst_61 = arith.constant dense<0.000000e+00> : vector<256xf32>
    %143 = vector.multi_reduction <add>, %142, %cst_61 [0] : vector<16x256xf32> to vector<256xf32>
    %144 = vector.shape_cast %143 : vector<256xf32> to vector<1x256xf32>
    %cst_62 = arith.constant 1.600000e+01 : f32
    %145 = vector.broadcast %cst_62 : f32 to vector<1x256xf32>
    %146 = arith.divf %144, %145 : vector<1x256xf32>
    %147 = vector.broadcast %139 : vector<1x256xf32> to vector<16x256xf32>
    %148 = arith.subf %133, %147 : vector<16x256xf32>
    %cst_63 = arith.constant 9.99999997E-7 : f32
    %149 = vector.broadcast %cst_63 : f32 to vector<1x256xf32>
    %150 = arith.addf %146, %149 : vector<1x256xf32>
    %151 = math.rsqrt %150 : vector<1x256xf32>
    %152 = vector.broadcast %151 : vector<1x256xf32> to vector<16x256xf32>
    %153 = arith.mulf %148, %152 : vector<16x256xf32>
    %154 = vector.broadcast %134 : vector<16x1xf32> to vector<16x256xf32>
    %155 = arith.mulf %153, %154 : vector<16x256xf32>
    %156 = vector.broadcast %135 : vector<16x1xf32> to vector<16x256xf32>
    %157 = arith.addf %155, %156 : vector<16x256xf32>
    %c0_64 = arith.constant 0 : index
    %c0_65 = arith.constant 0 : index
    %c0_66 = arith.constant 0 : index
    %158 = vector.load %arg6[%c0_64, %c0_65, %c0_66] : memref<2x32x16xbf16, #tpu.memory_space<vmem>>, vector<1x32x16xbf16>
    %159 = vector.shape_cast %158 : vector<1x32x16xbf16> to vector<32x16xbf16>
    %160 = arith.truncf %157 : vector<16x256xf32> to vector<16x256xbf16>
    %cst_67 = arith.constant dense<0.000000e+00> : vector<32x256xf32>
    %161 = tpu.matmul %159, %160, %cst_67 {dimension_numbers = #tpu.dot_dimension_numbers<[1], [0], [0], [1], [0, 0, 1, 1], [], []>} : vector<32x16xbf16>, vector<16x256xbf16>, vector<32x256xf32> -> vector<32x256xf32>
    %c0_68 = arith.constant 0 : index
    %c0_69 = arith.constant 0 : index
    %162 = vector.load %arg8[%c0_68, %c0_69] : memref<32x3xf32, #tpu.memory_space<vmem>>, vector<32x1xf32>
    %163 = vector.broadcast %162 : vector<32x1xf32> to vector<32x256xf32>
    %164 = arith.addf %161, %163 : vector<32x256xf32>
    %c0_70 = arith.constant 0 : index
    %c1_71 = arith.constant 1 : index
    %165 = vector.load %arg8[%c0_70, %c1_71] : memref<32x3xf32, #tpu.memory_space<vmem>>, vector<32x1xf32>
    %c0_72 = arith.constant 0 : index
    %c4_73 = arith.constant 4 : index
    %166 = vector.load %arg4[%c0_72, %c4_73] : memref<32x9xf32, #tpu.memory_space<vmem>>, vector<32x1xf32>
    %167 = vector.broadcast %166 : vector<32x1xf32> to vector<32x256xf32>
    %168 = arith.mulf %164, %167 : vector<32x256xf32>
    %c17_i32_74 = arith.constant 17 : i32
    %169 = tpu.dynamic_rotate %164 by %c17_i32_74 dim 1 : vector<32x256xf32>, i32 -> vector<32x256xf32>
    %cst_75 = arith.constant 0.000000e+00 : f32
    %170 = vector.shape_cast %23 : vector<1x256xi1> to vector<1x256xi1>
    %171 = vector.broadcast %170 : vector<1x256xi1> to vector<32x256xi1>
    %172 = vector.broadcast %cst_75 : f32 to vector<32x256xf32>
    %173 = arith.select %171, %169, %172 : vector<32x256xi1>, vector<32x256xf32>
    %c0_76 = arith.constant 0 : index
    %c0_77 = arith.constant 0 : index
    %174 = vector.load %arg4[%c0_76, %c0_77] : memref<32x9xf32, #tpu.memory_space<vmem>>, vector<32x1xf32>
    %175 = vector.broadcast %174 : vector<32x1xf32> to vector<32x256xf32>
    %176 = arith.mulf %173, %175 : vector<32x256xf32>
    %177 = arith.addf %168, %176 : vector<32x256xf32>
    %c16_i32_78 = arith.constant 16 : i32
    %178 = tpu.dynamic_rotate %164 by %c16_i32_78 dim 1 : vector<32x256xf32>, i32 -> vector<32x256xf32>
    %cst_79 = arith.constant 0.000000e+00 : f32
    %179 = vector.shape_cast %25 : vector<1x256xi1> to vector<1x256xi1>
    %180 = vector.broadcast %179 : vector<1x256xi1> to vector<32x256xi1>
    %181 = vector.broadcast %cst_79 : f32 to vector<32x256xf32>
    %182 = arith.select %180, %178, %181 : vector<32x256xi1>, vector<32x256xf32>
    %c0_80 = arith.constant 0 : index
    %c1_81 = arith.constant 1 : index
    %183 = vector.load %arg4[%c0_80, %c1_81] : memref<32x9xf32, #tpu.memory_space<vmem>>, vector<32x1xf32>
    %184 = vector.broadcast %183 : vector<32x1xf32> to vector<32x256xf32>
    %185 = arith.mulf %182, %184 : vector<32x256xf32>
    %186 = arith.addf %177, %185 : vector<32x256xf32>
    %c15_i32_82 = arith.constant 15 : i32
    %187 = tpu.dynamic_rotate %164 by %c15_i32_82 dim 1 : vector<32x256xf32>, i32 -> vector<32x256xf32>
    %cst_83 = arith.constant 0.000000e+00 : f32
    %188 = vector.shape_cast %30 : vector<1x256xi1> to vector<1x256xi1>
    %189 = vector.broadcast %188 : vector<1x256xi1> to vector<32x256xi1>
    %190 = vector.broadcast %cst_83 : f32 to vector<32x256xf32>
    %191 = arith.select %189, %187, %190 : vector<32x256xi1>, vector<32x256xf32>
    %c0_84 = arith.constant 0 : index
    %c2_85 = arith.constant 2 : index
    %192 = vector.load %arg4[%c0_84, %c2_85] : memref<32x9xf32, #tpu.memory_space<vmem>>, vector<32x1xf32>
    %193 = vector.broadcast %192 : vector<32x1xf32> to vector<32x256xf32>
    %194 = arith.mulf %191, %193 : vector<32x256xf32>
    %195 = arith.addf %186, %194 : vector<32x256xf32>
    %c1_i32_86 = arith.constant 1 : i32
    %196 = tpu.dynamic_rotate %164 by %c1_i32_86 dim 1 : vector<32x256xf32>, i32 -> vector<32x256xf32>
    %cst_87 = arith.constant 0.000000e+00 : f32
    %197 = vector.shape_cast %32 : vector<1x256xi1> to vector<1x256xi1>
    %198 = vector.broadcast %197 : vector<1x256xi1> to vector<32x256xi1>
    %199 = vector.broadcast %cst_87 : f32 to vector<32x256xf32>
    %200 = arith.select %198, %196, %199 : vector<32x256xi1>, vector<32x256xf32>
    %c0_88 = arith.constant 0 : index
    %c3_89 = arith.constant 3 : index
    %201 = vector.load %arg4[%c0_88, %c3_89] : memref<32x9xf32, #tpu.memory_space<vmem>>, vector<32x1xf32>
    %202 = vector.broadcast %201 : vector<32x1xf32> to vector<32x256xf32>
    %203 = arith.mulf %200, %202 : vector<32x256xf32>
    %204 = arith.addf %195, %203 : vector<32x256xf32>
    %c255_i32_90 = arith.constant 255 : i32
    %205 = tpu.dynamic_rotate %164 by %c255_i32_90 dim 1 : vector<32x256xf32>, i32 -> vector<32x256xf32>
    %cst_91 = arith.constant 0.000000e+00 : f32
    %206 = vector.shape_cast %34 : vector<1x256xi1> to vector<1x256xi1>
    %207 = vector.broadcast %206 : vector<1x256xi1> to vector<32x256xi1>
    %208 = vector.broadcast %cst_91 : f32 to vector<32x256xf32>
    %209 = arith.select %207, %205, %208 : vector<32x256xi1>, vector<32x256xf32>
    %c0_92 = arith.constant 0 : index
    %c5_93 = arith.constant 5 : index
    %210 = vector.load %arg4[%c0_92, %c5_93] : memref<32x9xf32, #tpu.memory_space<vmem>>, vector<32x1xf32>
    %211 = vector.broadcast %210 : vector<32x1xf32> to vector<32x256xf32>
    %212 = arith.mulf %209, %211 : vector<32x256xf32>
    %213 = arith.addf %204, %212 : vector<32x256xf32>
    %c241_i32_94 = arith.constant 241 : i32
    %214 = tpu.dynamic_rotate %164 by %c241_i32_94 dim 1 : vector<32x256xf32>, i32 -> vector<32x256xf32>
    %cst_95 = arith.constant 0.000000e+00 : f32
    %215 = vector.shape_cast %39 : vector<1x256xi1> to vector<1x256xi1>
    %216 = vector.broadcast %215 : vector<1x256xi1> to vector<32x256xi1>
    %217 = vector.broadcast %cst_95 : f32 to vector<32x256xf32>
    %218 = arith.select %216, %214, %217 : vector<32x256xi1>, vector<32x256xf32>
    %c0_96 = arith.constant 0 : index
    %c6_97 = arith.constant 6 : index
    %219 = vector.load %arg4[%c0_96, %c6_97] : memref<32x9xf32, #tpu.memory_space<vmem>>, vector<32x1xf32>
    %220 = vector.broadcast %219 : vector<32x1xf32> to vector<32x256xf32>
    %221 = arith.mulf %218, %220 : vector<32x256xf32>
    %222 = arith.addf %213, %221 : vector<32x256xf32>
    %c240_i32_98 = arith.constant 240 : i32
    %223 = tpu.dynamic_rotate %164 by %c240_i32_98 dim 1 : vector<32x256xf32>, i32 -> vector<32x256xf32>
    %cst_99 = arith.constant 0.000000e+00 : f32
    %224 = vector.shape_cast %41 : vector<1x256xi1> to vector<1x256xi1>
    %225 = vector.broadcast %224 : vector<1x256xi1> to vector<32x256xi1>
    %226 = vector.broadcast %cst_99 : f32 to vector<32x256xf32>
    %227 = arith.select %225, %223, %226 : vector<32x256xi1>, vector<32x256xf32>
    %c0_100 = arith.constant 0 : index
    %c7_101 = arith.constant 7 : index
    %228 = vector.load %arg4[%c0_100, %c7_101] : memref<32x9xf32, #tpu.memory_space<vmem>>, vector<32x1xf32>
    %229 = vector.broadcast %228 : vector<32x1xf32> to vector<32x256xf32>
    %230 = arith.mulf %227, %229 : vector<32x256xf32>
    %231 = arith.addf %222, %230 : vector<32x256xf32>
    %c239_i32_102 = arith.constant 239 : i32
    %232 = tpu.dynamic_rotate %164 by %c239_i32_102 dim 1 : vector<32x256xf32>, i32 -> vector<32x256xf32>
    %cst_103 = arith.constant 0.000000e+00 : f32
    %233 = vector.shape_cast %46 : vector<1x256xi1> to vector<1x256xi1>
    %234 = vector.broadcast %233 : vector<1x256xi1> to vector<32x256xi1>
    %235 = vector.broadcast %cst_103 : f32 to vector<32x256xf32>
    %236 = arith.select %234, %232, %235 : vector<32x256xi1>, vector<32x256xf32>
    %c0_104 = arith.constant 0 : index
    %c8_105 = arith.constant 8 : index
    %237 = vector.load %arg4[%c0_104, %c8_105] : memref<32x9xf32, #tpu.memory_space<vmem>>, vector<32x1xf32>
    %238 = vector.broadcast %237 : vector<32x1xf32> to vector<32x256xf32>
    %239 = arith.mulf %236, %238 : vector<32x256xf32>
    %240 = arith.addf %231, %239 : vector<32x256xf32>
    %241 = vector.broadcast %165 : vector<32x1xf32> to vector<32x256xf32>
    %242 = arith.addf %240, %241 : vector<32x256xf32>
    %243 = vector.extract_strided_slice %242 {offsets = [0, 0], sizes = [16, 256], strides = [1, 1]} : vector<32x256xf32> to vector<16x256xf32>
    %244 = vector.extract_strided_slice %242 {offsets = [16, 0], sizes = [16, 256], strides = [1, 1]} : vector<32x256xf32> to vector<16x256xf32>
    %245 = arith.mulf %243, %244 : vector<16x256xf32>
    %c0_106 = arith.constant 0 : index
    %c0_107 = arith.constant 0 : index
    %c0_108 = arith.constant 0 : index
    %246 = vector.load %arg5[%c0_106, %c0_107, %c0_108] : memref<3x16x16xbf16, #tpu.memory_space<vmem>>, vector<1x16x16xbf16>
    %247 = vector.shape_cast %246 : vector<1x16x16xbf16> to vector<16x16xbf16>
    %248 = arith.truncf %245 : vector<16x256xf32> to vector<16x256xbf16>
    %cst_109 = arith.constant dense<0.000000e+00> : vector<16x256xf32>
    %249 = tpu.matmul %247, %248, %cst_109 {dimension_numbers = #tpu.dot_dimension_numbers<[1], [0], [0], [1], [0, 0, 1, 1], [], []>} : vector<16x16xbf16>, vector<16x256xbf16>, vector<16x256xf32> -> vector<16x256xf32>
    %cst_110 = arith.constant dense<0.000000e+00> : vector<16xf32>
    %250 = vector.multi_reduction <add>, %249, %cst_110 [1] : vector<16x256xf32> to vector<16xf32>
    %251 = vector.shape_cast %250 : vector<16xf32> to vector<16x1xf32>
    %cst_111 = arith.constant 2.560000e+02 : f32
    %252 = vector.broadcast %cst_111 : f32 to vector<16x1xf32>
    %253 = arith.divf %251, %252 : vector<16x1xf32>
    %c0_112 = arith.constant 0 : index
    %c3_113 = arith.constant 3 : index
    %254 = vector.load %arg7[%c0_112, %c3_113] : memref<16x11xf32, #tpu.memory_space<vmem>>, vector<16x1xf32>
    %255 = arith.addf %253, %254 : vector<16x1xf32>
    %c1_114 = arith.constant 1 : index
    %c0_115 = arith.constant 0 : index
    %c0_116 = arith.constant 0 : index
    %256 = vector.load %arg5[%c1_114, %c0_115, %c0_116] : memref<3x16x16xbf16, #tpu.memory_space<vmem>>, vector<1x16x16xbf16>
    %257 = vector.shape_cast %256 : vector<1x16x16xbf16> to vector<16x16xbf16>
    %258 = vector.broadcast %255 : vector<16x1xf32> to vector<16x256xf32>
    %259 = arith.mulf %245, %258 : vector<16x256xf32>
    %260 = arith.truncf %259 : vector<16x256xf32> to vector<16x256xbf16>
    %cst_117 = arith.constant dense<0.000000e+00> : vector<16x256xf32>
    %261 = tpu.matmul %257, %260, %cst_117 {dimension_numbers = #tpu.dot_dimension_numbers<[1], [0], [0], [1], [0, 0, 1, 1], [], []>} : vector<16x16xbf16>, vector<16x256xbf16>, vector<16x256xf32> -> vector<16x256xf32>
    %c0_118 = arith.constant 0 : index
    %c4_119 = arith.constant 4 : index
    %262 = vector.load %arg7[%c0_118, %c4_119] : memref<16x11xf32, #tpu.memory_space<vmem>>, vector<16x1xf32>
    %263 = vector.broadcast %262 : vector<16x1xf32> to vector<16x256xf32>
    %264 = arith.addf %261, %263 : vector<16x256xf32>
    %c0_120 = arith.constant 0 : index
    %c5_121 = arith.constant 5 : index
    %265 = vector.load %arg7[%c0_120, %c5_121] : memref<16x11xf32, #tpu.memory_space<vmem>>, vector<16x1xf32>
    %266 = vector.broadcast %265 : vector<16x1xf32> to vector<16x256xf32>
    %267 = arith.mulf %264, %266 : vector<16x256xf32>
    %268 = arith.addf %133, %267 : vector<16x256xf32>
    %c0_122 = arith.constant 0 : index
    %c6_123 = arith.constant 6 : index
    %269 = vector.load %arg7[%c0_122, %c6_123] : memref<16x11xf32, #tpu.memory_space<vmem>>, vector<16x1xf32>
    %c0_124 = arith.constant 0 : index
    %c7_125 = arith.constant 7 : index
    %270 = vector.load %arg7[%c0_124, %c7_125] : memref<16x11xf32, #tpu.memory_space<vmem>>, vector<16x1xf32>
    %cst_126 = arith.constant dense<0.000000e+00> : vector<256xf32>
    %271 = vector.multi_reduction <add>, %268, %cst_126 [0] : vector<16x256xf32> to vector<256xf32>
    %272 = vector.shape_cast %271 : vector<256xf32> to vector<1x256xf32>
    %cst_127 = arith.constant 1.600000e+01 : f32
    %273 = vector.broadcast %cst_127 : f32 to vector<1x256xf32>
    %274 = arith.divf %272, %273 : vector<1x256xf32>
    %275 = vector.broadcast %274 : vector<1x256xf32> to vector<16x256xf32>
    %276 = arith.subf %268, %275 : vector<16x256xf32>
    %277 = arith.mulf %276, %276 : vector<16x256xf32>
    %cst_128 = arith.constant dense<0.000000e+00> : vector<256xf32>
    %278 = vector.multi_reduction <add>, %277, %cst_128 [0] : vector<16x256xf32> to vector<256xf32>
    %279 = vector.shape_cast %278 : vector<256xf32> to vector<1x256xf32>
    %cst_129 = arith.constant 1.600000e+01 : f32
    %280 = vector.broadcast %cst_129 : f32 to vector<1x256xf32>
    %281 = arith.divf %279, %280 : vector<1x256xf32>
    %282 = vector.broadcast %274 : vector<1x256xf32> to vector<16x256xf32>
    %283 = arith.subf %268, %282 : vector<16x256xf32>
    %cst_130 = arith.constant 9.99999997E-7 : f32
    %284 = vector.broadcast %cst_130 : f32 to vector<1x256xf32>
    %285 = arith.addf %281, %284 : vector<1x256xf32>
    %286 = math.rsqrt %285 : vector<1x256xf32>
    %287 = vector.broadcast %286 : vector<1x256xf32> to vector<16x256xf32>
    %288 = arith.mulf %283, %287 : vector<16x256xf32>
    %289 = vector.broadcast %269 : vector<16x1xf32> to vector<16x256xf32>
    %290 = arith.mulf %288, %289 : vector<16x256xf32>
    %291 = vector.broadcast %270 : vector<16x1xf32> to vector<16x256xf32>
    %292 = arith.addf %290, %291 : vector<16x256xf32>
    %c1_131 = arith.constant 1 : index
    %c0_132 = arith.constant 0 : index
    %c0_133 = arith.constant 0 : index
    %293 = vector.load %arg6[%c1_131, %c0_132, %c0_133] : memref<2x32x16xbf16, #tpu.memory_space<vmem>>, vector<1x32x16xbf16>
    %294 = vector.shape_cast %293 : vector<1x32x16xbf16> to vector<32x16xbf16>
    %295 = arith.truncf %292 : vector<16x256xf32> to vector<16x256xbf16>
    %cst_134 = arith.constant dense<0.000000e+00> : vector<32x256xf32>
    %296 = tpu.matmul %294, %295, %cst_134 {dimension_numbers = #tpu.dot_dimension_numbers<[1], [0], [0], [1], [0, 0, 1, 1], [], []>} : vector<32x16xbf16>, vector<16x256xbf16>, vector<32x256xf32> -> vector<32x256xf32>
    %c0_135 = arith.constant 0 : index
    %c2_136 = arith.constant 2 : index
    %297 = vector.load %arg8[%c0_135, %c2_136] : memref<32x3xf32, #tpu.memory_space<vmem>>, vector<32x1xf32>
    %298 = vector.broadcast %297 : vector<32x1xf32> to vector<32x256xf32>
    %299 = arith.addf %296, %298 : vector<32x256xf32>
    %300 = vector.extract_strided_slice %299 {offsets = [0, 0], sizes = [16, 256], strides = [1, 1]} : vector<32x256xf32> to vector<16x256xf32>
    %301 = vector.extract_strided_slice %299 {offsets = [16, 0], sizes = [16, 256], strides = [1, 1]} : vector<32x256xf32> to vector<16x256xf32>
    %302 = arith.mulf %300, %301 : vector<16x256xf32>
    %c2_137 = arith.constant 2 : index
    %c0_138 = arith.constant 0 : index
    %c0_139 = arith.constant 0 : index
    %303 = vector.load %arg5[%c2_137, %c0_138, %c0_139] : memref<3x16x16xbf16, #tpu.memory_space<vmem>>, vector<1x16x16xbf16>
    %304 = vector.shape_cast %303 : vector<1x16x16xbf16> to vector<16x16xbf16>
    %305 = arith.truncf %302 : vector<16x256xf32> to vector<16x256xbf16>
    %cst_140 = arith.constant dense<0.000000e+00> : vector<16x256xf32>
    %306 = tpu.matmul %304, %305, %cst_140 {dimension_numbers = #tpu.dot_dimension_numbers<[1], [0], [0], [1], [0, 0, 1, 1], [], []>} : vector<16x16xbf16>, vector<16x256xbf16>, vector<16x256xf32> -> vector<16x256xf32>
    %c0_141 = arith.constant 0 : index
    %c8_142 = arith.constant 8 : index
    %307 = vector.load %arg7[%c0_141, %c8_142] : memref<16x11xf32, #tpu.memory_space<vmem>>, vector<16x1xf32>
    %308 = vector.broadcast %307 : vector<16x1xf32> to vector<16x256xf32>
    %309 = arith.addf %306, %308 : vector<16x256xf32>
    %c0_143 = arith.constant 0 : index
    %c9 = arith.constant 9 : index
    %310 = vector.load %arg7[%c0_143, %c9] : memref<16x11xf32, #tpu.memory_space<vmem>>, vector<16x1xf32>
    %311 = vector.broadcast %310 : vector<16x1xf32> to vector<16x256xf32>
    %312 = arith.mulf %309, %311 : vector<16x256xf32>
    %313 = arith.addf %268, %312 : vector<16x256xf32>
    %c0_144 = arith.constant 0 : index
    %c10 = arith.constant 10 : index
    %314 = vector.load %arg7[%c0_144, %c10] : memref<16x11xf32, #tpu.memory_space<vmem>>, vector<3x1xf32>
    %c0_145 = arith.constant 0 : index
    %c0_146 = arith.constant 0 : index
    %c0_147 = arith.constant 0 : index
    %315 = vector.load %arg3[%c0_145, %c0_146, %c0_147] : memref<9x3x16xbf16, #tpu.memory_space<vmem>>, vector<1x3x16xbf16>
    %316 = vector.shape_cast %315 : vector<1x3x16xbf16> to vector<3x16xbf16>
    %c17_i32_148 = arith.constant 17 : i32
    %317 = tpu.dynamic_rotate %313 by %c17_i32_148 dim 1 : vector<16x256xf32>, i32 -> vector<16x256xf32>
    %cst_149 = arith.constant 0.000000e+00 : f32
    %318 = vector.shape_cast %23 : vector<1x256xi1> to vector<1x256xi1>
    %319 = vector.broadcast %318 : vector<1x256xi1> to vector<16x256xi1>
    %320 = vector.broadcast %cst_149 : f32 to vector<16x256xf32>
    %321 = arith.select %319, %317, %320 : vector<16x256xi1>, vector<16x256xf32>
    %322 = arith.truncf %321 : vector<16x256xf32> to vector<16x256xbf16>
    %cst_150 = arith.constant dense<0.000000e+00> : vector<3x256xf32>
    %323 = tpu.matmul %316, %322, %cst_150 {dimension_numbers = #tpu.dot_dimension_numbers<[1], [0], [0], [1], [0, 0, 1, 1], [], []>} : vector<3x16xbf16>, vector<16x256xbf16>, vector<3x256xf32> -> vector<3x256xf32>
    %c1_151 = arith.constant 1 : index
    %c0_152 = arith.constant 0 : index
    %c0_153 = arith.constant 0 : index
    %324 = vector.load %arg3[%c1_151, %c0_152, %c0_153] : memref<9x3x16xbf16, #tpu.memory_space<vmem>>, vector<1x3x16xbf16>
    %325 = vector.shape_cast %324 : vector<1x3x16xbf16> to vector<3x16xbf16>
    %c16_i32_154 = arith.constant 16 : i32
    %326 = tpu.dynamic_rotate %313 by %c16_i32_154 dim 1 : vector<16x256xf32>, i32 -> vector<16x256xf32>
    %cst_155 = arith.constant 0.000000e+00 : f32
    %327 = vector.shape_cast %25 : vector<1x256xi1> to vector<1x256xi1>
    %328 = vector.broadcast %327 : vector<1x256xi1> to vector<16x256xi1>
    %329 = vector.broadcast %cst_155 : f32 to vector<16x256xf32>
    %330 = arith.select %328, %326, %329 : vector<16x256xi1>, vector<16x256xf32>
    %331 = arith.truncf %330 : vector<16x256xf32> to vector<16x256xbf16>
    %cst_156 = arith.constant dense<0.000000e+00> : vector<3x256xf32>
    %332 = tpu.matmul %325, %331, %cst_156 {dimension_numbers = #tpu.dot_dimension_numbers<[1], [0], [0], [1], [0, 0, 1, 1], [], []>} : vector<3x16xbf16>, vector<16x256xbf16>, vector<3x256xf32> -> vector<3x256xf32>
    %333 = arith.addf %323, %332 : vector<3x256xf32>
    %c2_157 = arith.constant 2 : index
    %c0_158 = arith.constant 0 : index
    %c0_159 = arith.constant 0 : index
    %334 = vector.load %arg3[%c2_157, %c0_158, %c0_159] : memref<9x3x16xbf16, #tpu.memory_space<vmem>>, vector<1x3x16xbf16>
    %335 = vector.shape_cast %334 : vector<1x3x16xbf16> to vector<3x16xbf16>
    %c15_i32_160 = arith.constant 15 : i32
    %336 = tpu.dynamic_rotate %313 by %c15_i32_160 dim 1 : vector<16x256xf32>, i32 -> vector<16x256xf32>
    %cst_161 = arith.constant 0.000000e+00 : f32
    %337 = vector.shape_cast %30 : vector<1x256xi1> to vector<1x256xi1>
    %338 = vector.broadcast %337 : vector<1x256xi1> to vector<16x256xi1>
    %339 = vector.broadcast %cst_161 : f32 to vector<16x256xf32>
    %340 = arith.select %338, %336, %339 : vector<16x256xi1>, vector<16x256xf32>
    %341 = arith.truncf %340 : vector<16x256xf32> to vector<16x256xbf16>
    %cst_162 = arith.constant dense<0.000000e+00> : vector<3x256xf32>
    %342 = tpu.matmul %335, %341, %cst_162 {dimension_numbers = #tpu.dot_dimension_numbers<[1], [0], [0], [1], [0, 0, 1, 1], [], []>} : vector<3x16xbf16>, vector<16x256xbf16>, vector<3x256xf32> -> vector<3x256xf32>
    %343 = arith.addf %333, %342 : vector<3x256xf32>
    %c3_163 = arith.constant 3 : index
    %c0_164 = arith.constant 0 : index
    %c0_165 = arith.constant 0 : index
    %344 = vector.load %arg3[%c3_163, %c0_164, %c0_165] : memref<9x3x16xbf16, #tpu.memory_space<vmem>>, vector<1x3x16xbf16>
    %345 = vector.shape_cast %344 : vector<1x3x16xbf16> to vector<3x16xbf16>
    %c1_i32_166 = arith.constant 1 : i32
    %346 = tpu.dynamic_rotate %313 by %c1_i32_166 dim 1 : vector<16x256xf32>, i32 -> vector<16x256xf32>
    %cst_167 = arith.constant 0.000000e+00 : f32
    %347 = vector.shape_cast %32 : vector<1x256xi1> to vector<1x256xi1>
    %348 = vector.broadcast %347 : vector<1x256xi1> to vector<16x256xi1>
    %349 = vector.broadcast %cst_167 : f32 to vector<16x256xf32>
    %350 = arith.select %348, %346, %349 : vector<16x256xi1>, vector<16x256xf32>
    %351 = arith.truncf %350 : vector<16x256xf32> to vector<16x256xbf16>
    %cst_168 = arith.constant dense<0.000000e+00> : vector<3x256xf32>
    %352 = tpu.matmul %345, %351, %cst_168 {dimension_numbers = #tpu.dot_dimension_numbers<[1], [0], [0], [1], [0, 0, 1, 1], [], []>} : vector<3x16xbf16>, vector<16x256xbf16>, vector<3x256xf32> -> vector<3x256xf32>
    %353 = arith.addf %343, %352 : vector<3x256xf32>
    %c4_169 = arith.constant 4 : index
    %c0_170 = arith.constant 0 : index
    %c0_171 = arith.constant 0 : index
    %354 = vector.load %arg3[%c4_169, %c0_170, %c0_171] : memref<9x3x16xbf16, #tpu.memory_space<vmem>>, vector<1x3x16xbf16>
    %355 = vector.shape_cast %354 : vector<1x3x16xbf16> to vector<3x16xbf16>
    %356 = arith.truncf %313 : vector<16x256xf32> to vector<16x256xbf16>
    %cst_172 = arith.constant dense<0.000000e+00> : vector<3x256xf32>
    %357 = tpu.matmul %355, %356, %cst_172 {dimension_numbers = #tpu.dot_dimension_numbers<[1], [0], [0], [1], [0, 0, 1, 1], [], []>} : vector<3x16xbf16>, vector<16x256xbf16>, vector<3x256xf32> -> vector<3x256xf32>
    %358 = arith.addf %353, %357 : vector<3x256xf32>
    %c5_173 = arith.constant 5 : index
    %c0_174 = arith.constant 0 : index
    %c0_175 = arith.constant 0 : index
    %359 = vector.load %arg3[%c5_173, %c0_174, %c0_175] : memref<9x3x16xbf16, #tpu.memory_space<vmem>>, vector<1x3x16xbf16>
    %360 = vector.shape_cast %359 : vector<1x3x16xbf16> to vector<3x16xbf16>
    %c255_i32_176 = arith.constant 255 : i32
    %361 = tpu.dynamic_rotate %313 by %c255_i32_176 dim 1 : vector<16x256xf32>, i32 -> vector<16x256xf32>
    %cst_177 = arith.constant 0.000000e+00 : f32
    %362 = vector.shape_cast %34 : vector<1x256xi1> to vector<1x256xi1>
    %363 = vector.broadcast %362 : vector<1x256xi1> to vector<16x256xi1>
    %364 = vector.broadcast %cst_177 : f32 to vector<16x256xf32>
    %365 = arith.select %363, %361, %364 : vector<16x256xi1>, vector<16x256xf32>
    %366 = arith.truncf %365 : vector<16x256xf32> to vector<16x256xbf16>
    %cst_178 = arith.constant dense<0.000000e+00> : vector<3x256xf32>
    %367 = tpu.matmul %360, %366, %cst_178 {dimension_numbers = #tpu.dot_dimension_numbers<[1], [0], [0], [1], [0, 0, 1, 1], [], []>} : vector<3x16xbf16>, vector<16x256xbf16>, vector<3x256xf32> -> vector<3x256xf32>
    %368 = arith.addf %358, %367 : vector<3x256xf32>
    %c6_179 = arith.constant 6 : index
    %c0_180 = arith.constant 0 : index
    %c0_181 = arith.constant 0 : index
    %369 = vector.load %arg3[%c6_179, %c0_180, %c0_181] : memref<9x3x16xbf16, #tpu.memory_space<vmem>>, vector<1x3x16xbf16>
    %370 = vector.shape_cast %369 : vector<1x3x16xbf16> to vector<3x16xbf16>
    %c241_i32_182 = arith.constant 241 : i32
    %371 = tpu.dynamic_rotate %313 by %c241_i32_182 dim 1 : vector<16x256xf32>, i32 -> vector<16x256xf32>
    %cst_183 = arith.constant 0.000000e+00 : f32
    %372 = vector.shape_cast %39 : vector<1x256xi1> to vector<1x256xi1>
    %373 = vector.broadcast %372 : vector<1x256xi1> to vector<16x256xi1>
    %374 = vector.broadcast %cst_183 : f32 to vector<16x256xf32>
    %375 = arith.select %373, %371, %374 : vector<16x256xi1>, vector<16x256xf32>
    %376 = arith.truncf %375 : vector<16x256xf32> to vector<16x256xbf16>
    %cst_184 = arith.constant dense<0.000000e+00> : vector<3x256xf32>
    %377 = tpu.matmul %370, %376, %cst_184 {dimension_numbers = #tpu.dot_dimension_numbers<[1], [0], [0], [1], [0, 0, 1, 1], [], []>} : vector<3x16xbf16>, vector<16x256xbf16>, vector<3x256xf32> -> vector<3x256xf32>
    %378 = arith.addf %368, %377 : vector<3x256xf32>
    %c7_185 = arith.constant 7 : index
    %c0_186 = arith.constant 0 : index
    %c0_187 = arith.constant 0 : index
    %379 = vector.load %arg3[%c7_185, %c0_186, %c0_187] : memref<9x3x16xbf16, #tpu.memory_space<vmem>>, vector<1x3x16xbf16>
    %380 = vector.shape_cast %379 : vector<1x3x16xbf16> to vector<3x16xbf16>
    %c240_i32_188 = arith.constant 240 : i32
    %381 = tpu.dynamic_rotate %313 by %c240_i32_188 dim 1 : vector<16x256xf32>, i32 -> vector<16x256xf32>
    %cst_189 = arith.constant 0.000000e+00 : f32
    %382 = vector.shape_cast %41 : vector<1x256xi1> to vector<1x256xi1>
    %383 = vector.broadcast %382 : vector<1x256xi1> to vector<16x256xi1>
    %384 = vector.broadcast %cst_189 : f32 to vector<16x256xf32>
    %385 = arith.select %383, %381, %384 : vector<16x256xi1>, vector<16x256xf32>
    %386 = arith.truncf %385 : vector<16x256xf32> to vector<16x256xbf16>
    %cst_190 = arith.constant dense<0.000000e+00> : vector<3x256xf32>
    %387 = tpu.matmul %380, %386, %cst_190 {dimension_numbers = #tpu.dot_dimension_numbers<[1], [0], [0], [1], [0, 0, 1, 1], [], []>} : vector<3x16xbf16>, vector<16x256xbf16>, vector<3x256xf32> -> vector<3x256xf32>
    %388 = arith.addf %378, %387 : vector<3x256xf32>
    %c8_191 = arith.constant 8 : index
    %c0_192 = arith.constant 0 : index
    %c0_193 = arith.constant 0 : index
    %389 = vector.load %arg3[%c8_191, %c0_192, %c0_193] : memref<9x3x16xbf16, #tpu.memory_space<vmem>>, vector<1x3x16xbf16>
    %390 = vector.shape_cast %389 : vector<1x3x16xbf16> to vector<3x16xbf16>
    %c239_i32_194 = arith.constant 239 : i32
    %391 = tpu.dynamic_rotate %313 by %c239_i32_194 dim 1 : vector<16x256xf32>, i32 -> vector<16x256xf32>
    %cst_195 = arith.constant 0.000000e+00 : f32
    %392 = vector.shape_cast %46 : vector<1x256xi1> to vector<1x256xi1>
    %393 = vector.broadcast %392 : vector<1x256xi1> to vector<16x256xi1>
    %394 = vector.broadcast %cst_195 : f32 to vector<16x256xf32>
    %395 = arith.select %393, %391, %394 : vector<16x256xi1>, vector<16x256xf32>
    %396 = arith.truncf %395 : vector<16x256xf32> to vector<16x256xbf16>
    %cst_196 = arith.constant dense<0.000000e+00> : vector<3x256xf32>
    %397 = tpu.matmul %390, %396, %cst_196 {dimension_numbers = #tpu.dot_dimension_numbers<[1], [0], [0], [1], [0, 0, 1, 1], [], []>} : vector<3x16xbf16>, vector<16x256xbf16>, vector<3x256xf32> -> vector<3x256xf32>
    %398 = arith.addf %388, %397 : vector<3x256xf32>
    %399 = vector.broadcast %314 : vector<3x1xf32> to vector<3x256xf32>
    %400 = arith.addf %398, %399 : vector<3x256xf32>
    %401 = arith.addf %400, %1 : vector<3x256xf32>
    %c0_197 = arith.constant 0 : index
    %c0_198 = arith.constant 0 : index
    %c0_199 = arith.constant 0 : index
    %402 = vector.load %arg9[%c0_197, %c0_198, %c0_199] : memref<1x3x256xf32, #tpu.memory_space<vmem>>, vector<1x3x256xf32>
    %403 = vector.shape_cast %402 : vector<1x3x256xf32> to vector<3x256xf32>
    %404 = vector.shape_cast %401 : vector<3x256xf32> to vector<1x3x256xf32>
    tpu.vector_store %arg9[%c0_197, %c0_198, %c0_199], %404 {strides = array<i32>} : memref<1x3x256xf32, #tpu.memory_space<vmem>>, vector<1x3x256xf32>,
    return
  }
  func.func @transform_0(%arg0: i32) -> (i32, i32, i32) {
    %c0_i32 = arith.constant 0 : i32
    %c0_i32_0 = arith.constant 0 : i32
    %c0_i32_1 = arith.constant 0 : i32
    return %arg0, %c0_i32, %c0_i32_0 : i32, i32, i32
  }
  func.func @transform_1(%arg0: i32) -> (i32, i32, i32) {
    %c0_i32 = arith.constant 0 : i32
    %c0_i32_0 = arith.constant 0 : i32
    %c0_i32_1 = arith.constant 0 : i32
    %c0_i32_2 = arith.constant 0 : i32
    return %c0_i32, %c0_i32_0, %c0_i32_1 : i32, i32, i32
  }
  func.func @transform_2(%arg0: i32) -> (i32, i32, i32) {
    %c0_i32 = arith.constant 0 : i32
    %c0_i32_0 = arith.constant 0 : i32
    %c0_i32_1 = arith.constant 0 : i32
    %c0_i32_2 = arith.constant 0 : i32
    return %c0_i32, %c0_i32_0, %c0_i32_1 : i32, i32, i32
  }
  func.func @transform_3(%arg0: i32) -> (i32, i32) {
    %c0_i32 = arith.constant 0 : i32
    %c0_i32_0 = arith.constant 0 : i32
    %c0_i32_1 = arith.constant 0 : i32
    return %c0_i32, %c0_i32_0 : i32, i32
  }
  func.func @transform_4(%arg0: i32) -> (i32, i32, i32) {
    %c0_i32 = arith.constant 0 : i32
    %c0_i32_0 = arith.constant 0 : i32
    %c0_i32_1 = arith.constant 0 : i32
    %c0_i32_2 = arith.constant 0 : i32
    return %c0_i32, %c0_i32_0, %c0_i32_1 : i32, i32, i32
  }
  func.func @transform_5(%arg0: i32) -> (i32, i32, i32) {
    %c0_i32 = arith.constant 0 : i32
    %c0_i32_0 = arith.constant 0 : i32
    %c0_i32_1 = arith.constant 0 : i32
    %c0_i32_2 = arith.constant 0 : i32
    return %c0_i32, %c0_i32_0, %c0_i32_1 : i32, i32, i32
  }
  func.func @transform_6(%arg0: i32) -> (i32, i32) {
    %c0_i32 = arith.constant 0 : i32
    %c0_i32_0 = arith.constant 0 : i32
    %c0_i32_1 = arith.constant 0 : i32
    return %c0_i32, %c0_i32_0 : i32, i32
  }
  func.func @transform_7(%arg0: i32) -> (i32, i32) {
    %c0_i32 = arith.constant 0 : i32
    %c0_i32_0 = arith.constant 0 : i32
    %c0_i32_1 = arith.constant 0 : i32
    return %c0_i32, %c0_i32_0 : i32, i32
  }
  func.func @transform_8(%arg0: i32) -> (i32, i32, i32) {
    %c0_i32 = arith.constant 0 : i32
    %c0_i32_0 = arith.constant 0 : i32
    %c0_i32_1 = arith.constant 0 : i32
    return %arg0, %c0_i32, %c0_i32_0 : i32, i32, i32
  }
}

</mosaic_0001>

<bundles_post_ra>
// kernel: nafnet_forward.1
= control target key start
LH: loop header
LB: loop body
LE: loop exit
PB: predicated region body
PF: predicated region fallthrough
CT: control target
= control target key end

     0   :  { %s3314_s27 = smov 0   ;;  %s4632_s0 = inlined_call_operand.vmem [shape: f32[2,3,256], index: 0, kind: input, shape index: {}]   ;;  %s4633_s1 = inlined_call_operand.vmem [shape: bf16[9,16,3], index: 1, kind: input, shape index: {}]   ;;  %s4634_s2 = inlined_call_operand.vmem [shape: bf16[9,3,16], index: 2, kind: input, shape index: {}]   ;;  %s4635_s3 = inlined_call_operand.vmem [shape: f32[32,9], index: 3, kind: input, shape index: {}]   ;;  %s4636_s4 = inlined_call_operand.vmem [shape: bf16[3,16,16], index: 4, kind: input, shape index: {}]   ;;  %s4637_s5 = inlined_call_operand.vmem [shape: bf16[2,32,16], index: 5, kind: input, shape index: {}]   ;;  %s4638_s6 = inlined_call_operand.vmem [shape: f32[16,11], index: 6, kind: input, shape index: {}]   ;;  %s4639_s7 = inlined_call_operand.vmem [shape: f32[32,3], index: 7, kind: input, shape index: {}]   ;;  %s4640_s8 = inlined_call_operand.vmem [shape: f32[2,3,256], index: 8, kind: output, shape index: {}]  }
   0x1 LB: > { %s2864_s28 = sadd.s32 4294967295, %s3247_s27   ;;  %p2868_p0 = scmp.ge.s32.totalorder %s3247_s27, 1  ;;  %s3247_s27 = sphi %s3314_s27, %s18_s27  }
   0x2   : > { %p262_p1 = scmp.lt.s32.totalorder %s3247_s27, 3 }
   0x4   : > { %p263_p2 = pnand %p2868_p0, %p262_p1 }
   0x6   : > { %266 = sbr.rel (%p263_p2) target bundleno = 2614 (0xa36), region = 52 }
   0xd   : > { %p296_p3 = scmp.lt.s32.totalorder %s2864_s28, 1  ;;  %v4653_v2 = vmov 0   ;;  %s3250_s11 = smov 16   ;;  %v351_v4 = vld [vmem:[%s4638_s6] sm:$0xff]  ;;  %v352_v5 = vld [vmem:[%s4638_s6 + $0x8] sm:$0xff]  ;;  %v3258_v6 = vmov 1   ;;  %v308_v7 = vlaneseq }
   0xe   : > { %442 = vmatprep.mubr.bf16.mxu0 %v4653_v2  ;;  %3092 = vset.pattern.permute.xlu0 %v4653_v2  ;;  %s3251_s12 = smov 15   ;;  %s3252_s13 = smov 17   ;;  %v4648_v8 = vmov 2   ;;  %vm400_vm0 = vcmask 1040384   ;;  %vm401_vm1 = vcmask 1041408   ;;  %v3260_v13 = vmov 65535  }
   0xf   : > { %s4833_s28 = smov (!%p296_p3, %s2864_s28), 1  ;;  %3093 = vset.pattern.permute.xlu1 %v4653_v2  ;;  %1220 = vmatprep.mubr.bf16.mxu1 %v4653_v2  ;;  %s3253_s14 = smov 1   ;;  %v3362_v9 = vand.u32 127, %v308_v7  ;;  %v402_v14 = vsel %vm400_vm0, 4294967295, %v3260_v13  ;;  %v3210_v44 = vld [vmem:[%s4633_s1 + $0x8] sm:$0xff]   ;;  %vm396_vm11 = vcmask 23552  }
  0x10   : > { %s2990_s29 = sshll.u32 %s4833_s28, 3  ;;  %s3254_s15 = smov 127   ;;  %v3384_v24 = vsel %vm401_vm1, %v402_v14, 0  ;;  %v3211_v60 = vld [vmem:[%s4633_s1] sm:$0xff]  }
  0x11   : > { %s3330_s10 = scalar_lea.vmem %s4632_s0, %s2990_s29  ;;  %s3255_s16 = smov 113   ;;  %v3365_v10 = vadd.s32 128, %v3362_v9  ;;  %v315_v11 = vand.u32 15, %v3362_v9  ;;  %vm4678_vm2 = vcmp.lt.s32.totalorder %v3362_v9, 16  ;;  %vm4676_vm3 = vcmp.ge.s32.totalorder %v3362_v9, 16 }
  0x12   : > { %v3333_v0 = vld [vmem:[%s3330_s10] sm:$0x77]  ;;  %s3256_s17 = smov 112   ;;  %s3257_s18 = smov 111   ;;  %vm4643_vm4 = vcmp.lt.s32.totalorder %v3362_v9, 15  ;;  %vm4680_vm7 = vcmp.lt.s32.totalorder %v3362_v9, 17 }
  0x13   : > { %v3337_v1 = vcombine.high %v3333_v0, %v3333_v0  ;;  %v322_v12 = vand.u32 15, %v3365_v10  ;;  %vm3377_vm6 = vcmp.ge.s32.totalorder %v315_v11, 1  ;;  %vm3408_vm10 = vcmp.le.s32.totalorder %v315_v11, 14  ;;  %v3212_v11 = vld [vmem:[%s4633_s1 + $0x10] sm:$0xff]  }
  0x14   : > { %vm3399_vm8 = vmand %vm4676_vm3, %vm3377_vm6  ;;  %vm4677_vm12 = vcmp.lt.s32.totalorder %v3362_v9, 1  ;;  %vm4641_vm14 = vcmp.lt.s32.totalorder %v3362_v9, 127  ;;  %vm4642_vm15 = vcmp.lt.s32.totalorder %v3362_v9, 113  ;;  %vm346_vm0 = vcmp.lt.s32.totalorder %v3365_v10, 240 }
  0x15   : > { %4681 = vst [vmem:[#allocation2_spill] sm:$0xff] %v3337_v1  ;;  %v3052_v3 = vpack.i.bf16 %v3337_v1, %v3333_v0  ;;  %vm3373_vm5 = vcmp.le.s32.totalorder %v322_v12, 14  ;;  %vm3403_vm9 = vcmp.ge.s32.totalorder %v322_v12, 1  ;;  %vm3431_vm13 = vmand %vm4676_vm3, %vm3408_vm10  ;;  %v672_v7 = vpack.c.bf16 %v3337_v1, %v3337_v1 }
  0x16   : > { %vm3487_vm1 = vmand %vm346_vm0, %vm3403_vm9 }
  0x17   : > { %3053 = vrot.lane.b32.xlu0 %v3052_v3, %s3250_s11  ;;  %3063 = vrot.lane.b32.xlu1 %v3052_v3, %s3251_s12 }
  0x1b   : > { %3058 = vrot.lane.b32.xlu0 %v3052_v3, %s3252_s13  ;;  %3068 = vrot.lane.b32.xlu1 %v3052_v3, %s3253_s14 }
  0x1f   : > { %3073 = vrot.lane.b32.xlu0 %v3052_v3, %s3254_s15  ;;  %3078 = vrot.lane.b32.xlu1 %v3052_v3, %s3255_s16 }
  0x23   : > { %3083 = vrot.lane.b32.xlu0 %v3052_v3, %s3256_s17  ;;  %3088 = vrot.lane.b32.xlu1 %v3052_v3, %s3257_s18 }
  0x27   : > { %1052 = vperm.xlu0 %3092, %v351_v4   ;;  %1057 = vperm.xlu1 %3093, %v352_v5  }
  0x2b   : > { %3094 = vset.pattern.permute.xlu1 %v3258_v6  ;;  %3095 = vset.pattern.permute.xlu0 %v3258_v6 }
  0x2c   : > { %1117 = vperm.xlu1 %3094, %v351_v4   ;;  %1122 = vperm.xlu0 %3095, %v352_v5  }
  0x30   : > { %3096 = vset.pattern.permute.xlu1 %v4648_v8 }
  0x31   : > { %1130 = vperm.xlu1 %3096, %v351_v4  }
  0x35   : > { %1134 = vperm.xlu1 %3096, %v352_v5  }
  0x39   : > { %3097 = vset.pattern.permute.xlu1 %v4653_v2 }
  0x89   : > { %v3054_v15 = vpop.permute.xlu0 %3053  ;;  %v3064_v16 = vpop.permute.xlu1 %3063 }
  0x8a   : > { %v3056_v18 = vunpack.i.h.bf16 %v3054_v15  ;;  %v3055_v19 = vunpack.i.l.bf16 %v3054_v15  ;;  %v3066_v20 = vunpack.i.h.bf16 %v3064_v16  ;;  %v3065_v21 = vunpack.i.l.bf16 %v3064_v16 }
  0x8b   : > { %v685_v15 = vand.u32 %v672_v7, %v3384_v24 }
  0x8c   : > { %v381_v23 = vsel %vm4678_vm2, %v3055_v19, %v3056_v18  ;;  %v382_v25 = vsel %vm4678_vm2, %v3056_v18, %v3055_v19  ;;  %v518_v26 = vsel %vm4643_vm4, %v3065_v21, %v3066_v20  ;;  %v519_v53 = vsel %vm4643_vm4, %v3066_v20, %v3065_v21  ;;  %vm3525_vm4 = vmand %vm346_vm0, %vm3373_vm5 }
  0x8d   : > { %v390_v27 = vpack.c.bf16 %v381_v23, %v381_v23  ;;  %v387_v28 = vsel %vm4676_vm3, %v382_v25, 0.0  ;;  %v3059_v29 = vpop.permute.xlu0 %3058  ;;  %v525_v30 = vsel %vm3373_vm5, %v518_v26, 0.0  ;;  %v3069_v36 = vpop.permute.xlu1 %3068  ;;  %v524_v56 = vsel %vm3431_vm13, %v519_v53, 0.0  ;;  %v3213_v23 = vld [vmem:[%s4633_s1 + $0x18] sm:$0xff]  }
  0x8e   : > { %v389_v31 = vpack.c.bf16 %v387_v28, %v387_v28  ;;  %v3061_v33 = vunpack.i.h.bf16 %v3059_v29  ;;  %v3060_v34 = vunpack.i.l.bf16 %v3059_v29  ;;  %v527_v42 = vpack.c.bf16 %v525_v30, %v525_v30 }
  0x8f   : > { %v408_v37 = vand.u32 %v3384_v24, %v390_v27  ;;  %v3071_v46 = vunpack.i.h.bf16 %v3069_v36  ;;  %v3070_v47 = vunpack.i.l.bf16 %v3069_v36  ;;  %v526_v58 = vpack.c.bf16 %v524_v56, %v524_v56 }
  0x90   : > { %v405_v39 = vand.u32 %v3384_v24, %v389_v31  ;;  %v364_v40 = vsel %vm4680_vm7, %v3061_v33, %v3060_v34  ;;  %v363_v41 = vsel %vm4680_vm7, %v3060_v34, %v3061_v33  ;;  %v540_v54 = vand.u32 %v527_v42, %v3384_v24 }
  0x91   : > { %410 = vmatprep.subr.bf16.mxu0 %v408_v37  ;;  %v369_v43 = vsel %vm3399_vm8, %v364_v40, 0.0  ;;  %v370_v45 = vsel %vm3403_vm9, %v363_v41, 0.0  ;;  %v597_v55 = vsel %vm4677_vm12, %v3070_v47, %v3071_v46  ;;  %v537_v61 = vand.u32 %v526_v58, %v3384_v24  ;;  %v3074_v5 = vpop.permute.xlu0 %3073  ;;  %v3079_v20 = vpop.permute.xlu1 %3078 }
  0x92   : > { %411 = vmatpush1.bf16.msra.mxu0 %v405_v39  ;;  %v371_v48 = vpack.c.bf16 %v369_v43, %v369_v43  ;;  %v372_v49 = vpack.c.bf16 %v370_v45, %v370_v45  ;;  %v604_v57 = vsel %vm3403_vm9, %v597_v55, 0.0  ;;  %v598_v63 = vsel %vm4677_vm12, %v3071_v46, %v3070_v47  ;;  %v3214_v39 = vld [vmem:[%s4633_s1 + $0x20] sm:$0xff]  }
  0x93   : > { %v606_v59 = vpack.c.bf16 %v604_v57, %v604_v57  ;;  %v603_v3 = vsel %vm3377_vm6, %v598_v63, 0.0  ;;  %v3076_v12 = vunpack.i.h.bf16 %v3074_v5  ;;  %v3075_v13 = vunpack.i.l.bf16 %v3074_v5  ;;  %v3216_v63 = vld [vmem:[%s4633_s1 + $0x30] sm:$0xff]  }
  0x94   : > { %v465_v50 = vand.u32 %v3384_v24, %v372_v49  ;;  %v462_v51 = vand.u32 %v3384_v24, %v371_v48  ;;  %v605_v4 = vpack.c.bf16 %v603_v3, %v603_v3  ;;  %v671_v19 = vpack.c.bf16 %v3333_v0, %v3333_v0  ;;  %v2980_v57 = vld [vmem:[%s4634_s2 + $0x10] sm:$0x3] }
  0x95   : > { %2876 = vmatmul.mubr.msk.bf16.vlgmr.msra.gmra.mrb[0].mxu0 %vm396_vm11, %v3210_v44  ;;  %v619_v62 = vand.u32 %v606_v59, %v3384_v24  ;;  %v743_v16 = vsel %vm4641_vm14, %v3076_v12, %v3075_v13  ;;  %v3081_v25 = vunpack.i.h.bf16 %v3079_v20  ;;  %v3080_v26 = vunpack.i.l.bf16 %v3079_v20  ;;  %v3084_v36 = vpop.permute.xlu0 %3083  ;;  %v3089_v49 = vpop.permute.xlu1 %3088  ;;  %v3587_v20 = vld [vmem:[%s4639_s7 + $0x18] sm:$0xff] }
  0x96   : > { %467 = vmatprep.subr.bf16.mxu0 %v465_v50  ;;  %499 = vmatprep.mubr.bf16.mxu0 %v4653_v2  ;;  %v616_v14 = vand.u32 %v605_v4, %v3384_v24  ;;  %v749_v18 = vsel %vm3373_vm5, %v743_v16, 0.0  ;;  %v682_v27 = vand.u32 %v671_v19, %v3384_v24  ;;  %v742_v29 = vsel %vm4641_vm14, %v3075_v13, %v3076_v12  ;;  %v3217_v12 = vld [vmem:[%s4633_s1 + $0x38] sm:$0xff]   ;;  %v3579_v19 = vld [vmem:[%s4639_s7] sm:$0xff] }
  0x97   : > { %468 = vmatpush1.bf16.msra.mxu0 %v462_v51  ;;  %v751_v21 = vpack.c.bf16 %v749_v18, %v749_v18  ;;  %v822_v30 = vsel %vm4642_vm15, %v3081_v25, %v3080_v26  ;;  %v748_v31 = vsel %vm3408_vm10, %v742_v29, 0.0  ;;  %v3086_v40 = vunpack.i.h.bf16 %v3084_v36  ;;  %v3215_v51 = vld [vmem:[%s4633_s1 + $0x28] sm:$0xff]   ;;  %v3574_v18 = vld [vmem:[%s4639_s7 + $0x10] sm:$0xff] }
  0x98   : > { %542 = vmatprep.subr.bf16.mxu0 %v540_v54  ;;  %v828_v33 = vsel %vm3487_vm1, %v822_v30, 0.0  ;;  %v750_v34 = vpack.c.bf16 %v748_v31, %v748_v31  ;;  %v3085_v41 = vunpack.i.l.bf16 %v3084_v36  ;;  %vm899_vm14 = vcmp.lt.s32.totalorder %v3362_v9, 112 }
  0x99   : > { %v764_v28 = vand.u32 %v751_v21, %v3384_v24  ;;  %v830_v37 = vpack.c.bf16 %v828_v33, %v828_v33  ;;  %v821_v44 = vsel %vm4642_vm15, %v3080_v26, %v3081_v25  ;;  %v3091_v53 = vunpack.i.h.bf16 %v3089_v49  ;;  %v3592_v21 = vld [vmem:[%s4635_s3] sm:$0xff]  ;;  %v3607_v25 = vld [vmem:[%s4635_s3 + $0x18] sm:$0xff] }
  0x9a   : > { %v761_v42 = vand.u32 %v750_v34, %v3384_v24  ;;  %v901_v45 = vsel %vm899_vm14, %v3086_v40, %v3085_v41  ;;  %v827_v46 = vsel %vm3377_vm6, %v821_v44, 0.0  ;;  %v3090_v54 = vunpack.i.l.bf16 %v3089_v49 }
  0x9b   : > { %v843_v43 = vand.u32 %v830_v37, %v3384_v24  ;;  %v907_v47 = vsel %vm346_vm0, %v901_v45, 0.0  ;;  %v829_v48 = vpack.c.bf16 %v827_v46, %v827_v46  ;;  %vm4679_vm15 = vcmp.lt.s32.totalorder %v3362_v9, 111 }
  0x9c   : > { %v909_v50 = vpack.c.bf16 %v907_v47, %v907_v47  ;;  %v980_v58 = vsel %vm4679_vm15, %v3091_v53, %v3090_v54  ;;  %v900_v59 = vsel %vm899_vm14, %v3085_v41, %v3086_v40  ;;  %v979_v5 = vsel %vm4679_vm15, %v3090_v54, %v3091_v53 }
  0x9d   : > { %v840_v55 = vand.u32 %v829_v48, %v3384_v24  ;;  %v985_v7 = vsel %vm3408_vm10, %v979_v5, 0.0  ;;  %v4650_v16 = vmov 4   ;;  %v4645_v26 = vmov 5  }
  0x9e   : > { %v922_v56 = vand.u32 %v909_v50, %v3384_v24  ;;  %3099 = vset.pattern.permute.xlu0 %v4650_v16  ;;  %v3265_v33 = vmov 3   ;;  %v4646_v37 = vmov 8  }
  0xa1   : > { %2878 = vmatmul.mubr.msk.bf16.vlgmr.msra.gmra.mrb[0].mxu0 %vm396_vm11, %v3211_v60  ;;  %v986_v60 = vsel %vm3525_vm4, %v980_v58, 0.0 }
  0xa2   : > { %543 = vmatpush1.bf16.msra.mxu0 %v537_v61  ;;  %574 = vmatprep.mubr.bf16.mxu0 %v4653_v2  ;;  %v908_v61 = vpack.c.bf16 %v900_v59, %v900_v59 }
  0xa3   : > { %621 = vmatprep.subr.bf16.mxu0 %v619_v62  ;;  %v988_v62 = vpack.c.bf16 %v986_v60, %v986_v60 }
  0xa4   : > { %v919_v3 = vand.u32 %v908_v61, %v3384_v24 }
  0xa5   : > { %v1001_v4 = vand.u32 %v988_v62, %v3384_v24 }
  0xa6   : > { %v1053_v29 = vpop.permute.xlu0 %1052  ;;  %v1058_v31 = vpop.permute.xlu1 %1057 }
  0xad   : > { %2882 = vmatmul.mubr.msk.bf16.vlgmr.msra.gmra.mrb[0].mxu0 %vm396_vm11, %v3212_v11  ;;  %v987_v11 = vpack.c.bf16 %v985_v7, %v985_v7 }
  0xae   : > { %622 = vmatpush1.bf16.msra.mxu0 %v616_v14  ;;  %653 = vmatprep.mubr.bf16.mxu0 %v4653_v2  ;;  %v3218_v14 = vld [vmem:[%s4633_s1 + $0x40] sm:$0xff]  }
  0xaf   : > { %687 = vmatprep.subr.bf16.mxu0 %v685_v15  ;;  %v998_v13 = vand.u32 %v987_v11, %v3384_v24  ;;  %v3561_v15 = vld [vmem:[%s4635_s3 + $0x8] sm:$0xff] }
  0xb0   : > { %v3566_v24 = vld [vmem:[%s4639_s7 + $0x8] sm:$0xff]  ;;  %1252 = vperm.xlu0 %3099, %v3561_v15  }
  0xb1   : > { %1158 = vperm.xlu1 %3097, %v3566_v24  }
  0xb4   : > { %3100 = vset.pattern.permute.xlu0 %v4653_v2 }
  0xb5   : > { %1163 = vperm.xlu1 %3097, %v3574_v18   ;;  %1153 = vperm.xlu0 %3100, %v3579_v19  }
  0xb9   : > { %2886 = vmatmul.mubr.msk.bf16.vlgmr.msra.gmra.mrb[0].mxu0 %vm396_vm11, %v3213_v23  ;;  %3098 = vset.pattern.permute.xlu1 %v4650_v16  ;;  %v3600_v23 = vld [vmem:[%s4635_s3 + $0x10] sm:$0xff] }
  0xba   : > { %688 = vmatpush1.bf16.msra.mxu0 %v682_v27  ;;  %719 = vmatprep.mubr.bf16.mxu0 %v4653_v2  ;;  %v4644_v27 = vmov 6  }
  0xbb   : > { %766 = vmatprep.subr.bf16.mxu0 %v764_v28  ;;  %1247 = vperm.xlu1 %3098, %v3592_v21   ;;  %v4651_v28 = vmov 7  }
  0xbc   : > { %1168 = vperm.xlu0 %3100, %v3587_v20  }
  0xbf   : > { %1257 = vperm.xlu1 %3098, %v3600_v23  }
  0xc0   : > { %1306 = vperm.xlu0 %3100, %v3592_v21  }
  0xc3   : > { %1262 = vperm.xlu1 %3098, %v3607_v25  }
  0xc4   : > { %1318 = vperm.xlu0 %3100, %v3607_v25  }
  0xc5   : > { %2890 = vmatmul.mubr.msk.bf16.vlgmr.msra.gmra.mrb[0].mxu0 %vm396_vm11, %v3214_v39 }
  0xc6   : > { %767 = vmatpush1.bf16.msra.mxu0 %v761_v42  ;;  %798 = vmatprep.mubr.bf16.mxu0 %v4653_v2 }
  0xc7   : > { %845 = vmatprep.subr.bf16.mxu0 %v843_v43  ;;  %3101 = vset.pattern.permute.xlu1 %v4653_v2 }
  0xc8   : > { %1310 = vperm.xlu1 %3101, %v3561_v15   ;;  %3103 = vset.pattern.permute.xlu0 %v4648_v8 }
  0xc9   : > { %1434 = vperm.xlu0 %3103, %v3592_v21  }
  0xcc   : > { %1314 = vperm.xlu1 %3101, %v3600_v23  }
  0xcd   : > { %1446 = vperm.xlu0 %3103, %v3607_v25  }
  0xd0   : > { %3102 = vset.pattern.permute.xlu1 %v3258_v6 }
  0xd1   : > { %2894 = vmatmul.mubr.msk.bf16.vlgmr.msra.gmra.mrb[0].mxu0 %vm396_vm11, %v3215_v51  ;;  %1370 = vperm.xlu1 %3102, %v3592_v21  }
  0xd2   : > { %846 = vmatpush1.bf16.msra.mxu0 %v840_v55  ;;  %877 = vmatprep.mubr.bf16.mxu0 %v4653_v2 }
  0xd3   : > { %924 = vmatprep.subr.bf16.mxu0 %v922_v56  ;;  %3106 = vset.pattern.permute.xlu0 %v4645_v26 }
  0xd4   : > { %1562 = vperm.xlu0 %3106, %v3592_v21  }
  0xd5   : > { %1378 = vperm.xlu1 %3102, %v3600_v23  }
  0xd8   : > { %1574 = vperm.xlu0 %3106, %v3607_v25  }
  0xd9   : > { %1382 = vperm.xlu1 %3102, %v3607_v25  }
  0xdc   : > { %3109 = vset.pattern.permute.xlu0 %v4644_v27 }
  0xdd   : > { %2898 = vmatmul.mubr.msk.bf16.vlgmr.msra.gmra.mrb[0].mxu0 %vm396_vm11, %v3216_v63  ;;  %1630 = vperm.xlu0 %3109, %v3561_v15  }
  0xde   : > { %925 = vmatpush1.bf16.msra.mxu0 %v919_v3  ;;  %956 = vmatprep.mubr.bf16.mxu0 %v4653_v2 }
  0xdf   : > { %1003 = vmatprep.subr.bf16.mxu0 %v1001_v4  ;;  %3104 = vset.pattern.permute.xlu1 %v4648_v8 }
  0xe0   : > { %1438 = vperm.xlu1 %3104, %v3561_v15  }
  0xe1   : > { %3110 = vset.pattern.permute.xlu0 %v4651_v28 }
  0xe2   : > { %1690 = vperm.xlu0 %3110, %v3592_v21  }
  0xe4   : > { %1442 = vperm.xlu1 %3104, %v3600_v23  }
  0xe6   : > { %1702 = vperm.xlu0 %3110, %v3607_v25  }
  0xe8   : > { %3105 = vset.pattern.permute.xlu1 %v3265_v33 }
  0xe9   : > { %2902 = vmatmul.mubr.msk.bf16.vlgmr.msra.gmra.mrb[0].mxu0 %vm396_vm11, %v3217_v12  ;;  %1498 = vperm.xlu1 %3105, %v3592_v21  }
  0xea   : > { %1004 = vmatpush1.bf16.msra.mxu0 %v998_v13  ;;  %1035 = vmatprep.mubr.bf16.mxu0 %v4653_v2 }
  0xeb   : > { %3113 = vset.pattern.permute.xlu0 %v4646_v37 }
  0xec   : > { %1758 = vperm.xlu0 %3113, %v3561_v15  }
  0xed   : > { %1506 = vperm.xlu1 %3105, %v3600_v23  }
  0xf0   : > { %3114 = vset.pattern.permute.xlu0 %v3258_v6 }
  0xf1   : > { %1374 = vperm.xlu0 %3114, %v3561_v15   ;;  %1510 = vperm.xlu1 %3105, %v3607_v25  }
  0xf5   : > { %2906 = vmatmul.mubr.msk.bf16.vlgmr.msra.gmra.mrb[0].mxu0 %vm396_vm11, %v3218_v14  ;;  %1786 = vperm.xlu0 %3114, %v3579_v19   ;;  %vm4675_vm11 = vcmask 130048  }
  0xf6   : > { %2404 = vmatprep.mubr.bf16.mxu0 %v4653_v2  ;;  %3107 = vset.pattern.permute.xlu1 %v4645_v26 }
  0xf7   : > { %1566 = vperm.xlu1 %3107, %v3561_v15  }
  0xf9   : > { %1798 = vperm.xlu0 %3114, %v3587_v20  }
  0xfb   : > { %1570 = vperm.xlu1 %3107, %v3600_v23  }
  0xfd   : > { %3116 = vset.pattern.permute.xlu0 %v3265_v33 }
  0xfe   : > { %1502 = vperm.xlu0 %3116, %v3561_v15  }
  0xff   : > { %3108 = vset.pattern.permute.xlu1 %v4644_v27 }
 0x100   : > { %1626 = vperm.xlu1 %3108, %v3592_v21  }
 0x104   : > { %1634 = vperm.xlu1 %3108, %v3600_v23  }
 0x108   : > { %1638 = vperm.xlu1 %3108, %v3607_v25  }
 0x10c   : > { %3111 = vset.pattern.permute.xlu1 %v4651_v28 }
 0x10d   : > { %1694 = vperm.xlu1 %3111, %v3561_v15   ;;  %v1123_v15 = vpop.permute.xlu0 %1122 }
 0x111   : > { %1698 = vperm.xlu1 %3111, %v3600_v23  }
 0x115   : > { %3112 = vset.pattern.permute.xlu1 %v4646_v37 }
 0x116   : > { %1754 = vperm.xlu1 %3112, %v3592_v21  }
 0x11a   : > { %1762 = vperm.xlu1 %3112, %v3600_v23  }
 0x11e   : > { %1766 = vperm.xlu1 %3112, %v3607_v25  }
 0x122   : > { %3115 = vset.pattern.permute.xlu1 %v3258_v6  ;;  %v3220_v6 = vld [vmem:[%s4637_s5 + $0x8] sm:$0xff]  }
 0x123   : > { %1790 = vperm.xlu1 %3115, %v3566_v24  }
 0x127   : > { %1794 = vperm.xlu1 %3115, %v3574_v18  }
 0x12b   : > { %3117 = vset.pattern.permute.xlu1 %v3265_v33 }
 0x1c8   : > { %v1037_v30 = vpop.f32.mrb[0].mxu0 }
 0x1c9   : > { %v1039_v34 = vpop.f32.mrb[1].mxu0  ;;  %v3635_v39 = vadd.f32 %v1053_v29, %v1037_v30 }
 0x1ca   : > { %v1041_v36 = vpop.f32.mrb[2].mxu0  ;;  %v3640_v42 = vadd.f32 %v1053_v29, %v1039_v34 }
 0x1cb   : > { %4698 = vst [vmem:[#allocation3_spill] sm:$0xff] %v3635_v39  ;;  %v3637_v40 = vadd.f32 %v1058_v31, %v1041_v36  ;;  %v1043_v41 = vpop.f32.mrb[3].mxu0 }
 0x1cc   : > { %4700 = vst [vmem:[#allocation5_spill] sm:$0xff] %v3640_v42  ;;  %v3642_v43 = vadd.f32 %v1058_v31, %v1043_v41 }
 0x1cd   : > { %4699 = vst [vmem:[#allocation4_spill] sm:$0xff] %v3637_v40  ;;  %v1066_v44 = vadd.f32 %v3637_v40, %v3635_v39 }
 0x1ce   : > { %4701 = vst [vmem:[#allocation6_spill] sm:$0xff] %v3642_v43  ;;  %v1073_v45 = vadd.f32 %v3642_v43, %v3640_v42 }
 0x1cf   : > { %v1067_v46 = vrot.slane %v1066_v44, 4 }
 0x1d0   : > { %v1074_v47 = vrot.slane %v1073_v45, 4 }
 0x1d1   : > { %v1068_v48 = vadd.f32 %v1067_v46, %v1066_v44 }
 0x1d2   : > { %v1075_v49 = vadd.f32 %v1074_v47, %v1073_v45 }
 0x1d3   : > { %v1069_v50 = vrot.slane %v1068_v48, 2 }
 0x1d4   : > { %v1076_v51 = vrot.slane %v1075_v49, 2 }
 0x1d5   : > { %v1070_v53 = vadd.f32 %v1069_v50, %v1068_v48 }
 0x1d6   : > { %v1077_v54 = vadd.f32 %v1076_v51, %v1075_v49 }
 0x1d7   : > { %v1071_v55 = vrot.slane %v1070_v53, 1 }
 0x1d8   : > { %v1078_v56 = vrot.slane %v1077_v54, 1 }
 0x1d9   : > { %v1072_v58 = vadd.f32 %v1071_v55, %v1070_v53  ;;  %v1118_v53 = vpop.permute.xlu1 %1117 }
 0x1da   : > { %v1079_v59 = vadd.f32 %v1078_v56, %v1077_v54 }
 0x1db   : > { %v1081_v60 = vmul.f32 0.0625, %v1072_v58 }
 0x1dc   : > { %v1082_v61 = vmul.f32 0.0625, %v1079_v59 }
 0x1dd   : > { %v1085_v62 = vsub.f32 %v3637_v40, %v1081_v60  ;;  %v1083_v63 = vsub.f32 %v3635_v39, %v1081_v60  ;;  %v1131_v54 = vpop.permute.xlu1 %1130 }
 0x1de   : > { %v1086_v3 = vsub.f32 %v3642_v43, %v1082_v61  ;;  %v1084_v4 = vsub.f32 %v3640_v42, %v1082_v61 }
 0x1df   : > { %v1089_v5 = vmul.f32 %v1085_v62, %v1085_v62  ;;  %v1087_v7 = vmul.f32 %v1083_v63, %v1083_v63 }
 0x1e0   : > { %v1090_v11 = vmul.f32 %v1086_v3, %v1086_v3  ;;  %v1088_v12 = vmul.f32 %v1084_v4, %v1084_v4 }
 0x1e1   : > { %v1091_v13 = vadd.f32 %v1089_v5, %v1087_v7 }
 0x1e2   : > { %v1098_v14 = vadd.f32 %v1090_v11, %v1088_v12  ;;  %v1135_v12 = vpop.permute.xlu1 %1134 }
 0x1e3   : > { %v1092_v19 = vrot.slane %v1091_v13, 4 }
 0x1e4   : > { %v1099_v20 = vrot.slane %v1098_v14, 4 }
 0x1e5   : > { %v1093_v29 = vadd.f32 %v1092_v19, %v1091_v13 }
 0x1e6   : > { %v1100_v30 = vadd.f32 %v1099_v20, %v1098_v14  ;;  %v1159_v24 = vpop.permute.xlu1 %1158 }
 0x1e7   : > { %v1094_v31 = vrot.slane %v1093_v29, 2 }
 0x1e8   : > { %v1101_v34 = vrot.slane %v1100_v30, 2 }
 0x1e9   : > { %v1095_v36 = vadd.f32 %v1094_v31, %v1093_v29 }
 0x1ea   : > { %v1102_v41 = vadd.f32 %v1101_v34, %v1100_v30  ;;  %v3688_v18 = vpop.permute.xlu1 %1163 }
 0x1eb   : > { %v1096_v44 = vrot.slane %v1095_v36, 1 }
 0x1ec   : > { %v1103_v45 = vrot.slane %v1102_v41, 1 }
 0x1ed   : > { %v1097_v46 = vadd.f32 %v1096_v44, %v1095_v36 }
 0x1ee   : > { %v1104_v47 = vadd.f32 %v1103_v45, %v1102_v41 }
 0x1ef   : > { %v1105_v48 = vmul.f32 0.0625, %v1097_v46 }
 0x1f0   : > { %v1106_v49 = vmul.f32 0.0625, %v1104_v47 }
 0x1f1   : > { %v1107_v50 = vadd.f32 1e-06, %v1105_v48 }
 0x1f2   : > { %v1108_v51 = vadd.f32 1e-06, %v1106_v49 }
 0x1f3   : > { %3226 = vrsqrt.f32 %v1107_v50 }
 0x1f4   : > { %3228 = vrsqrt.f32 %v1108_v51 }
 0x1fd   : > { %v3227_v55 = vpop.eup %3226 }
 0x1fe   : > { %v3229_v56 = vpop.eup %3228  ;;  %v1111_v58 = vmul.f32 %v3227_v55, %v1083_v63  ;;  %v1113_v59 = vmul.f32 %v3227_v55, %v1085_v62  ;;  %v3219_v62 = vld [vmem:[%s4637_s5] sm:$0xff]   ;;  %v3690_v63 = vpop.permute.xlu1 %1247 }
 0x1ff   : > { %v1112_v60 = vmul.f32 %v3229_v56, %v1084_v4  ;;  %v1114_v61 = vmul.f32 %v3229_v56, %v1086_v3  ;;  %v3696_v4 = vpop.permute.xlu0 %1252 }
 0x200   : > { %v1125_v5 = vmul.f32 %v1118_v53, %v1111_v58  ;;  %v1127_v7 = vmul.f32 %v1123_v15, %v1113_v59 }
 0x201   : > { %v1126_v11 = vmul.f32 %v1118_v53, %v1112_v60  ;;  %v1128_v13 = vmul.f32 %v1123_v15, %v1114_v61 }
 0x202   : > { %v1137_v21 = vadd.f32 %v1131_v54, %v1125_v5  ;;  %v1139_v14 = vadd.f32 %v1135_v12, %v1127_v7  ;;  %v3692_v3 = vpop.permute.xlu1 %1257 }
 0x203   : > { %v1138_v23 = vadd.f32 %v1131_v54, %v1126_v11  ;;  %v1140_v19 = vadd.f32 %v1135_v12, %v1128_v13  ;;  %v1154_v30 = vpop.permute.xlu0 %1153 }
 0x204   : > { %v1145_v25 = vpack.c.bf16 %v1139_v14, %v1137_v21 }
 0x205   : > { %v1146_v20 = vpack.c.bf16 %v1140_v19, %v1138_v23 }
 0x206   : > { %v3694_v33 = vpop.permute.xlu1 %1262 }
 0x207   : > { %1188 = vmatprep.subr.bf16.mxu1 %v1146_v20  ;;  %v3748_v56 = vpop.permute.xlu0 %1168 }
 0x208   : > { %1189 = vmatpush1.bf16.msra.mxu1 %v1145_v25 }
 0x20a   : > { %v3698_v29 = vpop.permute.xlu1 %1310 }
 0x20b   : > { %2909 = vmatmul.mubr.msk.bf16.vlgmr.msra.gmra.mrb[0].mxu1 %vm4675_vm11, %v3219_v62  ;;  %v3762_v60 = vpop.permute.xlu0 %1306 }
 0x20c   : > { %1230 = vmatprep.mubr.bf16.mxu1 %v4653_v2 }
 0x20e   : > { %v3702_v41 = vpop.permute.xlu1 %1314 }
 0x20f   : > { %v3770_v5 = vpop.permute.xlu0 %1318 }
 0x210   : > { %4703 = vst [vmem:[#allocation8_spill] sm:$0xff] %v3770_v5 }
 0x212   : > { %v3712_v46 = vpop.permute.xlu1 %1370 }
 0x213   : > { %2910 = vmatmul.mubr.msk.bf16.gmra.mrb[4].mxu1 %vm4675_vm11, %v3220_v6  ;;  %v3782_v11 = vpop.permute.xlu0 %1434  ;;  %vm4717_vm11 = vcmp.lt.s32.totalorder %v3362_v9, 15 }
 0x214   : > { %1857 = vmatprep.mubr.bf16.mxu1 %v4653_v2 }
 0x216   : > { %v3722_v51 = vpop.permute.xlu1 %1378 }
 0x217   : > { %v3792_v21 = vpop.permute.xlu0 %1446 }
 0x218   : > { %4705 = vst [vmem:[#allocation10_spill] sm:$0xff] %v3792_v21 }
 0x21a   : > { %v3734_v54 = vpop.permute.xlu1 %1382 }
 0x21b   : > { %4702 = vst [vmem:[#allocation7_spill] sm:$0xff] %v3734_v54  ;;  %v3804_v23 = vpop.permute.xlu0 %1562 }
 0x21e   : > { %v3740_v55 = vpop.permute.xlu1 %1438 }
 0x21f   : > { %v3815_v25 = vpop.permute.xlu0 %1574 }
 0x220   : > { %4707 = vst [vmem:[#allocation12_spill] sm:$0xff] %v3815_v25 }
 0x222   : > { %v3746_v15 = vpop.permute.xlu1 %1442 }
 0x223   : > { %v3827_v6 = vpop.permute.xlu0 %1630 }
 0x226   : > { %v3760_v59 = vpop.permute.xlu1 %1498 }
 0x22a   : > { %v3768_v61 = vpop.permute.xlu1 %1506 }
 0x22e   : > { %v3780_v7 = vpop.permute.xlu1 %1510 }
 0x22f   : > { %4704 = vst [vmem:[#allocation9_spill] sm:$0xff] %v3780_v7 }
 0x232   : > { %v3790_v13 = vpop.permute.xlu1 %1566 }
 0x236   : > { %v3798_v14 = vpop.permute.xlu1 %1570 }
 0x237   : > { %4706 = vst [vmem:[#allocation11_spill] sm:$0xff] %v3798_v14 }
 0x23a   : > { %v3813_v20 = vpop.permute.xlu1 %1626 }
 0x23e   : > { %v3821_v62 = vpop.permute.xlu1 %1634 }
 0x2de   : > { %v1222_v31 = vpop.f32.mrb[0].mxu1 }
 0x2df   : > { %v3700_v34 = vadd.f32 %v1222_v31, %v1154_v30  ;;  %v1224_v36 = vpop.f32.mrb[1].mxu1  ;;  %v3838_v31 = vpop.permute.xlu0 %1690 }
 0x2e0   : > { %v1226_v44 = vpop.f32.mrb[2].mxu1  ;;  %v3728_v53 = vadd.f32 %v1224_v36, %v1154_v30 }
 0x2e1   : > { %v1228_v45 = vpop.f32.mrb[3].mxu1  ;;  %1337 = vrot.lane.b32.xlu0 %v3700_v34, %s3250_s11  ;;  %1273 = vrot.lane.b32.xlu1 %v3700_v34, %s3252_s13  ;;  %v3754_v58 = vadd.f32 %v1226_v44, %v1159_v24 }
 0x2e2   : > { %v3784_v12 = vadd.f32 %v1228_v45, %v1159_v24  ;;  %v3829_v24 = vpop.permute.xlu1 %1638  ;;  %v1266_v21 = vmul.f32 %v3690_v63, %v3728_v53 }
 0x2e3   : > { %4708 = vst [vmem:[#allocation13_spill] sm:$0xff] %v3829_v24  ;;  %v3850_v44 = vpop.permute.xlu0 %1702 }
 0x2e4   : > { %4709 = vst [vmem:[#allocation14_spill] sm:$0xff] %v3850_v44 }
 0x2e5   : > { %1465 = vrot.lane.b32.xlu0 %v3700_v34, %s3253_s14  ;;  %1401 = vrot.lane.b32.xlu1 %v3700_v34, %s3251_s12 }
 0x2e6   : > { %v1232_v47 = vpop.f32.mrb[4].mxu1  ;;  %v3844_v36 = vpop.permute.xlu1 %1694 }
 0x2e7   : > { %v1234_v48 = vpop.f32.mrb[5].mxu1  ;;  %v3807_v19 = vadd.f32 %v1232_v47, %v3688_v18  ;;  %v3858_v45 = vpop.permute.xlu0 %1758 }
 0x2e8   : > { %v3714_v49 = vpop.f32.mrb[6].mxu1  ;;  %v3836_v30 = vadd.f32 %v1234_v48, %v3688_v18  ;;  %4710 = vst [vmem:[#allocation15_spill] sm:$0xff] %v3858_v45 }
 0x2e9   : > { %v3716_v50 = vpop.f32.mrb[7].mxu1  ;;  %1593 = vrot.lane.b32.xlu0 %v3700_v34, %s3255_s16  ;;  %1529 = vrot.lane.b32.xlu1 %v3700_v34, %s3254_s15  ;;  %v3868_v48 = vadd.f32 %v3714_v49, %v3748_v56 }
 0x2ea   : > { %v3852_v18 = vpop.permute.xlu1 %1698  ;;  %v3900_v28 = vadd.f32 %v3716_v50, %v3748_v56 }
 0x2eb   : > { %v3870_v27 = vpop.permute.xlu0 %1374 }
 0x2ed   : > { %1657 = vrot.lane.b32.xlu0 %v3700_v34, %s3256_s17  ;;  %1721 = vrot.lane.b32.xlu1 %v3700_v34, %s3257_s18 }
 0x2ee   : > { %v3860_v47 = vpop.permute.xlu1 %1754 }
 0x2ef   : > { %v3882_v37 = vpop.permute.xlu0 %1786 }
 0x2f0   : > { %4712 = vst [vmem:[#allocation17_spill] sm:$0xff] %v3882_v37 }
 0x2f1   : > { %1345 = vrot.lane.b32.xlu0 %v3728_v53, %s3250_s11  ;;  %1281 = vrot.lane.b32.xlu1 %v3728_v53, %s3252_s13 }
 0x2f2   : > { %v3876_v26 = vpop.permute.xlu1 %1762 }
 0x2f3   : > { %4711 = vst [vmem:[#allocation16_spill] sm:$0xff] %v3876_v26  ;;  %v3890_v8 = vpop.permute.xlu0 %1798 }
 0x2f4   : > { %4714 = vst [vmem:[#allocation19_spill] sm:$0xff] %v3890_v8 }
 0x2f5   : > { %1473 = vrot.lane.b32.xlu0 %v3728_v53, %s3253_s14  ;;  %1409 = vrot.lane.b32.xlu1 %v3728_v53, %s3251_s12 }
 0x2f6   : > { %v3884_v49 = vpop.permute.xlu1 %1766 }
 0x2f7   : > { %4713 = vst [vmem:[#allocation18_spill] sm:$0xff] %v3884_v49  ;;  %v3906_v2 = vpop.permute.xlu0 %1502 }
 0x2f9   : > { %1601 = vrot.lane.b32.xlu0 %v3728_v53, %s3255_s16  ;;  %1537 = vrot.lane.b32.xlu1 %v3728_v53, %s3254_s15 }
 0x2fa   : > { %v3892_v16 = vpop.permute.xlu1 %1790 }
 0x2fb   : > { %4715 = vst [vmem:[#allocation20_spill] sm:$0xff] %v3892_v16 }
 0x2fd   : > { %1665 = vrot.lane.b32.xlu0 %v3728_v53, %s3256_s17  ;;  %1729 = vrot.lane.b32.xlu1 %v3728_v53, %s3257_s18 }
 0x2fe   : > { %v3908_v1 = vpop.permute.xlu1 %1794 }
 0x2ff   : > { %4716 = vst [vmem:[#allocation21_spill] sm:$0xff] %v3908_v1 }
 0x301   : > { %1275 = vrot.lane.b32.xlu0 %v3754_v58, %s3252_s13  ;;  %1339 = vrot.lane.b32.xlu1 %v3754_v58, %s3250_s11 }
 0x305   : > { %1403 = vrot.lane.b32.xlu0 %v3754_v58, %s3251_s12  ;;  %1467 = vrot.lane.b32.xlu1 %v3754_v58, %s3253_s14 }
 0x309   : > { %1531 = vrot.lane.b32.xlu0 %v3754_v58, %s3254_s15  ;;  %1595 = vrot.lane.b32.xlu1 %v3754_v58, %s3255_s16 }
 0x30d   : > { %1723 = vrot.lane.b32.xlu0 %v3754_v58, %s3257_s18  ;;  %1659 = vrot.lane.b32.xlu1 %v3754_v58, %s3256_s17 }
 0x311   : > { %1283 = vrot.lane.b32.xlu0 %v3784_v12, %s3252_s13  ;;  %1347 = vrot.lane.b32.xlu1 %v3784_v12, %s3250_s11 }
 0x315   : > { %1411 = vrot.lane.b32.xlu0 %v3784_v12, %s3251_s12  ;;  %1475 = vrot.lane.b32.xlu1 %v3784_v12, %s3253_s14 }
 0x319   : > { %1539 = vrot.lane.b32.xlu0 %v3784_v12, %s3254_s15  ;;  %1603 = vrot.lane.b32.xlu1 %v3784_v12, %s3255_s16 }
 0x31d   : > { %1341 = vrot.lane.b32.xlu0 %v3807_v19, %s3250_s11  ;;  %1667 = vrot.lane.b32.xlu1 %v3784_v12, %s3256_s17 }
 0x321   : > { %1469 = vrot.lane.b32.xlu0 %v3807_v19, %s3253_s14  ;;  %1277 = vrot.lane.b32.xlu1 %v3807_v19, %s3252_s13 }
 0x325   : > { %1597 = vrot.lane.b32.xlu0 %v3807_v19, %s3255_s16  ;;  %1405 = vrot.lane.b32.xlu1 %v3807_v19, %s3251_s12 }
 0x329   : > { %1661 = vrot.lane.b32.xlu0 %v3807_v19, %s3256_s17  ;;  %1533 = vrot.lane.b32.xlu1 %v3807_v19, %s3254_s15 }
 0x32d   : > { %1349 = vrot.lane.b32.xlu0 %v3836_v30, %s3250_s11  ;;  %1725 = vrot.lane.b32.xlu1 %v3807_v19, %s3257_s18 }
 0x331   : > { %1477 = vrot.lane.b32.xlu0 %v3836_v30, %s3253_s14  ;;  %1285 = vrot.lane.b32.xlu1 %v3836_v30, %s3252_s13 }
 0x335   : > { %1605 = vrot.lane.b32.xlu0 %v3836_v30, %s3255_s16  ;;  %1413 = vrot.lane.b32.xlu1 %v3836_v30, %s3251_s12 }
 0x339   : > { %1669 = vrot.lane.b32.xlu0 %v3836_v30, %s3256_s17  ;;  %1541 = vrot.lane.b32.xlu1 %v3836_v30, %s3254_s15 }
 0x33d   : > { %1279 = vrot.lane.b32.xlu0 %v3868_v48, %s3252_s13  ;;  %1343 = vrot.lane.b32.xlu1 %v3868_v48, %s3250_s11 }
 0x341   : > { %1407 = vrot.lane.b32.xlu0 %v3868_v48, %s3251_s12  ;;  %1471 = vrot.lane.b32.xlu1 %v3868_v48, %s3253_s14 }
 0x345   : > { %1535 = vrot.lane.b32.xlu0 %v3868_v48, %s3254_s15  ;;  %1599 = vrot.lane.b32.xlu1 %v3868_v48, %s3255_s16 }
 0x349   : > { %1727 = vrot.lane.b32.xlu0 %v3868_v48, %s3257_s18  ;;  %1663 = vrot.lane.b32.xlu1 %v3868_v48, %s3256_s17 }
 0x34d   : > { %1287 = vrot.lane.b32.xlu0 %v3900_v28, %s3252_s13  ;;  %1351 = vrot.lane.b32.xlu1 %v3900_v28, %s3250_s11 }
 0x351   : > { %1415 = vrot.lane.b32.xlu0 %v3900_v28, %s3251_s12  ;;  %1479 = vrot.lane.b32.xlu1 %v3900_v28, %s3253_s14 }
 0x353   : > { %v1338_v43 = vpop.permute.xlu0 %1337  ;;  %v1274_v42 = vpop.permute.xlu1 %1273 }
 0x355   : > { %1543 = vrot.lane.b32.xlu0 %v3900_v28, %s3254_s15  ;;  %1607 = vrot.lane.b32.xlu1 %v3900_v28, %s3255_s16 }
 0x357   : > { %v1466_v50 = vpop.permute.xlu0 %1465  ;;  %v1402_v56 = vpop.permute.xlu1 %1401 }
 0x359   : > { %1731 = vrot.lane.b32.xlu0 %v3784_v12, %s3257_s18  ;;  %1671 = vrot.lane.b32.xlu1 %v3900_v28, %s3256_s17 }
 0x35b   : > { %v1594_v40 = vpop.permute.xlu0 %1593  ;;  %v1530_v39 = vpop.permute.xlu1 %1529 }
 0x35d   : > { %1735 = vrot.lane.b32.xlu0 %v3900_v28, %s3257_s18  ;;  %1733 = vrot.lane.b32.xlu1 %v3836_v30, %s3257_s18 }
 0x35f   : > { %v1658_v1 = vpop.permute.xlu0 %1657  ;;  %v1722_v37 = vpop.permute.xlu1 %1721 }
 0x363   : > { %v1346_v8 = vpop.permute.xlu0 %1345  ;;  %v1282_v16 = vpop.permute.xlu1 %1281 }
 0x364   : > { %v1353_v26 = vsel %vm4678_vm2, %v1338_v43, %v1346_v8  ;;  %v1357_v49 = vsel %vm4678_vm2, %v1346_v8, %v1338_v43  ;;  %v1289_v44 = vsel %vm4680_vm7, %v1274_v42, %v1282_v16  ;;  %v1293_v45 = vsel %vm4680_vm7, %v1282_v16, %v1274_v42 }
 0x365   : > { %v1361_v24 = vsel %vm4676_vm3, %v1357_v49, 0.0  ;;  %v1297_v25 = vsel %vm3399_vm8, %v1293_v45, 0.0  ;;  %v1298_v7 = vsel %vm3403_vm9, %v1289_v44, 0.0  ;;  %v1265_v8 = vmul.f32 %v3690_v63, %v3700_v34  ;;  %vm4718_vm3 = vmmov %vm4717_vm11 }
 0x366   : > { %v1321_v43 = vmul.f32 %v3762_v60, %v1297_v25  ;;  %v1322_v54 = vmul.f32 %v3762_v60, %v1298_v7  ;;  %v1385_v16 = vmul.f32 %v3712_v46, %v1361_v24  ;;  %v1386_v42 = vmul.f32 %v3712_v46, %v1353_v26 }
 0x367   : > { %v1474_v49 = vpop.permute.xlu0 %1473  ;;  %v1410_v5 = vpop.permute.xlu1 %1409 }
 0x368   : > { %v1329_v45 = vadd.f32 %v1321_v43, %v1265_v8  ;;  %v1330_v14 = vadd.f32 %v1322_v54, %v1266_v21  ;;  %v1481_v44 = vsel %vm4677_vm12, %v1466_v50, %v1474_v49  ;;  %v1485_v53 = vsel %vm4677_vm12, %v1474_v49, %v1466_v50 }
 0x369   : > { %v1417_v63 = vsel %vm4717_vm11, %v1402_v56, %v1410_v5  ;;  %v1421_v34 = vsel %vm4718_vm3, %v1410_v5, %v1402_v56  ;;  %v1489_v26 = vsel %vm3377_vm6, %v1485_v53, 0.0  ;;  %v1490_v46 = vsel %vm3403_vm9, %v1481_v44, 0.0 }
 0x36a   : > { %v1394_v60 = vadd.f32 %v1386_v42, %v1330_v14  ;;  %v1393_v7 = vadd.f32 %v1385_v16, %v1329_v45  ;;  %v1425_v54 = vsel %vm3431_vm13, %v1421_v34, 0.0  ;;  %v1426_v21 = vsel %vm3373_vm5, %v1417_v63, 0.0 }
 0x36b   : > { %v1602_v25 = vpop.permute.xlu0 %1601  ;;  %v1538_v24 = vpop.permute.xlu1 %1537  ;;  %v1449_v50 = vmul.f32 %v3782_v11, %v1425_v54  ;;  %v1450_v5 = vmul.f32 %v3782_v11, %v1426_v21  ;;  %vm4719_vm3 = vcmp.lt.s32.totalorder %v3362_v9, 113  ;;  %vm4721_vm12 = vcmp.lt.s32.totalorder %v3362_v9, 127 }
 0x36c   : > { %v1609_v14 = vsel %vm4719_vm3, %v1594_v40, %v1602_v25  ;;  %vm4720_vm11 = vmmov %vm4719_vm3  ;;  %v1545_v16 = vsel %vm4721_vm12, %v1530_v39, %v1538_v24  ;;  %v1513_v11 = vmul.f32 %v3760_v59, %v1489_v26  ;;  %v1514_v49 = vmul.f32 %v3760_v59, %v1490_v46 }
 0x36d   : > { %v1613_v56 = vsel %vm4720_vm11, %v1602_v25, %v1594_v40  ;;  %v1617_v8 = vsel %vm3377_vm6, %v1609_v14, 0.0  ;;  %vm4722_vm2 = vmmov %vm4721_vm12  ;;  %v1457_v45 = vadd.f32 %v1449_v50, %v1393_v7  ;;  %v1458_v44 = vadd.f32 %v1450_v5, %v1394_v60 }
 0x36e   : > { %v1618_v43 = vsel %vm3487_vm1, %v1613_v56, 0.0  ;;  %v1549_v42 = vsel %vm4722_vm2, %v1538_v24, %v1530_v39  ;;  %v1641_v40 = vmul.f32 %v3813_v20, %v1617_v8  ;;  %v1553_v63 = vsel %vm3408_vm10, %v1545_v16, 0.0 }
 0x36f   : > { %v1642_v53 = vmul.f32 %v3813_v20, %v1618_v43  ;;  %v1554_v34 = vsel %vm3373_vm5, %v1549_v42, 0.0  ;;  %v1666_v54 = vpop.permute.xlu0 %1665  ;;  %v1730_v21 = vpop.permute.xlu1 %1729  ;;  %v1522_v25 = vadd.f32 %v1514_v49, %v1458_v44  ;;  %v1521_v39 = vadd.f32 %v1513_v11, %v1457_v45 }
 0x370   : > { %v1577_v26 = vmul.f32 %v3804_v23, %v1553_v63  ;;  %v1578_v59 = vmul.f32 %v3804_v23, %v1554_v34  ;;  %v1673_v60 = vsel %vm899_vm14, %v1658_v1, %v1666_v54  ;;  %v1677_v20 = vsel %vm899_vm14, %v1666_v54, %v1658_v1 }
 0x371   : > { %v1737_v7 = vsel %vm4679_vm15, %v1722_v37, %v1730_v21  ;;  %v1741_v46 = vsel %vm4679_vm15, %v1730_v21, %v1722_v37  ;;  %v1682_v5 = vsel %vm346_vm0, %v1677_v20, 0.0  ;;  %v1705_v14 = vmul.f32 %v3838_v31, %v1673_v60 }
 0x372   : > { %v1585_v24 = vadd.f32 %v1577_v26, %v1521_v39  ;;  %v1586_v50 = vadd.f32 %v1578_v59, %v1522_v25  ;;  %v1706_v23 = vmul.f32 %v3838_v31, %v1682_v5  ;;  %v1745_v56 = vsel %vm3408_vm10, %v1737_v7, 0.0 }
 0x373   : > { %v1746_v1 = vsel %vm3525_vm4, %v1741_v46, 0.0  ;;  %v1276_v8 = vpop.permute.xlu0 %1275  ;;  %v1340_v43 = vpop.permute.xlu1 %1339  ;;  %v1769_v49 = vmul.f32 %v3860_v47, %v1745_v56  ;;  %vm4723_vm2 = vcmp.lt.s32.totalorder %v3362_v9, 16  ;;  %vm4725_vm3 = vcmp.ge.s32.totalorder %v3362_v9, 16 }
 0x374   : > { %v1649_v16 = vadd.f32 %v1641_v40, %v1585_v24  ;;  %v1650_v42 = vadd.f32 %v1642_v53, %v1586_v50  ;;  %v1770_v45 = vmul.f32 %v3860_v47, %v1746_v1  ;;  %vm4724_vm12 = vmmov %vm4723_vm2  ;;  %v1267_v24 = vmul.f32 %v3696_v4, %v3754_v58 }
 0x375   : > { %v1268_v50 = vmul.f32 %v3696_v4, %v3784_v12  ;;  %vm4726_vm11 = vcmp.lt.s32.totalorder %v3362_v9, 15  ;;  %vm4738_vm15 = vcmp.lt.s32.totalorder %v3362_v9, 1 }
 0x376   : > { %v1713_v37 = vadd.f32 %v1705_v14, %v1649_v16  ;;  %v1714_v11 = vadd.f32 %v1706_v23, %v1650_v42 }
 0x377   : > { %v1404_v44 = vpop.permute.xlu0 %1403  ;;  %v1468_v63 = vpop.permute.xlu1 %1467 }
 0x378   : > { %v4006_v34 = vadd.f32 %v1769_v49, %v1713_v37  ;;  %v4008_v31 = vadd.f32 %v1770_v45, %v1714_v11 }
 0x37b   : > { %v1532_v54 = vpop.permute.xlu0 %1531  ;;  %v1596_v21 = vpop.permute.xlu1 %1595 }
 0x37f   : > { %v4010_v25 = vpop.permute.xlu0 %1723  ;;  %v1660_v39 = vpop.permute.xlu1 %1659 }
 0x383   : > { %v1284_v26 = vpop.permute.xlu0 %1283  ;;  %v1348_v40 = vpop.permute.xlu1 %1347 }
 0x384   : > { %v1290_v53 = vsel %vm4680_vm7, %v1276_v8, %v1284_v26  ;;  %v1294_v59 = vsel %vm4680_vm7, %v1284_v26, %v1276_v8  ;;  %v1354_v47 = vsel %vm4723_vm2, %v1340_v43, %v1348_v40  ;;  %v1358_v60 = vsel %vm4724_vm12, %v1348_v40, %v1340_v43  ;;  %vm4727_vm2 = vmmov %vm4726_vm11 }
 0x385   : > { %v1299_v20 = vsel %vm3399_vm8, %v1294_v59, 0.0  ;;  %v1300_v7 = vsel %vm3403_vm9, %v1290_v53, 0.0  ;;  %v1363_v46 = vsel %vm4725_vm3, %v1358_v60, 0.0  ;;  %v1388_v56 = vmul.f32 %v3870_v27, %v1354_v47 }
 0x386   : > { %v1323_v5 = vmul.f32 %v3698_v29, %v1299_v20  ;;  %v1324_v14 = vmul.f32 %v3698_v29, %v1300_v7  ;;  %v1387_v23 = vmul.f32 %v3870_v27, %v1363_v46  ;;  %vm4728_vm12 = vcmp.lt.s32.totalorder %v3362_v9, 1 }
 0x387   : > { %v1412_v1 = vpop.permute.xlu0 %1411  ;;  %v1476_v8 = vpop.permute.xlu1 %1475  ;;  %vm4729_vm3 = vmmov %vm4728_vm12 }
 0x388   : > { %v1331_v43 = vadd.f32 %v1323_v5, %v1267_v24  ;;  %v1332_v16 = vadd.f32 %v1324_v14, %v1268_v50  ;;  %v1418_v42 = vsel %vm4726_vm11, %v1404_v44, %v1412_v1  ;;  %v1422_v58 = vsel %vm4727_vm2, %v1412_v1, %v1404_v44 }
 0x389   : > { %v1427_v4 = vsel %vm3431_vm13, %v1422_v58, 0.0  ;;  %v1428_v29 = vsel %vm3373_vm5, %v1418_v42, 0.0  ;;  %v1482_v12 = vsel %vm4728_vm12, %v1468_v63, %v1476_v8  ;;  %v1486_v27 = vsel %vm4729_vm3, %v1476_v8, %v1468_v63 }
 0x38a   : > { %v1395_v37 = vadd.f32 %v1387_v23, %v1331_v43  ;;  %v1396_v11 = vadd.f32 %v1388_v56, %v1332_v16  ;;  %v1451_v49 = vmul.f32 %v3740_v55, %v1427_v4  ;;  %v1452_v45 = vmul.f32 %v3740_v55, %v1428_v29 }
 0x38b   : > { %v1491_v44 = vsel %vm3377_vm6, %v1486_v27, 0.0  ;;  %v1492_v26 = vsel %vm3403_vm9, %v1482_v12, 0.0  ;;  %v1540_v40 = vpop.permute.xlu0 %1539  ;;  %v1604_v53 = vpop.permute.xlu1 %1603  ;;  %vm4730_vm11 = vcmp.lt.s32.totalorder %v3362_v9, 127  ;;  %vm4732_vm12 = vcmp.lt.s32.totalorder %v3362_v9, 113 }
 0x38c   : > { %v1459_v59 = vadd.f32 %v1451_v49, %v1395_v37  ;;  %v1460_v47 = vadd.f32 %v1452_v45, %v1396_v11  ;;  %v1515_v60 = vmul.f32 %v3906_v2, %v1491_v44  ;;  %v1516_v63 = vmul.f32 %v3906_v2, %v1492_v26  ;;  %vm4731_vm2 = vmmov %vm4730_vm11 }
 0x38d   : > { %v1546_v20 = vsel %vm4730_vm11, %v1532_v54, %v1540_v40  ;;  %v1550_v55 = vsel %vm4731_vm2, %v1540_v40, %v1532_v54  ;;  %v1610_v7 = vsel %vm4732_vm12, %v1596_v21, %v1604_v53  ;;  %vm4733_vm3 = vmmov %vm4732_vm12  ;;  %vm4734_vm11 = vcmp.lt.s32.totalorder %v3362_v9, 16 }
 0x38e   : > { %v1614_v46 = vsel %vm4733_vm3, %v1604_v53, %v1596_v21  ;;  %v1523_v24 = vadd.f32 %v1515_v60, %v1459_v59  ;;  %v1524_v50 = vadd.f32 %v1516_v63, %v1460_v47  ;;  %v1555_v5 = vsel %vm3408_vm10, %v1546_v20, 0.0 }
 0x38f   : > { %v1556_v2 = vsel %vm3373_vm5, %v1550_v55, 0.0  ;;  %v1579_v14 = vmul.f32 %v3790_v13, %v1555_v5  ;;  %v1619_v54 = vsel %vm3377_vm6, %v1610_v7, 0.0  ;;  %v1620_v56 = vsel %vm3487_vm1, %v1614_v46, 0.0  ;;  %v1342_v1 = vpop.permute.xlu0 %1341  ;;  %v1668_v21 = vpop.permute.xlu1 %1667 }
 0x390   : > { %v1580_v23 = vmul.f32 %v3790_v13, %v1556_v2  ;;  %v1643_v8 = vmul.f32 %v3827_v6, %v1619_v54  ;;  %v1644_v43 = vmul.f32 %v3827_v6, %v1620_v56  ;;  %v1674_v16 = vsel %vm899_vm14, %v1660_v39, %v1668_v21 }
 0x391   : > { %v1678_v42 = vsel %vm899_vm14, %v1668_v21, %v1660_v39  ;;  %v1587_v58 = vadd.f32 %v1579_v14, %v1523_v24  ;;  %v1707_v29 = vmul.f32 %v3844_v36, %v1674_v16  ;;  %vm4735_vm2 = vcmp.lt.s32.totalorder %v3362_v9, 15 }
 0x392   : > { %v1588_v13 = vadd.f32 %v1580_v23, %v1524_v50  ;;  %v1684_v4 = vsel %vm346_vm0, %v1678_v42, 0.0  ;;  %vm4736_vm12 = vcmp.ge.s32.totalorder %v3362_v9, 16  ;;  %v1270_v42 = vmul.f32 %v3692_v3, %v3836_v30  ;;  %vm4737_vm3 = vmmov %vm4735_vm2 }
 0x393   : > { %v1708_v12 = vmul.f32 %v3844_v36, %v1684_v4  ;;  %v1651_v27 = vadd.f32 %v1643_v8, %v1587_v58  ;;  %v1470_v11 = vpop.permute.xlu0 %1469  ;;  %v1278_v49 = vpop.permute.xlu1 %1277  ;;  %v1269_v8 = vmul.f32 %v3692_v3, %v3807_v19 }
 0x394   : > { %v1652_v37 = vadd.f32 %v1644_v43, %v1588_v13 }
 0x395   : > { %v4082_v6 = vadd.f32 %v1707_v29, %v1651_v27 }
 0x396   : > { %v4084_v45 = vadd.f32 %v1708_v12, %v1652_v37 }
 0x397   : > { %v1598_v44 = vpop.permute.xlu0 %1597  ;;  %v1406_v26 = vpop.permute.xlu1 %1405 }
 0x39b   : > { %v1662_v39 = vpop.permute.xlu0 %1661  ;;  %v1534_v40 = vpop.permute.xlu1 %1533 }
 0x39f   : > { %v1350_v53 = vpop.permute.xlu0 %1349  ;;  %v4086_v59 = vpop.permute.xlu1 %1725 }
 0x3a0   : > { %v1359_v14 = vsel %vm4734_vm11, %v1350_v53, %v1342_v1 }
 0x3a1   : > { %v1365_v16 = vsel %vm4736_vm12, %v1359_v14, 0.0 }
 0x3a3   : > { %v1478_v47 = vpop.permute.xlu0 %1477  ;;  %v1286_v60 = vpop.permute.xlu1 %1285 }
 0x3a4   : > { %v1295_v7 = vsel %vm4680_vm7, %v1286_v60, %v1278_v49  ;;  %v1291_v46 = vsel %vm4680_vm7, %v1278_v49, %v1286_v60  ;;  %v1487_v13 = vsel %vm4738_vm15, %v1478_v47, %v1470_v11  ;;  %vm4739_vm7 = vmmov %vm4738_vm15 }
 0x3a5   : > { %v1301_v24 = vsel %vm3399_vm8, %v1295_v7, 0.0  ;;  %v1302_v2 = vsel %vm3403_vm9, %v1291_v46, 0.0  ;;  %v1483_v19 = vsel %vm4739_vm7, %v1470_v11, %v1478_v47  ;;  %vm4742_vm7 = vcmp.lt.s32.totalorder %v3362_v9, 127 }
 0x3a6   : > { %v1325_v23 = vmul.f32 %v3702_v41, %v1301_v24  ;;  %v1326_v54 = vmul.f32 %v3702_v41, %v1302_v2  ;;  %v1355_v41 = vsel %vm4734_vm11, %v1342_v1, %v1350_v53  ;;  %v1389_v1 = vmul.f32 %v3722_v51, %v1365_v16  ;;  %vm4743_vm15 = vmmov %vm4742_vm7 }
 0x3a7   : > { %v1606_v63 = vpop.permute.xlu0 %1605  ;;  %v1414_v20 = vpop.permute.xlu1 %1413  ;;  %v1390_v11 = vmul.f32 %v3722_v51, %v1355_v41  ;;  %v1494_v53 = vsel %vm3403_vm9, %v1483_v19, 0.0 }
 0x3a8   : > { %v1423_v43 = vsel %vm4735_vm2, %v1414_v20, %v1406_v26  ;;  %v1419_v58 = vsel %vm4737_vm3, %v1406_v26, %v1414_v20  ;;  %v1333_v4 = vadd.f32 %v1325_v23, %v1269_v8  ;;  %v1334_v29 = vadd.f32 %v1326_v54, %v1270_v42 }
 0x3a9   : > { %vm4740_vm2 = vcmp.lt.s32.totalorder %v3362_v9, 113  ;;  %v1429_v3 = vsel %vm3431_vm13, %v1423_v43, 0.0  ;;  %v1430_v49 = vsel %vm3373_vm5, %v1419_v58, 0.0  ;;  %v1493_v26 = vsel %vm3377_vm6, %v1487_v13, 0.0 }
 0x3aa   : > { %v1611_v12 = vsel %vm4740_vm2, %v1598_v44, %v1606_v63  ;;  %vm4741_vm12 = vmmov %vm4740_vm2  ;;  %v1397_v60 = vadd.f32 %v1389_v1, %v1333_v4  ;;  %v1453_v20 = vmul.f32 %v3746_v15, %v1429_v3  ;;  %v1454_v7 = vmul.f32 %v3746_v15, %v1430_v49 }
 0x3ab   : > { %v1670_v36 = vpop.permute.xlu0 %1669  ;;  %v1542_v55 = vpop.permute.xlu1 %1541  ;;  %v1615_v37 = vsel %vm4741_vm12, %v1606_v63, %v1598_v44  ;;  %v1621_v47 = vsel %vm3377_vm6, %v1611_v12, 0.0  ;;  %v1398_v63 = vadd.f32 %v1390_v11, %v1334_v29  ;;  %v1517_v54 = vmul.f32 %v3768_v61, %v1493_v26  ;;  %v4751_v26 = vld [vmem:[#allocation7_spill] sm:$0xff] }
 0x3ac   : > { %v1622_v44 = vsel %vm3487_vm1, %v1615_v37, 0.0  ;;  %v1679_v51 = vsel %vm899_vm14, %v1670_v36, %v1662_v39  ;;  %v1675_v2 = vsel %vm899_vm14, %v1662_v39, %v1670_v36  ;;  %v1547_v14 = vsel %vm4742_vm7, %v1534_v40, %v1542_v55  ;;  %v4750_v37 = vld [vmem:[#allocation8_spill] sm:$0xff] }
 0x3ad   : > { %v1551_v23 = vsel %vm4743_vm15, %v1542_v55, %v1534_v40  ;;  %v1518_v15 = vmul.f32 %v3768_v61, %v1494_v53  ;;  %v1271_v8 = vmul.f32 %v3694_v33, %v3868_v48  ;;  %v1272_v43 = vmul.f32 %v3694_v33, %v3900_v28 }
 0x3ae   : > { %v4163_v16 = vmul.f32 %v3821_v62, %v1621_v47  ;;  %v4166_v39 = vmul.f32 %v3821_v62, %v1622_v44  ;;  %v1461_v36 = vadd.f32 %v1453_v20, %v1397_v60  ;;  %v1686_v40 = vsel %vm346_vm0, %v1679_v51, 0.0 }
 0x3af   : > { %v1280_v50 = vpop.permute.xlu0 %1279  ;;  %v1344_v5 = vpop.permute.xlu1 %1343  ;;  %v1462_v55 = vadd.f32 %v1454_v7, %v1398_v63  ;;  %v4171_v42 = vmul.f32 %v3852_v18, %v1675_v2  ;;  %v1557_v61 = vsel %vm3408_vm10, %v1547_v14, 0.0  ;;  %v1558_v28 = vsel %vm3373_vm5, %v1551_v23, 0.0 }
 0x3b0   : > { %vm4744_vm3 = vcmp.lt.s32.totalorder %v3362_v9, 17  ;;  %vm4746_vm2 = vcmp.lt.s32.totalorder %v3362_v9, 16  ;;  %v4186_v4 = vmul.f32 %v3852_v18, %v1686_v40  ;;  %vm4748_vm7 = vcmp.ge.s32.totalorder %v3362_v9, 16 }
 0x3b1   : > { %vm4745_vm11 = vmmov %vm4744_vm3  ;;  %v1525_v3 = vadd.f32 %v1517_v54, %v1461_v36  ;;  %vm4752_vm15 = vcmp.lt.s32.totalorder %v3362_v9, 15 }
 0x3b2   : > { %vm4747_vm12 = vmmov %vm4746_vm2 }
 0x3b3   : > { %v4100_v56 = vpop.permute.xlu0 %1407  ;;  %v4102_v21 = vpop.permute.xlu1 %1471 }
 0x3b7   : > { %v4124_v30 = vpop.permute.xlu0 %1535  ;;  %v4126_v27 = vpop.permute.xlu1 %1599 }
 0x3bb   : > { %v4146_v46 = vpop.permute.xlu0 %1727  ;;  %v4148_v24 = vpop.permute.xlu1 %1663 }
 0x3bf   : > { %v1288_v33 = vpop.permute.xlu0 %1287  ;;  %v1352_v48 = vpop.permute.xlu1 %1351 }
 0x3c0   : > { %v1292_v62 = vsel %vm4744_vm3, %v1280_v50, %v1288_v33  ;;  %v1296_v58 = vsel %vm4745_vm11, %v1288_v33, %v1280_v50  ;;  %v1356_v41 = vsel %vm4746_vm2, %v1344_v5, %v1352_v48  ;;  %v1360_v13 = vsel %vm4747_vm12, %v1352_v48, %v1344_v5  ;;  %v4749_v50 = vld [vmem:[#allocation11_spill] sm:$0xff]  ;;  %vm4753_vm3 = vmmov %vm4752_vm15 }
 0x3c1   : > { %v1303_v19 = vsel %vm3399_vm8, %v1296_v58, 0.0  ;;  %v1304_v29 = vsel %vm3403_vm9, %v1292_v62, 0.0  ;;  %v1367_v12 = vsel %vm4748_vm7, %v1360_v13, 0.0  ;;  %v1581_v1 = vmul.f32 %v4749_v50, %v1557_v61 }
 0x3c2   : > { %v1327_v49 = vmul.f32 %v4750_v37, %v1303_v19  ;;  %v1328_v11 = vmul.f32 %v4750_v37, %v1304_v29  ;;  %v1526_v5 = vadd.f32 %v1518_v15, %v1462_v55  ;;  %v1582_v18 = vmul.f32 %v4749_v50, %v1558_v28 }
 0x3c3   : > { %v1391_v53 = vmul.f32 %v4751_v26, %v1367_v12  ;;  %v1392_v47 = vmul.f32 %v4751_v26, %v1356_v41  ;;  %v1416_v60 = vpop.permute.xlu0 %1415  ;;  %v1480_v20 = vpop.permute.xlu1 %1479  ;;  %vm4754_vm11 = vcmp.lt.s32.totalorder %v3362_v9, 1  ;;  %v1589_v40 = vadd.f32 %v1581_v1, %v1525_v3  ;;  %v4757_v41 = vld [vmem:[#allocation9_spill] sm:$0xff] }
 0x3c4   : > { %v1335_v44 = vadd.f32 %v1327_v49, %v1271_v8  ;;  %v1336_v63 = vadd.f32 %v1328_v11, %v1272_v43  ;;  %v1420_v7 = vsel %vm4752_vm15, %v4100_v56, %v1416_v60  ;;  %v1424_v51 = vsel %vm4753_vm3, %v1416_v60, %v4100_v56  ;;  %vm4755_vm2 = vmmov %vm4754_vm11  ;;  %v4756_v43 = vld [vmem:[#allocation10_spill] sm:$0xff]  ;;  %v4762_v11 = vld [vmem:[#allocation12_spill] sm:$0xff] }
 0x3c5   : > { %v1431_v2 = vsel %vm3431_vm13, %v1424_v51, 0.0  ;;  %v1432_v14 = vsel %vm3373_vm5, %v1420_v7, 0.0  ;;  %v1484_v23 = vsel %vm4754_vm11, %v4102_v21, %v1480_v20  ;;  %v1488_v54 = vsel %vm4755_vm2, %v1480_v20, %v4102_v21 }
 0x3c6   : > { %v1399_v15 = vadd.f32 %v1391_v53, %v1335_v44  ;;  %v1400_v8 = vadd.f32 %v1392_v47, %v1336_v63  ;;  %v1455_v36 = vmul.f32 %v4756_v43, %v1431_v2  ;;  %v1456_v56 = vmul.f32 %v4756_v43, %v1432_v14  ;;  %v4763_v47 = vld [vmem:[#allocation13_spill] sm:$0xff] }
 0x3c7   : > { %v1590_v55 = vadd.f32 %v1582_v18, %v1526_v5  ;;  %v1495_v61 = vsel %vm3377_vm6, %v1488_v54, 0.0  ;;  %v1496_v28 = vsel %vm3403_vm9, %v1484_v23, 0.0  ;;  %v1544_v33 = vpop.permute.xlu0 %1543  ;;  %v1608_v48 = vpop.permute.xlu1 %1607  ;;  %vm4758_vm12 = vcmp.lt.s32.totalorder %v3362_v9, 127  ;;  %v4766_v23 = vld [vmem:[#allocation15_spill] sm:$0xff] }
 0x3c8   : > { %v1463_v62 = vadd.f32 %v1455_v36, %v1399_v15  ;;  %v1464_v58 = vadd.f32 %v1456_v56, %v1400_v8  ;;  %v1519_v21 = vmul.f32 %v4757_v41, %v1495_v61  ;;  %v1520_v13 = vmul.f32 %v4757_v41, %v1496_v28  ;;  %vm4759_vm7 = vmmov %vm4758_vm12  ;;  %v4767_v61 = vld [vmem:[#allocation14_spill] sm:$0xff] }
 0x3c9   : > { %v1548_v19 = vsel %vm4758_vm12, %v4124_v30, %v1544_v33  ;;  %v1552_v29 = vsel %vm4759_vm7, %v1544_v33, %v4124_v30  ;;  %vm4760_vm15 = vcmp.lt.s32.totalorder %v3362_v9, 113  ;;  %vm4764_vm11 = vcmp.lt.s32.totalorder %v3362_v9, 111 }
 0x3ca   : > { %v1612_v12 = vsel %vm4760_vm15, %v4126_v27, %v1608_v48  ;;  %vm4761_vm3 = vmmov %vm4760_vm15  ;;  %v1527_v50 = vadd.f32 %v1519_v21, %v1463_v62  ;;  %v1528_v1 = vadd.f32 %v1520_v13, %v1464_v58  ;;  %v1559_v37 = vsel %vm3408_vm10, %v1548_v19, 0.0 }
 0x3cb   : > { %v1616_v3 = vsel %vm4761_vm3, %v1608_v48, %v4126_v27  ;;  %v1560_v49 = vsel %vm3373_vm5, %v1552_v29, 0.0  ;;  %v1583_v5 = vmul.f32 %v4762_v11, %v1559_v37  ;;  %v1623_v18 = vsel %vm3377_vm6, %v1612_v12, 0.0  ;;  %v1732_v53 = vpop.permute.xlu0 %1731  ;;  %v1672_v27 = vpop.permute.xlu1 %1671  ;;  %vm4765_vm2 = vmmov %vm4764_vm11  ;;  %v4771_v12 = vld [vmem:[#allocation18_spill] sm:$0xff]  ;;  %v4773_v37 = vld [vmem:[#allocation16_spill] sm:$0xff] }
 0x3cc   : > { %v1584_v30 = vmul.f32 %v4762_v11, %v1560_v49  ;;  %v1624_v26 = vsel %vm3487_vm1, %v1616_v3, 0.0  ;;  %v1647_v60 = vmul.f32 %v4763_v47, %v1623_v18  ;;  %v1738_v44 = vsel %vm4764_vm11, %v4010_v25, %v1732_v53  ;;  %vm4768_vm12 = vmmov %vm4765_vm2 }
 0x3cd   : > { %v1648_v20 = vmul.f32 %v4763_v47, %v1624_v26  ;;  %v1742_v63 = vsel %vm4765_vm2, %v1732_v53, %v4010_v25  ;;  %v1591_v7 = vadd.f32 %v1583_v5, %v1527_v50  ;;  %v1747_v2 = vsel %vm3408_vm10, %v1738_v44, 0.0  ;;  %vm4769_vm7 = vmmov %vm4765_vm2  ;;  %v4774_v26 = vld [vmem:[#allocation20_spill] sm:$0xff]  ;;  %v4775_v47 = vld [vmem:[#allocation19_spill] sm:$0xff] }
 0x3ce   : > { %v1592_v51 = vadd.f32 %v1584_v30, %v1528_v1  ;;  %v1748_v14 = vsel %vm3525_vm4, %v1742_v63, 0.0  ;;  %v1771_v54 = vmul.f32 %v4766_v23, %v1747_v2  ;;  %v1676_v8 = vsel %vm899_vm14, %v4148_v24, %v1672_v27  ;;  %vm4770_vm15 = vmmov %vm4765_vm2  ;;  %v4776_v44 = vld [vmem:[#allocation17_spill] sm:$0xff] }
 0x3cf   : > { %v1772_v15 = vmul.f32 %v4766_v23, %v1748_v14  ;;  %v1680_v25 = vsel %vm899_vm14, %v1672_v27, %v4148_v24  ;;  %v1655_v43 = vadd.f32 %v1647_v60, %v1591_v7  ;;  %v1711_v28 = vmul.f32 %v4767_v61, %v1676_v8  ;;  %v1736_v33 = vpop.permute.xlu0 %1735  ;;  %v1734_v48 = vpop.permute.xlu1 %1733  ;;  %vm4772_vm3 = vmmov %vm4765_vm2  ;;  %v4777_v7 = vld [vmem:[#allocation21_spill] sm:$0xff] }
 0x3d0   : > { %v1656_v36 = vadd.f32 %v1648_v20, %v1592_v51  ;;  %v1688_v56 = vsel %vm346_vm0, %v1680_v25, 0.0  ;;  %v1653_v62 = vadd.f32 %v4163_v16, %v1589_v40  ;;  %v1654_v58 = vadd.f32 %v4166_v39, %v1590_v55 }
 0x3d1   : > { %v1712_v41 = vmul.f32 %v4767_v61, %v1688_v56  ;;  %v1740_v21 = vsel %vm4768_vm12, %v4146_v46, %v1736_v33  ;;  %v1779_v24 = vadd.f32 %v1771_v54, %v4082_v6  ;;  %v1744_v13 = vsel %vm4769_vm7, %v1736_v33, %v4146_v46 }
 0x3d2   : > { %v1751_v19 = vsel %vm3408_vm10, %v1740_v21, 0.0  ;;  %v1739_v16 = vsel %vm4770_vm15, %v4086_v59, %v1734_v48  ;;  %v1780_v39 = vadd.f32 %v1772_v15, %v4084_v45  ;;  %v1719_v40 = vadd.f32 %v1711_v28, %v1655_v43  ;;  %v3221_v43 = vld [vmem:[%s4636_s4] sm:$0xff]  }
 0x3d3   : > { %v1720_v55 = vadd.f32 %v1712_v41, %v1656_v36  ;;  %v1752_v29 = vsel %vm3525_vm4, %v1744_v13, 0.0  ;;  %v1775_v6 = vmul.f32 %v4771_v12, %v1751_v19  ;;  %v1743_v46 = vsel %vm4772_vm3, %v1734_v48, %v4086_v59  ;;  %v4318_v41 = vld [vmem:[%s4638_s6] sm:$0xff]  ;;  %v4324_v13 = vld [vmem:[%s4638_s6 + $0x8] sm:$0xff] }
 0x3d4   : > { %v1776_v3 = vmul.f32 %v4771_v12, %v1752_v29  ;;  %v1749_v50 = vsel %vm3408_vm10, %v1739_v16, 0.0  ;;  %v1717_v1 = vadd.f32 %v4171_v42, %v1653_v62  ;;  %v1750_v45 = vsel %vm3525_vm4, %v1743_v46, 0.0  ;;  %v3238_v46 = vld [vmem:[%s4639_s7 + $0x8] sm:$0xff] }
 0x3d5   : > { %v1773_v49 = vmul.f32 %v4773_v37, %v1749_v50  ;;  %v1783_v11 = vadd.f32 %v1775_v6, %v1719_v40  ;;  %v1718_v30 = vadd.f32 %v4186_v4, %v1654_v58  ;;  %v1774_v18 = vmul.f32 %v4773_v37, %v1750_v45  ;;  %v3239_v50 = vld [vmem:[%s4639_s7 + $0x18] sm:$0xff] }
 0x3d6   : > { %v1784_v5 = vadd.f32 %v1776_v3, %v1720_v55  ;;  %v1803_v53 = vadd.f32 %v4774_v26, %v1779_v24  ;;  %v1804_v59 = vadd.f32 %v4774_v26, %v1780_v39  ;;  %v1801_v63 = vadd.f32 %v4776_v44, %v4006_v34  ;;  %v3236_v55 = vld [vmem:[%s4639_s7 + $0x10] sm:$0xff]  ;;  %v3237_v3 = vld [vmem:[%s4639_s7] sm:$0xff]  ;;  %v3222_v26 = vld [vmem:[%s4636_s4 + $0x8] sm:$0xff]  }
 0x3d7   : > { %v1781_v27 = vadd.f32 %v1773_v49, %v1717_v1  ;;  %v1807_v60 = vadd.f32 %v4775_v47, %v1783_v11  ;;  %v1782_v20 = vadd.f32 %v1774_v18, %v1718_v30  ;;  %v1802_v4 = vadd.f32 %v4776_v44, %v4008_v31 }
 0x3d8   : > { %v1808_v42 = vadd.f32 %v4775_v47, %v1784_v5  ;;  %vm4778_vm11 = vcmask 130048   ;;  %v4779_v34 = vmov 0   ;;  %v4780_v16 = vmov 7  }
 0x3d9   : > { %v1805_v51 = vadd.f32 %v4777_v7, %v1781_v27  ;;  %v1806_v2 = vadd.f32 %v4777_v7, %v1782_v20  ;;  %v1811_v23 = vmul.f32 %v1807_v60, %v1803_v53  ;;  %v4781_v39 = vmov 4   ;;  %vm4786_vm2 = vmmov %vm4778_vm11 }
 0x3da   : > { %v1812_v14 = vmul.f32 %v1808_v42, %v1804_v59  ;;  %v4782_v40 = vmov 2   ;;  %v4783_v29 = vmov 8   ;;  %v4784_v12 = vmov 5   ;;  %vm4791_vm12 = vmmov %vm4786_vm2 }
 0x3db   : > { %v1809_v54 = vmul.f32 %v1805_v51, %v1801_v63  ;;  %v1810_v15 = vmul.f32 %v1806_v2, %v1802_v4  ;;  %v4785_v6 = vmov 6   ;;  %vm4792_vm7 = vmmov %vm4786_vm2  ;;  %vm4794_vm3 = vcmp.lt.s32.totalorder %v3362_v9, 16 }
 0x3dc   : > { %vm4793_vm15 = vmmov %vm4786_vm2 }
 0x3dd   : > { %v1815_v8 = vpack.c.bf16 %v1811_v23, %v1809_v54  ;;  %v1816_v25 = vpack.c.bf16 %v1812_v14, %v1810_v15 }
 0x3df   : > { %1825 = vmatprep.subr.bf16.mxu1 %v1816_v25  ;;  %v4788_v25 = vld [vmem:[#allocation4_spill] sm:$0xff] }
 0x3e0   : > { %1826 = vmatpush1.bf16.msra.mxu1 %v1815_v8 }
 0x3e3   : > { %2912 = vmatmul.mubr.msk.bf16.vlgmr.msra.gmra.mrb[8].mxu1 %vm4778_vm11, %v3221_v43  ;;  %vm4795_vm11 = vmmov %vm4794_vm3 }
 0x3e4   : > { %1946 = vmatprep.mubr.bf16.mxu1 %v4779_v34 }
 0x4b6   : > { %v1859_v36 = vpop.f32.mrb[8].mxu1 }
 0x4b7   : > { %v1861_v31 = vpop.f32.mrb[9].mxu1 }
 0x4b8   : > { %v1868_v56 = vadd.f32 %v1861_v31, %v1859_v36  ;;  %v1863_v61 = vpop.f32.mrb[10].mxu1  ;;  %v4789_v36 = vld [vmem:[#allocation5_spill] sm:$0xff] }
 0x4b9   : > { %v1865_v28 = vpop.f32.mrb[11].mxu1 }
 0x4ba   : > { %v1871_v33 = vadd.f32 %v1865_v28, %v1863_v61  ;;  %1869 = vadd.xlane.f32.xlu1 %v1868_v56  ;;  %v4790_v56 = vld [vmem:[#allocation6_spill] sm:$0xff] }
 0x4bc   : > { %1872 = vadd.xlane.f32.xlu0 %v1871_v33 }
 0x547   : > { %v1870_v48 = vpop.xlane.xlu1 %1869 }
 0x548   : > { %v1875_v62 = vmul.f32 0.00390625, %v1870_v48 }
 0x549   : > { %v1873_v58 = vpop.xlane.xlu0 %1872 }
 0x54a   : > { %v1877_v21 = vadd.f32 %v4318_v41, %v1875_v62  ;;  %v1876_v24 = vmul.f32 0.00390625, %v1873_v58 }
 0x54c   : > { %v1878_v19 = vadd.f32 %v4324_v13, %v1876_v24  ;;  %1884 = vperm.xlu0 %3116, %v1877_v21  }
 0x54e   : > { %1889 = vperm.xlu1 %3117, %v1878_v19  }
 0x550   : > { %3122 = vset.pattern.permute.xlu0 %v4780_v16 }
 0x551   : > { %2038 = vperm.xlu0 %3122, %v4324_v13  }
 0x552   : > { %3118 = vset.pattern.permute.xlu1 %v4781_v39 }
 0x553   : > { %1899 = vperm.xlu1 %3118, %v4318_v41  }
 0x555   : > { %3124 = vset.pattern.permute.xlu0 %v4782_v40 }
 0x556   : > { %2061 = vperm.xlu0 %3124, %v3236_v55  }
 0x557   : > { %1903 = vperm.xlu1 %3118, %v4324_v13  }
 0x55a   : > { %3126 = vset.pattern.permute.xlu0 %v4783_v29 }
 0x55b   : > { %3119 = vset.pattern.permute.xlu1 %v4784_v12  ;;  %2151 = vperm.xlu0 %3126, %v4324_v13  }
 0x55c   : > { %1958 = vperm.xlu1 %3119, %v4318_v41  }
 0x560   : > { %1962 = vperm.xlu1 %3119, %v4324_v13  }
 0x564   : > { %3120 = vset.pattern.permute.xlu1 %v4785_v6 }
 0x565   : > { %2022 = vperm.xlu1 %3120, %v4318_v41  }
 0x569   : > { %2026 = vperm.xlu1 %3120, %v4324_v13  }
 0x56d   : > { %3121 = vset.pattern.permute.xlu1 %v4780_v16 }
 0x56e   : > { %2034 = vperm.xlu1 %3121, %v4318_v41  }
 0x572   : > { %3123 = vset.pattern.permute.xlu1 %v4782_v40 }
 0x573   : > { %2053 = vperm.xlu1 %3123, %v3237_v3  }
 0x577   : > { %2057 = vperm.xlu1 %3123, %v3238_v46  }
 0x57b   : > { %2065 = vperm.xlu1 %3123, %v3239_v50  }
 0x57f   : > { %3125 = vset.pattern.permute.xlu1 %v4783_v29 }
 0x580   : > { %2147 = vperm.xlu1 %3125, %v4318_v41  }
 0x5cb   : > { %v1885_v1 = vpop.permute.xlu0 %1884 }
 0x5cc   : > { %v1892_v37 = vmul.f32 %v1885_v1, %v1809_v54  ;;  %v1893_v49 = vmul.f32 %v1885_v1, %v1810_v15  ;;  %v4787_v15 = vld [vmem:[#allocation3_spill] sm:$0xff] }
 0x5cd   : > { %v1890_v45 = vpop.permute.xlu1 %1889 }
 0x5ce   : > { %v1894_v11 = vmul.f32 %v1890_v45, %v1811_v23  ;;  %v1895_v5 = vmul.f32 %v1890_v45, %v1812_v14 }
 0x5d0   : > { %v1896_v30 = vpack.c.bf16 %v1894_v11, %v1892_v37  ;;  %v1897_v18 = vpack.c.bf16 %v1895_v5, %v1893_v49 }
 0x5d2   : > { %1914 = vmatprep.subr.bf16.mxu1 %v1897_v18  ;;  %v1900_v53 = vpop.permute.xlu1 %1899 }
 0x5d3   : > { %1915 = vmatpush1.bf16.msra.mxu1 %v1896_v30 }
 0x5d6   : > { %2916 = vmatmul.mubr.msk.bf16.vlgmr.msra.gmra.mrb[12].mxu1 %vm4786_vm2, %v3222_v26  ;;  %v1904_v27 = vpop.permute.xlu1 %1903  ;;  %vm4796_vm2 = vmmov %vm4794_vm3 }
 0x5d7   : > { %2116 = vmatprep.mubr.bf16.mxu1 %v4779_v34 }
 0x5db   : > { %v1959_v59 = vpop.permute.xlu1 %1958 }
 0x5df   : > { %v1963_v4 = vpop.permute.xlu1 %1962 }
 0x6a9   : > { %v1948_v47 = vpop.f32.mrb[12].mxu1 }
 0x6aa   : > { %v1949_v60 = vadd.f32 %v1948_v47, %v1900_v53  ;;  %v1950_v42 = vpop.f32.mrb[13].mxu1 }
 0x6ab   : > { %v1951_v20 = vadd.f32 %v1950_v42, %v1900_v53  ;;  %v1952_v44 = vpop.f32.mrb[14].mxu1 }
 0x6ac   : > { %v1965_v63 = vmul.f32 %v1959_v59, %v1949_v60  ;;  %v1953_v7 = vadd.f32 %v1952_v44, %v1904_v27  ;;  %v1954_v51 = vpop.f32.mrb[15].mxu1 }
 0x6ad   : > { %v1966_v2 = vmul.f32 %v1959_v59, %v1951_v20  ;;  %v1955_v14 = vadd.f32 %v1954_v51, %v1904_v27 }
 0x6ae   : > { %v1967_v23 = vmul.f32 %v1963_v4, %v1953_v7  ;;  %v4364_v8 = vadd.f32 %v1965_v63, %v4787_v15 }
 0x6af   : > { %v1968_v54 = vmul.f32 %v1963_v4, %v1955_v14  ;;  %v4370_v31 = vadd.f32 %v1966_v2, %v4789_v36 }
 0x6b0   : > { %v4367_v43 = vadd.f32 %v1967_v23, %v4788_v25 }
 0x6b1   : > { %v4373_v61 = vadd.f32 %v1968_v54, %v4790_v56  ;;  %v2023_v54 = vpop.permute.xlu1 %2022 }
 0x6b2   : > { %v1973_v28 = vadd.f32 %v4367_v43, %v4364_v8 }
 0x6b3   : > { %v1980_v33 = vadd.f32 %v4373_v61, %v4370_v31 }
 0x6b4   : > { %v1974_v48 = vrot.slane %v1973_v28, 4 }
 0x6b5   : > { %v1981_v62 = vrot.slane %v1980_v33, 4  ;;  %v2027_v15 = vpop.permute.xlu1 %2026 }
 0x6b6   : > { %v1975_v58 = vadd.f32 %v1974_v48, %v1973_v28 }
 0x6b7   : > { %v1982_v21 = vadd.f32 %v1981_v62, %v1980_v33 }
 0x6b8   : > { %v1976_v24 = vrot.slane %v1975_v58, 2 }
 0x6b9   : > { %v1983_v19 = vrot.slane %v1982_v21, 2  ;;  %v2035_v62 = vpop.permute.xlu1 %2034 }
 0x6ba   : > { %v1977_v16 = vadd.f32 %v1976_v24, %v1975_v58  ;;  %v2039_v58 = vpop.permute.xlu0 %2038 }
 0x6bb   : > { %v1984_v39 = vadd.f32 %v1983_v19, %v1982_v21 }
 0x6bc   : > { %v1978_v40 = vrot.slane %v1977_v16, 1 }
 0x6bd   : > { %v1985_v55 = vrot.slane %v1984_v39, 1 }
 0x6be   : > { %v1979_v29 = vadd.f32 %v1978_v40, %v1977_v16 }
 0x6bf   : > { %v1986_v12 = vadd.f32 %v1985_v55, %v1984_v39 }
 0x6c0   : > { %v1987_v6 = vmul.f32 0.0625, %v1979_v29 }
 0x6c1   : > { %v1988_v3 = vmul.f32 0.0625, %v1986_v12 }
 0x6c2   : > { %v1991_v46 = vsub.f32 %v4367_v43, %v1987_v6  ;;  %v1989_v50 = vsub.f32 %v4364_v8, %v1987_v6 }
 0x6c3   : > { %v1992_v1 = vsub.f32 %v4373_v61, %v1988_v3  ;;  %v1990_v45 = vsub.f32 %v4370_v31, %v1988_v3  ;;  %v3223_v3 = vld [vmem:[%s4637_s5 + $0x10] sm:$0xff]  }
 0x6c4   : > { %v1995_v37 = vmul.f32 %v1991_v46, %v1991_v46  ;;  %v1993_v49 = vmul.f32 %v1989_v50, %v1989_v50 }
 0x6c5   : > { %v1996_v11 = vmul.f32 %v1992_v1, %v1992_v1  ;;  %v1994_v5 = vmul.f32 %v1990_v45, %v1990_v45 }
 0x6c6   : > { %v1997_v30 = vadd.f32 %v1995_v37, %v1993_v49 }
 0x6c7   : > { %v2004_v18 = vadd.f32 %v1996_v11, %v1994_v5 }
 0x6c8   : > { %v1998_v26 = vrot.slane %v1997_v30, 4 }
 0x6c9   : > { %v2005_v53 = vrot.slane %v2004_v18, 4 }
 0x6ca   : > { %v1999_v27 = vadd.f32 %v1998_v26, %v1997_v30  ;;  %v2062_v30 = vpop.permute.xlu0 %2061 }
 0x6cb   : > { %v2006_v59 = vadd.f32 %v2005_v53, %v2004_v18 }
 0x6cc   : > { %v2000_v47 = vrot.slane %v1999_v27, 2 }
 0x6cd   : > { %v2007_v60 = vrot.slane %v2006_v59, 2 }
 0x6ce   : > { %v2001_v42 = vadd.f32 %v2000_v47, %v1999_v27 }
 0x6cf   : > { %v2008_v20 = vadd.f32 %v2007_v60, %v2006_v59 }
 0x6d0   : > { %v2002_v44 = vrot.slane %v2001_v42, 1 }
 0x6d1   : > { %v2009_v63 = vrot.slane %v2008_v20, 1 }
 0x6d2   : > { %v2003_v7 = vadd.f32 %v2002_v44, %v2001_v42 }
 0x6d3   : > { %v2010_v51 = vadd.f32 %v2009_v63, %v2008_v20 }
 0x6d4   : > { %v2011_v4 = vmul.f32 0.0625, %v2003_v7 }
 0x6d5   : > { %v2012_v2 = vmul.f32 0.0625, %v2010_v51 }
 0x6d6   : > { %v2013_v14 = vadd.f32 1e-06, %v2011_v4 }
 0x6d7   : > { %v2014_v23 = vadd.f32 1e-06, %v2012_v2 }
 0x6d8   : > { %3230 = vrsqrt.f32 %v2013_v14 }
 0x6d9   : > { %3232 = vrsqrt.f32 %v2014_v23 }
 0x6e2   : > { %v3231_v25 = vpop.eup %3230 }
 0x6e3   : > { %v3233_v36 = vpop.eup %3232  ;;  %v2017_v56 = vmul.f32 %v3231_v25, %v1989_v50  ;;  %v2019_v28 = vmul.f32 %v3231_v25, %v1991_v46  ;;  %v3224_v46 = vld [vmem:[%s4637_s5 + $0x18] sm:$0xff]   ;;  %v3267_v50 = vmov 9  }
 0x6e4   : > { %v2018_v33 = vmul.f32 %v3233_v36, %v1990_v45  ;;  %v2020_v48 = vmul.f32 %v3233_v36, %v1992_v1  ;;  %3127 = vset.pattern.permute.xlu1 %v3267_v50  ;;  %v2054_v1 = vpop.permute.xlu1 %2053 }
 0x6e5   : > { %v2029_v21 = vmul.f32 %v2023_v54, %v2017_v56  ;;  %v2031_v24 = vmul.f32 %v2027_v15, %v2019_v28  ;;  %2206 = vperm.xlu1 %3127, %v4318_v41   ;;  %v2152_v56 = vpop.permute.xlu0 %2151 }
 0x6e6   : > { %v2030_v19 = vmul.f32 %v2023_v54, %v2018_v33  ;;  %v2032_v16 = vmul.f32 %v2027_v15, %v2020_v48  ;;  %v3225_v54 = vld [vmem:[%s4636_s4 + $0x10] sm:$0xff]  }
 0x6e7   : > { %v2041_v39 = vadd.f32 %v2035_v62, %v2029_v21  ;;  %v2043_v40 = vadd.f32 %v2039_v58, %v2031_v24 }
 0x6e8   : > { %v2042_v55 = vadd.f32 %v2035_v62, %v2030_v19  ;;  %v2044_v29 = vadd.f32 %v2039_v58, %v2032_v16  ;;  %v2058_v5 = vpop.permute.xlu1 %2057 }
 0x6e9   : > { %v2050_v6 = vpack.c.bf16 %v2043_v40, %v2041_v39  ;;  %2210 = vperm.xlu1 %3127, %v4324_v13  }
 0x6ea   : > { %v2051_v12 = vpack.c.bf16 %v2044_v29, %v2042_v55 }
 0x6ec   : > { %2084 = vmatprep.subr.bf16.mxu1 %v2051_v12  ;;  %v2066_v47 = vpop.permute.xlu1 %2065 }
 0x6ed   : > { %2085 = vmatpush1.bf16.msra.mxu1 %v2050_v6 }
 0x6f0   : > { %2923 = vmatmul.mubr.msk.bf16.vlgmr.msra.gmra.mrb[16].mxu1 %vm4791_vm12, %v3223_v3  ;;  %v2148_v15 = vpop.permute.xlu1 %2147  ;;  %vm4797_vm12 = vmmov %vm4796_vm2 }
 0x6f1   : > { %2126 = vmatprep.mubr.bf16.mxu1 %v4779_v34 }
 0x6f8   : > { %2924 = vmatmul.mubr.msk.bf16.gmra.mrb[20].mxu1 %vm4792_vm7, %v3224_v46  ;;  %vm4798_vm7 = vcmp.ge.s32.totalorder %v3362_v9, 16 }
 0x6f9   : > { %2194 = vmatprep.mubr.bf16.mxu1 %v4779_v34 }
 0x764   : > { %v2207_v25 = vpop.permute.xlu1 %2206 }
 0x768   : > { %v2211_v39 = vpop.permute.xlu1 %2210 }
 0x7c3   : > { %v2118_v45 = vpop.f32.mrb[16].mxu1 }
 0x7c4   : > { %v2120_v37 = vpop.f32.mrb[17].mxu1  ;;  %v2119_v26 = vadd.f32 %v2118_v45, %v2054_v1 }
 0x7c5   : > { %v2122_v49 = vpop.f32.mrb[18].mxu1  ;;  %v2121_v59 = vadd.f32 %v2120_v37, %v2054_v1 }
 0x7c6   : > { %v2124_v11 = vpop.f32.mrb[19].mxu1  ;;  %v2123_v20 = vadd.f32 %v2122_v49, %v2058_v5 }
 0x7c7   : > { %v2125_v13 = vadd.f32 %v2124_v11, %v2058_v5 }
 0x7cb   : > { %v2128_v18 = vpop.f32.mrb[20].mxu1 }
 0x7cc   : > { %v2129_v53 = vadd.f32 %v2128_v18, %v2062_v30  ;;  %v2130_v27 = vpop.f32.mrb[21].mxu1 }
 0x7cd   : > { %v2131_v60 = vadd.f32 %v2130_v27, %v2062_v30  ;;  %v2132_v42 = vpop.f32.mrb[22].mxu1 }
 0x7ce   : > { %v2137_v44 = vmul.f32 %v2129_v53, %v2119_v26  ;;  %v2133_v41 = vadd.f32 %v2132_v42, %v2066_v47  ;;  %v2134_v63 = vpop.f32.mrb[23].mxu1 }
 0x7cf   : > { %v2138_v7 = vmul.f32 %v2131_v60, %v2121_v59  ;;  %v2135_v51 = vadd.f32 %v2134_v63, %v2066_v47 }
 0x7d0   : > { %v2139_v4 = vmul.f32 %v2133_v41, %v2123_v20 }
 0x7d1   : > { %v2140_v2 = vmul.f32 %v2135_v51, %v2125_v13 }
 0x7d2   : > { %v2144_v14 = vpack.c.bf16 %v2139_v4, %v2137_v44 }
 0x7d3   : > { %v2145_v23 = vpack.c.bf16 %v2140_v2, %v2138_v7  ;;  %v2929_v2 = vld [vmem:[%s4634_s2 + $0x2] sm:$0x3] }
 0x7d5   : > { %2162 = vmatprep.subr.bf16.mxu1 %v2145_v23 }
 0x7d6   : > { %2163 = vmatpush1.bf16.msra.mxu1 %v2144_v14 }
 0x7d9   : > { %2928 = vmatmul.mubr.msk.bf16.vlgmr.msra.gmra.mrb[24].mxu1 %vm4793_vm15, %v3225_v54  ;;  %vm2930_vm15 = vmpackc.low %vm4798_vm7, %vm4798_vm7 }
 0x7da   : > { %2296 = vmatprep.mubr.bf16.mxu1 %v4779_v34  ;;  %vm2934_vm7 = vmpackc.low %vm3403_vm9, %vm3403_vm9 }
 0x8ac   : > { %v2196_v36 = vpop.f32.mrb[24].mxu1 }
 0x8ad   : > { %v2197_v28 = vadd.f32 %v2196_v36, %v2148_v15  ;;  %v2198_v33 = vpop.f32.mrb[25].mxu1 }
 0x8ae   : > { %v2199_v48 = vadd.f32 %v2198_v33, %v2148_v15  ;;  %v2200_v62 = vpop.f32.mrb[26].mxu1 }
 0x8af   : > { %v2213_v58 = vmul.f32 %v2207_v25, %v2197_v28  ;;  %v2201_v21 = vadd.f32 %v2200_v62, %v2152_v56  ;;  %v2202_v24 = vpop.f32.mrb[27].mxu1 }
 0x8b0   : > { %v2214_v19 = vmul.f32 %v2207_v25, %v2199_v48  ;;  %v2203_v16 = vadd.f32 %v2202_v24, %v2152_v56 }
 0x8b1   : > { %v2215_v40 = vmul.f32 %v2211_v39, %v2201_v21  ;;  %v4401_v29 = vadd.f32 %v2213_v58, %v4364_v8 }
 0x8b2   : > { %v2216_v55 = vmul.f32 %v2211_v39, %v2203_v16  ;;  %v4407_v6 = vadd.f32 %v2214_v19, %v4370_v31  ;;  %v3268_v31 = vmov 10  }
 0x8b3   : > { %v4404_v12 = vadd.f32 %v2215_v40, %v4367_v43  ;;  %v2221_v43 = vld [vmem:[%s4638_s6] sm:$0x7]  ;;  %3208 = vset.pattern.permute.xlu0 %v3268_v31 }
 0x8b4   : > { %v4410_v3 = vadd.f32 %v2216_v55, %v4373_v61  ;;  %v2222_v31 = vld [vmem:[%s4634_s2] sm:$0x3] }
 0x8b5   : > { %v3128_v46 = vpack.i.bf16 %v4404_v12, %v4401_v29  ;;  %v2483_v50 = vpack.c.bf16 %v4404_v12, %v4401_v29 }
 0x8b6   : > { %v3133_v1 = vpack.i.bf16 %v4410_v3, %v4407_v6  ;;  %v2484_v8 = vpack.c.bf16 %v4410_v3, %v4407_v6 }
 0x8b7   : > { %3129 = vrot.lane.b32.xlu0 %v3128_v46, %s3250_s11 }
 0x8b8   : > { %3134 = vrot.lane.b32.xlu1 %v3133_v1, %s3250_s11 }
 0x8bb   : > { %3139 = vrot.lane.b32.xlu0 %v3128_v46, %s3252_s13 }
 0x8bc   : > { %3149 = vrot.lane.b32.xlu1 %v3133_v1, %s3252_s13 }
 0x8bf   : > { %3144 = vrot.lane.b32.xlu0 %v3128_v46, %s3251_s12 }
 0x8c0   : > { %3154 = vrot.lane.b32.xlu1 %v3133_v1, %s3251_s12 }
 0x8c3   : > { %3159 = vrot.lane.b32.xlu0 %v3128_v46, %s3253_s14 }
 0x8c4   : > { %3164 = vrot.lane.b32.xlu1 %v3133_v1, %s3253_s14 }
 0x8c7   : > { %3169 = vrot.lane.b32.xlu0 %v3128_v46, %s3254_s15 }
 0x8c8   : > { %3189 = vrot.lane.b32.xlu1 %v3133_v1, %s3254_s15  ;;  %s305_s15 = scalar_lea.vmem %s4640_s8, %s2990_s29 }
 0x8cb   : > { %3174 = vrot.lane.b32.xlu0 %v3128_v46, %s3255_s16 }
 0x8cc   : > { %3194 = vrot.lane.b32.xlu1 %v3133_v1, %s3255_s16 }
 0x8cf   : > { %3179 = vrot.lane.b32.xlu0 %v3128_v46, %s3256_s17 }
 0x8d0   : > { %3199 = vrot.lane.b32.xlu1 %v3133_v1, %s3256_s17 }
 0x8d3   : > { %3184 = vrot.lane.b32.xlu0 %v3128_v46, %s3257_s18 }
 0x8d4   : > { %3204 = vrot.lane.b32.xlu1 %v3133_v1, %s3257_s18 }
 0x8d7   : > { %2797 = vperm.xlu0 %3208, %v2221_v43  }
 0x929   : > { %v3130_v61 = vpop.permute.xlu0 %3129 }
 0x92a   : > { %v3132_v45 = vunpack.i.h.bf16 %v3130_v61  ;;  %v3131_v37 = vunpack.i.l.bf16 %v3130_v61  ;;  %v3135_v49 = vpop.permute.xlu1 %3134 }
 0x92b   : > { %v3137_v11 = vunpack.i.h.bf16 %v3135_v49  ;;  %v3136_v5 = vunpack.i.l.bf16 %v3135_v49 }
 0x92d   : > { %v2253_v30 = vsel %vm4794_vm3, %v3136_v5, %v3131_v37  ;;  %v2254_v18 = vsel %vm4795_vm11, %v3137_v11, %v3132_v45  ;;  %v3140_v26 = vpop.permute.xlu0 %3139  ;;  %v2251_v53 = vsel %vm4796_vm2, %v3131_v37, %v3136_v5  ;;  %v2252_v27 = vsel %vm4797_vm12, %v3132_v45, %v3137_v11  ;;  %v2941_v5 = vld [vmem:[%s4634_s2 + $0x4] sm:$0x3] }
 0x92e   : > { %v2931_v59 = vpack.c.bf16 %v2254_v18, %v2253_v30  ;;  %v3142_v47 = vunpack.i.h.bf16 %v3140_v26  ;;  %v3141_v60 = vunpack.i.l.bf16 %v3140_v26  ;;  %v3150_v42 = vpop.permute.xlu1 %3149  ;;  %v2260_v20 = vpack.c.bf16 %v2252_v27, %v2251_v53 }
 0x92f   : > { %v3152_v44 = vunpack.i.h.bf16 %v3150_v42  ;;  %v3151_v41 = vunpack.i.l.bf16 %v3150_v42  ;;  %vm4799_vm3 = vcmp.lt.s32.totalorder %v3362_v9, 17 }
 0x930   : > { %2264 = vmatprep.subr.bf16.mxu1 %v2260_v20  ;;  %vm4800_vm11 = vmmov %vm4799_vm3 }
 0x931   : > { %v2231_v63 = vsel %vm4799_vm3, %v3141_v60, %v3151_v41  ;;  %v2232_v13 = vsel %vm4800_vm11, %v3142_v47, %v3152_v44  ;;  %vm4801_vm2 = vmmov %vm4799_vm3  ;;  %v3145_v4 = vpop.permute.xlu0 %3144  ;;  %2932 = vmatpush1.bf16.msk.msra.mxu1 %vm2930_vm15, %v2931_v59  ;;  %vm4803_vm15 = vcmask 130048   ;;  %vm4804_vm11 = vcmp.lt.s32.totalorder %v3362_v9, 15 }
 0x932   : > { %v2233_v7 = vsel %vm4801_vm2, %v3151_v41, %v3141_v60  ;;  %vm4802_vm12 = vmmov %vm4801_vm2  ;;  %v2935_v14 = vpack.c.bf16 %v2232_v13, %v2231_v63  ;;  %v3147_v54 = vunpack.i.h.bf16 %v3145_v4  ;;  %v3146_v15 = vunpack.i.l.bf16 %v3145_v4  ;;  %v3155_v25 = vpop.permute.xlu1 %3154  ;;  %v2949_v41 = vld [vmem:[%s4634_s2 + $0x6] sm:$0x3] }
 0x933   : > { %v2234_v51 = vsel %vm4802_vm12, %v3152_v44, %v3142_v47  ;;  %vm2937_vm3 = vmpackc.low %vm3399_vm8, %vm3399_vm8  ;;  %v3157_v36 = vunpack.i.h.bf16 %v3155_v25  ;;  %v3156_v56 = vunpack.i.l.bf16 %v3155_v25 }
 0x934   : > { %v2938_v23 = vpack.c.bf16 %v2234_v51, %v2233_v7  ;;  %2933 = vmatmul.mubr.msk.bf16.vlgmr.msra.gmra.mrb[28].mxu1 %vm4803_vm15, %v2929_v2  ;;  %2936 = vmatprep.subr.msk.bf16.mxu1 %vm2934_vm7, %v2935_v14  ;;  %vm4805_vm2 = vmmov %vm4804_vm11 }
 0x935   : > { %v2359_v28 = vsel %vm4804_vm11, %v3146_v15, %v3156_v56  ;;  %v2360_v33 = vsel %vm4805_vm2, %v3147_v54, %v3157_v36  ;;  %vm4806_vm12 = vmmov %vm4805_vm2  ;;  %v3160_v62 = vpop.permute.xlu0 %3159  ;;  %2340 = vmatprep.mubr.bf16.mxu1 %v4779_v34 }
 0x936   : > { %v2361_v32 = vsel %vm4806_vm12, %v3156_v56, %v3146_v15  ;;  %vm4807_vm8 = vmmov %vm4805_vm2  ;;  %2939 = vmatpush1.bf16.msk.msra.mxu1 %vm2937_vm3, %v2938_v23  ;;  %v2943_v58 = vpack.c.bf16 %v2360_v33, %v2359_v28  ;;  %v3162_v24 = vunpack.i.h.bf16 %v3160_v62  ;;  %v3161_v19 = vunpack.i.l.bf16 %v3160_v62  ;;  %v3165_v16 = vpop.permute.xlu1 %3164  ;;  %v2957_v23 = vld [vmem:[%s4634_s2 + $0x8] sm:$0x3] }
 0x937   : > { %v2362_v48 = vsel %vm4807_vm8, %v3157_v36, %v3147_v54  ;;  %vm2942_vm15 = vmpackc.low %vm3373_vm5, %vm3373_vm5  ;;  %v3167_v39 = vunpack.i.h.bf16 %v3165_v16  ;;  %v3166_v40 = vunpack.i.l.bf16 %v3165_v16  ;;  %vm4808_vm3 = vcmp.lt.s32.totalorder %v3362_v9, 1 }
 0x938   : > { %v2946_v21 = vpack.c.bf16 %v2362_v48, %v2361_v32  ;;  %vm2945_vm11 = vmpackc.low %vm3431_vm13, %vm3431_vm13  ;;  %2944 = vmatprep.subr.msk.bf16.mxu0 %vm2942_vm15, %v2943_v58 }
 0x939   : > { %v2425_v55 = vsel %vm4808_vm3, %v3161_v19, %v3166_v40  ;;  %vm4809_vm2 = vmmov %vm4808_vm3  ;;  %v3170_v43 = vpop.permute.xlu0 %3169  ;;  %vm4813_vm3 = vcmp.lt.s32.totalorder %v3362_v9, 127 }
 0x93a   : > { %v2426_v46 = vsel %vm4809_vm2, %v3162_v24, %v3167_v39  ;;  %vm4810_vm12 = vmmov %vm4809_vm2  ;;  %2947 = vmatpush1.bf16.msk.msra.mxu0 %vm2945_vm11, %v2946_v21  ;;  %v3172_v37 = vunpack.i.h.bf16 %v3170_v43  ;;  %v3171_v49 = vunpack.i.l.bf16 %v3170_v43  ;;  %v3190_v11 = vpop.permute.xlu1 %3189  ;;  %vm4812_vm11 = vcmask 130048  }
 0x93b   : > { %v2427_v52 = vsel %vm4810_vm12, %v3166_v40, %v3161_v19  ;;  %vm4811_vm13 = vmmov %vm4809_vm2  ;;  %v2951_v61 = vpack.c.bf16 %v2426_v46, %v2425_v55  ;;  %2488 = vmatprep.subr.bf16.mxu0 %v2484_v8  ;;  %v3192_v30 = vunpack.i.h.bf16 %v3190_v11  ;;  %v3191_v18 = vunpack.i.l.bf16 %v3190_v11  ;;  %v2967_v40 = vld [vmem:[%s4634_s2 + $0xc] sm:$0x3] }
 0x93c   : > { %v2428_v1 = vsel %vm4811_vm13, %v3167_v39, %v3162_v24  ;;  %vm2953_vm8 = vmpackc.low %vm3377_vm6, %vm3377_vm6  ;;  %2940 = vmatmul.mubr.msk.bf16.vlgmr.msra.gmra.mrb[32].mxu1 %vm4812_vm11, %v2222_v31  ;;  %vm4818_vm13 = vcmp.lt.s32.totalorder %v3362_v9, 113  ;;  %v2959_v24 = vld [vmem:[%s4634_s2 + $0xa] sm:$0x3] }
 0x93d   : > { %v2954_v45 = vpack.c.bf16 %v2428_v1, %v2427_v52  ;;  %2952 = vmatprep.subr.msk.bf16.mxu1 %vm2934_vm7, %v2951_v61  ;;  %v2543_v6 = vsel %vm4813_vm3, %v3191_v18, %v3171_v49  ;;  %vm4814_vm2 = vmmov %vm4813_vm3  ;;  %v3175_v8 = vpop.permute.xlu0 %3174  ;;  %2470 = vmatprep.mubr.bf16.mxu1 %v4779_v34 }
 0x93e   : > { %v2544_v3 = vsel %vm4814_vm2, %v3192_v30, %v3172_v37  ;;  %vm4815_vm12 = vmmov %vm4812_vm11  ;;  %v3177_v53 = vunpack.i.h.bf16 %v3175_v8  ;;  %v3176_v27 = vunpack.i.l.bf16 %v3175_v8  ;;  %v3195_v35 = vpop.permute.xlu1 %3194 }
 0x93f   : > { %2948 = vmatmul.mubr.msk.bf16.vlgmr.msra.gmra.mrb[4].mxu0 %vm4815_vm12, %v2941_v5  ;;  %v2961_v26 = vpack.c.bf16 %v2544_v3, %v2543_v6  ;;  %2955 = vmatpush1.bf16.msk.msra.mxu1 %vm2953_vm8, %v2954_v45  ;;  %v3197_v59 = vunpack.i.h.bf16 %v3195_v35  ;;  %v3196_v47 = vunpack.i.l.bf16 %v3195_v35  ;;  %vm4816_vm9 = vmmov %vm4814_vm2 }
 0x940   : > { %2489 = vmatpush1.bf16.msra.mxu0 %v2483_v50  ;;  %2520 = vmatprep.mubr.bf16.mxu0 %v4779_v34  ;;  %v2541_v60 = vsel %vm4816_vm9, %v3171_v49, %v3191_v18  ;;  %vm4817_vm7 = vmmov %vm4814_vm2 }
 0x941   : > { %v2542_v42 = vsel %vm4817_vm7, %v3172_v37, %v3192_v30  ;;  %2962 = vmatprep.subr.msk.bf16.mxu1 %vm2942_vm15, %v2961_v26  ;;  %v2607_v29 = vsel %vm4818_vm13, %v3176_v27, %v3196_v47  ;;  %vm4819_vm11 = vmmov %vm4818_vm13  ;;  %v3180_v44 = vpop.permute.xlu0 %3179 }
 0x942   : > { %v2608_v12 = vsel %vm4819_vm11, %v3177_v53, %v3197_v59  ;;  %vm4820_vm3 = vmmov %vm4819_vm11  ;;  %v3182_v63 = vunpack.i.h.bf16 %v3180_v44  ;;  %v3181_v13 = vunpack.i.l.bf16 %v3180_v44  ;;  %v3200_v7 = vpop.permute.xlu1 %3199  ;;  %v2964_v51 = vpack.c.bf16 %v2542_v42, %v2541_v60 }
 0x943   : > { %v2609_v50 = vsel %vm4820_vm3, %v3196_v47, %v3176_v27  ;;  %vm4821_vm2 = vmmov %vm4820_vm3  ;;  %v2972_v4 = vpack.c.bf16 %v2608_v12, %v2607_v29  ;;  %v3202_v2 = vunpack.i.h.bf16 %v3200_v7  ;;  %v3201_v14 = vunpack.i.l.bf16 %v3200_v7 }
 0x944   : > { %v2610_v20 = vsel %vm4821_vm2, %v3197_v59, %v3177_v53  ;;  %vm2968_vm5 = vmpackc.low %vm3487_vm1, %vm3487_vm1  ;;  %2956 = vmatmul.mubr.msk.bf16.vlgmr.msra.gmra.mrb[36].mxu1 %vm4815_vm12, %v2949_v41 }
 0x945   : > { %v2969_v17 = vpack.c.bf16 %v2610_v20, %v2609_v50  ;;  %vm2963_vm15 = vmpackc.low %vm3408_vm10, %vm3408_vm10  ;;  %v2675_v0 = vsel %vm899_vm14, %v3201_v14, %v3181_v13  ;;  %v2676_v54 = vsel %vm899_vm14, %v3202_v2, %v3182_v63  ;;  %v3185_v15 = vpop.permute.xlu0 %3184  ;;  %2586 = vmatprep.mubr.bf16.mxu1 %v4779_v34  ;;  %v2673_v10 = vsel %vm899_vm14, %v3181_v13, %v3201_v14 }
 0x946   : > { %2965 = vmatpush1.bf16.msk.msra.mxu1 %vm2963_vm15, %v2964_v51  ;;  %vm2976_vm1 = vmpackc.low %vm346_vm0, %vm346_vm0  ;;  %v2977_v25 = vpack.c.bf16 %v2676_v54, %v2675_v0  ;;  %v3187_v36 = vunpack.i.h.bf16 %v3185_v15  ;;  %v3186_v56 = vunpack.i.l.bf16 %v3185_v15  ;;  %v3205_v28 = vpop.permute.xlu1 %3204  ;;  %v2674_v48 = vsel %vm899_vm14, %v3182_v63, %v3202_v2 }
 0x947   : > { %2970 = vmatprep.subr.msk.bf16.mxu0 %vm2968_vm5, %v2969_v17  ;;  %vm4822_vm9 = vmmov %vm4815_vm12  ;;  %v3207_v33 = vunpack.i.h.bf16 %v3205_v28  ;;  %v3206_v32 = vunpack.i.l.bf16 %v3205_v28  ;;  %vm4823_vm0 = vcmp.lt.s32.totalorder %v3362_v9, 111  ;;  %v2681_v16 = vpack.c.bf16 %v2674_v48, %v2673_v10  ;;  %v2975_v9 = vld [vmem:[%s4634_s2 + $0xe] sm:$0x3] }
 0x948   : > { %2958 = vmatmul.mubr.msk.bf16.vlgmr.msra.gmra.mrb[8].mxu0 %vm4822_vm9, %v2957_v23  ;;  %2978 = vmatprep.subr.msk.bf16.mxu1 %vm2976_vm1, %v2977_v25  ;;  %vm4824_vm7 = vmmov %vm4823_vm0 }
 0x949   : > { %2973 = vmatpush1.bf16.msk.msra.mxu0 %vm2953_vm8, %v2972_v4  ;;  %2652 = vmatprep.mubr.bf16.mxu0 %v4779_v34  ;;  %v2739_v62 = vsel %vm4823_vm0, %v3186_v56, %v3206_v32  ;;  %v2740_v58 = vsel %vm4824_vm7, %v3187_v36, %v3207_v33  ;;  %vm4825_vm6 = vmmov %vm4823_vm0 }
 0x94a   : > { %v2741_v22 = vsel %vm4825_vm6, %v3206_v32, %v3186_v56  ;;  %vm4826_vm8 = vmmov %vm4823_vm0  ;;  %v2985_v39 = vpack.c.bf16 %v2740_v58, %v2739_v62 }
 0x94b   : > { %v2742_v21 = vsel %vm4826_vm8, %v3207_v33, %v3187_v36  ;;  %vm2981_vm14 = vmpackc.low %vm3525_vm4, %vm3525_vm4 }
 0x94c   : > { %v2982_v19 = vpack.c.bf16 %v2742_v21, %v2741_v22  ;;  %vm4827_vm13 = vmmov %vm4822_vm9  ;;  %v3240_v22 = vld [vmem:[%s3330_s10] sm:$0x77] }
 0x94d   : > { %2966 = vmatmul.mubr.msk.bf16.vlgmr.msra.gmra.mrb[40].mxu1 %vm4827_vm13, %v2959_v24  ;;  %vm4828_vm11 = vmmov %vm4822_vm9  ;;  %v4831_v24 = vld [vmem:[#allocation2_spill] sm:$0xff] }
 0x94e   : > { %2983 = vmatprep.subr.msk.bf16.mxu0 %vm2981_vm14, %v2982_v19  ;;  %2687 = vmatpush1.bf16.msra.mxu1 %v2681_v16  ;;  %vm4829_vm4 = vmmov %vm4822_vm9 }
 0x94f   : > { %2718 = vmatprep.mubr.bf16.mxu1 %v4779_v34  ;;  %vm4830_vm3 = vmmov %vm4829_vm4 }
 0x950   : > { %2974 = vmatmul.mubr.msk.bf16.vlgmr.msra.gmra.mrb[12].mxu0 %vm4828_vm11, %v2967_v40 }
 0x951   : > { %2986 = vmatpush1.bf16.msk.msra.mxu0 %vm2963_vm15, %v2985_v39  ;;  %2784 = vmatprep.mubr.bf16.mxu0 %v4779_v34 }
 0x955   : > { %2979 = vmatmul.mubr.msk.bf16.vlgmr.msra.gmra.mrb[44].mxu1 %vm4829_vm4, %v2975_v9 }
 0x956   : > { %v2798_v54 = vpop.permute.xlu0 %2797 }
 0x958   : > { %2987 = vmatmul.mubr.msk.bf16.vlgmr.msra.gmra.mrb[16].mxu0 %vm4830_vm3, %v2980_v57 }
 0xa07   : > { %v2298_v55 = vpop.f32.mrb[28].mxu1 }
 0xa08   : > { %v2300_v46 = vpop.f32.mrb[29].mxu1 }
 0xa09   : > { %v2302_v52 = vpop.f32.mrb[30].mxu1 }
 0xa0a   : > { %v2303_v38 = vpop.f32.mrb[31].mxu1 }
 0xa0f   : > { %v2342_v1 = vpop.f32.mrb[32].mxu1 }
 0xa10   : > { %v2343_v43 = vadd.f32 %v2342_v1, %v2298_v55  ;;  %v2344_v31 = vpop.f32.mrb[33].mxu1 }
 0xa11   : > { %v2345_v61 = vadd.f32 %v2344_v31, %v2300_v46  ;;  %v2346_v45 = vpop.f32.mrb[34].mxu1 }
 0xa12   : > { %v2406_v34 = vpop.f32.mrb[4].mxu0  ;;  %v2347_v11 = vpop.f32.mrb[35].mxu1 }
 0xa13   : > { %v2408_v37 = vpop.f32.mrb[5].mxu0  ;;  %v2413_v49 = vadd.f32 %v2406_v34, %v2343_v43 }
 0xa14   : > { %v2410_v5 = vpop.f32.mrb[6].mxu0  ;;  %v2414_v30 = vadd.f32 %v2408_v37, %v2345_v61 }
 0xa15   : > { %v2411_v18 = vpop.f32.mrb[7].mxu0 }
 0xa17   : > { %v2472_v6 = vpop.f32.mrb[36].mxu1 }
 0xa18   : > { %v2479_v3 = vadd.f32 %v2472_v6, %v2413_v49  ;;  %v2474_v8 = vpop.f32.mrb[37].mxu1 }
 0xa19   : > { %v2480_v26 = vadd.f32 %v2474_v8, %v2414_v30  ;;  %v2476_v27 = vpop.f32.mrb[38].mxu1 }
 0xa1a   : > { %v2477_v47 = vpop.f32.mrb[39].mxu1 }
 0xa1b   : > { %v2522_v53 = vpop.f32.mrb[8].mxu0 }
 0xa1c   : > { %v2529_v35 = vadd.f32 %v2522_v53, %v2479_v3  ;;  %v2524_v59 = vpop.f32.mrb[9].mxu0 }
 0xa1d   : > { %v2530_v60 = vadd.f32 %v2524_v59, %v2480_v26  ;;  %v2526_v42 = vpop.f32.mrb[10].mxu0 }
 0xa1e   : > { %v2527_v29 = vpop.f32.mrb[11].mxu0 }
 0xa20   : > { %v2588_v12 = vpop.f32.mrb[40].mxu1 }
 0xa21   : > { %v2595_v50 = vadd.f32 %v2588_v12, %v2529_v35  ;;  %v2590_v20 = vpop.f32.mrb[41].mxu1 }
 0xa22   : > { %v2596_v44 = vadd.f32 %v2590_v20, %v2530_v60  ;;  %v2592_v17 = vpop.f32.mrb[42].mxu1 }
 0xa23   : > { %v2654_v41 = vpop.f32.mrb[12].mxu0  ;;  %v2593_v7 = vpop.f32.mrb[43].mxu1 }
 0xa24   : > { %v2661_v63 = vadd.f32 %v2654_v41, %v2595_v50  ;;  %v2656_v13 = vpop.f32.mrb[13].mxu0 }
 0xa25   : > { %v2662_v51 = vadd.f32 %v2656_v13, %v2596_v44  ;;  %v2658_v4 = vpop.f32.mrb[14].mxu0 }
 0xa26   : > { %v2659_v2 = vpop.f32.mrb[15].mxu0 }
 0xa28   : > { %v2720_v14 = vpop.f32.mrb[44].mxu1 }
 0xa29   : > { %v2727_v23 = vadd.f32 %v2720_v14, %v2661_v63  ;;  %v2722_v0 = vpop.f32.mrb[45].mxu1 }
 0xa2a   : > { %v2728_v15 = vadd.f32 %v2722_v0, %v2662_v51  ;;  %v2724_v36 = vpop.f32.mrb[46].mxu1 }
 0xa2b   : > { %v2786_v25 = vpop.f32.mrb[16].mxu0  ;;  %v2725_v33 = vpop.f32.mrb[47].mxu1 }
 0xa2c   : > { %v2793_v56 = vadd.f32 %v2786_v25, %v2727_v23  ;;  %v2788_v28 = vpop.f32.mrb[17].mxu0 }
 0xa2d   : > { %v2794_v32 = vadd.f32 %v2788_v28, %v2728_v15  ;;  %v2790_v10 = vpop.f32.mrb[18].mxu0 }
 0xa2e   : > { %v2800_v48 = vadd.f32 %v2798_v54, %v2793_v56  ;;  %v2791_v62 = vpop.f32.mrb[19].mxu0 }
 0xa2f   : > { %v2801_v58 = vadd.f32 %v2798_v54, %v2794_v32 }
 0xa30   : > { %v2802_v21 = vadd.f32 %v3240_v22, %v2800_v48 }
 0xa31   : > { %v2803_v19 = vadd.f32 %v2801_v58, %v4831_v24 }
 0xa33   : > { %v2806_v16 = vcombine.low %v2802_v21, %v2803_v19 }
 0xa35   : > { %2808 = vst [vmem:[%s305_s15] sm:$0x77] %v2806_v16 }
 0xa36 PF: > { %s18_s27 = sadd.s32 1, %s3247_s27  }
 0xa37   : > { %p15_p4 = scmp.ge.s32.totalorder %s18_s27, 4  }
 0xa39   :  { %17 = sbr.rel (!%p15_p4) target bundleno = 1 (0x1), region = 101 }

</bundles_post_ra>
